<compile_context>
chip_gen: v7x
topology: tpu7x:2x2x1
jax: 0.10.0
libtpu: 0.0.40
codegen_flags: <defaults>
</compile_context>

<pallas_src>
import functools

import jax
import jax.numpy as jnp
from jax.experimental import pallas as pl
from jax.experimental.pallas import tpu as pltpu

# Layer dims of the autoencoder: encoder then decoder.
DIMS = [28 * 28, 128, 64, 12, 3, 12, 64, 128, 28 * 28]
# Activation applied *after* each of the 8 linear layers.
ACTS = ["relu", "relu", "relu", "none", "relu", "relu", "relu", "sigmoid"]
NUM_LAYERS = len(DIMS) - 1
D_PAD = 896  # 7 * 128: lane-dense padding of the 784-wide input/output dim.


def _padded_dims(k):
    """(in, out) dims of layer k after padding first-K / last-N 784 -> 896."""
    d_in = D_PAD if k == 0 else DIMS[k]
    d_out = D_PAD if k == NUM_LAYERS - 1 else DIMS[k + 1]
    return d_in, d_out


def _autoencoder_kernel(x_ref, *refs):
    """refs = (w1..w8, b1..b8, out_ref). All tiles live fully in VMEM."""
    w_refs = refs[:NUM_LAYERS]
    b_refs = refs[NUM_LAYERS:2 * NUM_LAYERS]
    out_ref = refs[2 * NUM_LAYERS]

    h = x_ref[...]  # (TB, 896) f32
    for i in range(NUM_LAYERS):
        # bf16 x bf16 -> f32 accumulate: native MXU path on v5e/v6e/v7x.
        # Bias add + activation stay in f32 on the VPU/EUP.
        h = jnp.dot(h.astype(jnp.bfloat16), w_refs[i][...],
                    preferred_element_type=jnp.float32)
        h = h + b_refs[i][...]  # (1, out) broadcasts over batch rows
        if ACTS[i] == "relu":
            h = jnp.maximum(h, 0.0)
        elif ACTS[i] == "sigmoid":
            h = jax.nn.sigmoid(h)
    out_ref[...] = h.astype(out_ref.dtype)


@functools.partial(jax.jit, static_argnames=("batch_tile",))
def autoencoder_forward(x, weights, biases, *, batch_tile=256):
    """x: (B, 784) f32. weights[k]: (in_k, out_k) f32. biases[k]: (1, out_k) f32."""
    B, d_in = x.shape
    assert d_in == DIMS[0]

    # Pad batch up to a tile multiple and features 784 -> 896 (zeros).
    b_pad = ((B + batch_tile - 1) // batch_tile) * batch_tile
    x_p = jnp.pad(x, ((0, b_pad - B), (0, D_PAD - d_in)))

    # Pad + cast parameters. Zero-padding W1's K rows / W8's N cols leaves the
    # math unchanged; weights go to bf16 (MXU-native), biases stay f32.
    w_p, b_p = [], []
    for k in range(NUM_LAYERS):
        wd_in, wd_out = _padded_dims(k)
        w = jnp.pad(weights[k], ((0, wd_in - DIMS[k]), (0, wd_out - DIMS[k + 1])))
        b = jnp.pad(biases[k], ((0, 0), (0, wd_out - DIMS[k + 1])))
        w_p.append(w.astype(jnp.bfloat16))
        b_p.append(b.astype(jnp.float32))

    grid = (b_pad // batch_tile,)

    # x / out tiled over batch; parameters use full-array blocks (under 0.5 MB
    # total in bf16, resident in VMEM for every grid step).
    x_spec = pl.BlockSpec((batch_tile, D_PAD), lambda i: (i, 0))
    out_spec = pl.BlockSpec((batch_tile, D_PAD), lambda i: (i, 0))
    w_specs = [pl.BlockSpec(_padded_dims(k), lambda i: (0, 0))
               for k in range(NUM_LAYERS)]
    b_specs = [pl.BlockSpec((1, _padded_dims(k)[1]), lambda i: (0, 0))
               for k in range(NUM_LAYERS)]

    out_p = pl.pallas_call(
        _autoencoder_kernel,
        out_shape=jax.ShapeDtypeStruct((b_pad, D_PAD), jnp.float32),
        grid_spec=pltpu.PrefetchScalarGridSpec(
            num_scalar_prefetch=0,
            grid=grid,
            in_specs=[x_spec] + w_specs + b_specs,
            out_specs=out_spec,
        ),
        compiler_params=pltpu.CompilerParams(
            # Batch tiles are independent -> megacore sharding on v7x.
            dimension_semantics=("parallel",),
            # Headroom for batch tiles up to ~1024 rows; safe on 64 MiB v7x.
            vmem_limit_bytes=48 * 1024 * 1024,
        ),
    )(x_p, *w_p, *b_p)

    return out_p[:B, :DIMS[-1]]


def init_params(key):
    """Deterministic synthetic parameters (PyTorch-style uniform fan-in init)."""
    weights, biases = [], []
    for k in range(NUM_LAYERS):
        key, wk, bk = jax.random.split(key, 3)
        fan_in = DIMS[k]
        bound = 1.0 / jnp.sqrt(fan_in)
        w = jax.random.uniform(
            wk, (DIMS[k], DIMS[k + 1]), jnp.float32, -bound, bound
        )
        b = jax.random.uniform(
            bk, (1, DIMS[k + 1]), jnp.float32, -bound, bound
        )
        weights.append(w)
        biases.append(b)
    return weights, biases


def reference_forward(x, weights, biases, matmul_dtype=jnp.float32):
    """Pure-JAX reference matching the PyTorch module.

    matmul_dtype=jnp.bfloat16 mirrors the kernel's bf16-multiply / f32-accum
    path exactly; jnp.float32 is the original full-precision module.
    """
    h = x
    for i in range(NUM_LAYERS):
        h = jnp.dot(h.astype(matmul_dtype), weights[i].astype(matmul_dtype),
                    preferred_element_type=jnp.float32)
        h = h + biases[i]
        if ACTS[i] == "relu":
            h = jnp.maximum(h, 0.0)
        elif ACTS[i] == "sigmoid":
            h = jax.nn.sigmoid(h)
    return h


if __name__ == "__main__":
    key = jax.random.PRNGKey(0)
    key, xk = jax.random.split(key)

    B = 512  # two batch tiles -> grid of 2 (both TensorCores on v7x)
    x = jax.random.normal(xk, (B, 28 * 28), jnp.float32)

    weights, biases = init_params(key)

    out = autoencoder_forward(x, weights, biases, batch_tile=256)
    out = jax.block_until_ready(out)
    assert out.shape == (B, 28 * 28)

    # Tight check vs. a reference that uses the same bf16-mul / f32-accum path.
    ref_bf16 = reference_forward(x, weights, biases, matmul_dtype=jnp.bfloat16)
    assert jnp.allclose(out, ref_bf16, atol=1e-4, rtol=1e-4), (
        float(jnp.max(jnp.abs(out - ref_bf16)))
    )
    # Loose check vs. the full-f32 PyTorch-equivalent module (sigmoid output).
    ref_f32 = reference_forward(x, weights, biases, matmul_dtype=jnp.float32)
    assert jnp.allclose(out, ref_f32, atol=5e-2), (
        float(jnp.max(jnp.abs(out - ref_f32)))
    )

    print("KERNEL_OK")
</pallas_src>

<mosaic_0001>
module attributes {stable_mosaic.version = 11 : i64} {
  func.func @_autoencoder_kernel(%arg0: i32, %arg1: memref<256x896xf32, #tpu.memory_space<vmem>>, %arg2: memref<896x128xbf16, #tpu.memory_space<vmem>>, %arg3: memref<128x64xbf16, #tpu.memory_space<vmem>>, %arg4: memref<64x12xbf16, #tpu.memory_space<vmem>>, %arg5: memref<12x3xbf16, #tpu.memory_space<vmem>>, %arg6: memref<3x12xbf16, #tpu.memory_space<vmem>>, %arg7: memref<12x64xbf16, #tpu.memory_space<vmem>>, %arg8: memref<64x128xbf16, #tpu.memory_space<vmem>>, %arg9: memref<128x896xbf16, #tpu.memory_space<vmem>>, %arg10: memref<1x128xf32, #tpu.memory_space<vmem>>, %arg11: memref<1x64xf32, #tpu.memory_space<vmem>>, %arg12: memref<1x12xf32, #tpu.memory_space<vmem>>, %arg13: memref<1x3xf32, #tpu.memory_space<vmem>>, %arg14: memref<1x12xf32, #tpu.memory_space<vmem>>, %arg15: memref<1x64xf32, #tpu.memory_space<vmem>>, %arg16: memref<1x128xf32, #tpu.memory_space<vmem>>, %arg17: memref<1x896xf32, #tpu.memory_space<vmem>>, %arg18: memref<256x896xf32, #tpu.memory_space<vmem>>) attributes {dimension_semantics = [#tpu.dimension_semantics<parallel>], iteration_bounds = array<i64: 2>, scalar_prefetch = 0 : i64, scratch_operands = 0 : i64, tpu.core_type = #tpu.core_type<tc>, window_params = [{transform_indices = @transform_0, window_bounds = array<i64: 256, 896>}, {pipeline_mode = #tpu.pipeline_mode<synchronous>, transform_indices = @transform_1, window_bounds = array<i64: 896, 128>}, {pipeline_mode = #tpu.pipeline_mode<synchronous>, transform_indices = @transform_2, window_bounds = array<i64: 128, 64>}, {pipeline_mode = #tpu.pipeline_mode<synchronous>, transform_indices = @transform_3, window_bounds = array<i64: 64, 12>}, {pipeline_mode = #tpu.pipeline_mode<synchronous>, transform_indices = @transform_4, window_bounds = array<i64: 12, 3>}, {pipeline_mode = #tpu.pipeline_mode<synchronous>, transform_indices = @transform_5, window_bounds = array<i64: 3, 12>}, {pipeline_mode = #tpu.pipeline_mode<synchronous>, transform_indices = @transform_6, window_bounds = array<i64: 12, 64>}, {pipeline_mode = #tpu.pipeline_mode<synchronous>, transform_indices = @transform_7, window_bounds = array<i64: 64, 128>}, {pipeline_mode = #tpu.pipeline_mode<synchronous>, transform_indices = @transform_8, window_bounds = array<i64: 128, 896>}, {pipeline_mode = #tpu.pipeline_mode<synchronous>, transform_indices = @transform_9, window_bounds = array<i64: 1, 128>}, {pipeline_mode = #tpu.pipeline_mode<synchronous>, transform_indices = @transform_10, window_bounds = array<i64: 1, 64>}, {pipeline_mode = #tpu.pipeline_mode<synchronous>, transform_indices = @transform_11, window_bounds = array<i64: 1, 12>}, {pipeline_mode = #tpu.pipeline_mode<synchronous>, transform_indices = @transform_12, window_bounds = array<i64: 1, 3>}, {pipeline_mode = #tpu.pipeline_mode<synchronous>, transform_indices = @transform_13, window_bounds = array<i64: 1, 12>}, {pipeline_mode = #tpu.pipeline_mode<synchronous>, transform_indices = @transform_14, window_bounds = array<i64: 1, 64>}, {pipeline_mode = #tpu.pipeline_mode<synchronous>, transform_indices = @transform_15, window_bounds = array<i64: 1, 128>}, {pipeline_mode = #tpu.pipeline_mode<synchronous>, transform_indices = @transform_16, window_bounds = array<i64: 1, 896>}, {transform_indices = @transform_17, window_bounds = array<i64: 256, 896>}]} {
    %c0 = arith.constant 0 : index
    %c0_0 = arith.constant 0 : index
    %0 = vector.load %arg1[%c0, %c0_0] : memref<256x896xf32, #tpu.memory_space<vmem>>, vector<256x896xf32>
    %1 = arith.truncf %0 : vector<256x896xf32> to vector<256x896xbf16>
    %c0_1 = arith.constant 0 : index
    %c0_2 = arith.constant 0 : index
    %2 = vector.load %arg2[%c0_1, %c0_2] : memref<896x128xbf16, #tpu.memory_space<vmem>>, vector<896x128xbf16>
    %cst = arith.constant dense<0.000000e+00> : vector<256x128xf32>
    %3 = tpu.matmul %1, %2, %cst {dimension_numbers = #tpu.dot_dimension_numbers<[1], [0], [0], [1], [0, 0, 1, 1], [], []>} : vector<256x896xbf16>, vector<896x128xbf16>, vector<256x128xf32> -> vector<256x128xf32>
    %c0_3 = arith.constant 0 : index
    %c0_4 = arith.constant 0 : index
    %4 = vector.load %arg10[%c0_3, %c0_4] : memref<1x128xf32, #tpu.memory_space<vmem>>, vector<1x128xf32>
    %5 = vector.broadcast %4 : vector<1x128xf32> to vector<256x128xf32>
    %6 = arith.addf %3, %5 : vector<256x128xf32>
    %cst_5 = arith.constant 0.000000e+00 : f32
    %7 = vector.broadcast %cst_5 : f32 to vector<256x128xf32>
    %8 = arith.maximumf %6, %7 : vector<256x128xf32>
    %9 = arith.truncf %8 : vector<256x128xf32> to vector<256x128xbf16>
    %c0_6 = arith.constant 0 : index
    %c0_7 = arith.constant 0 : index
    %10 = vector.load %arg3[%c0_6, %c0_7] : memref<128x64xbf16, #tpu.memory_space<vmem>>, vector<128x64xbf16>
    %cst_8 = arith.constant dense<0.000000e+00> : vector<256x64xf32>
    %11 = tpu.matmul %9, %10, %cst_8 {dimension_numbers = #tpu.dot_dimension_numbers<[1], [0], [0], [1], [0, 0, 1, 1], [], []>} : vector<256x128xbf16>, vector<128x64xbf16>, vector<256x64xf32> -> vector<256x64xf32>
    %c0_9 = arith.constant 0 : index
    %c0_10 = arith.constant 0 : index
    %12 = vector.load %arg11[%c0_9, %c0_10] : memref<1x64xf32, #tpu.memory_space<vmem>>, vector<1x64xf32>
    %13 = vector.broadcast %12 : vector<1x64xf32> to vector<256x64xf32>
    %14 = arith.addf %11, %13 : vector<256x64xf32>
    %cst_11 = arith.constant 0.000000e+00 : f32
    %15 = vector.broadcast %cst_11 : f32 to vector<256x64xf32>
    %16 = arith.maximumf %14, %15 : vector<256x64xf32>
    %17 = arith.truncf %16 : vector<256x64xf32> to vector<256x64xbf16>
    %c0_12 = arith.constant 0 : index
    %c0_13 = arith.constant 0 : index
    %18 = vector.load %arg4[%c0_12, %c0_13] : memref<64x12xbf16, #tpu.memory_space<vmem>>, vector<64x12xbf16>
    %cst_14 = arith.constant dense<0.000000e+00> : vector<256x12xf32>
    %19 = tpu.matmul %17, %18, %cst_14 {dimension_numbers = #tpu.dot_dimension_numbers<[1], [0], [0], [1], [0, 0, 1, 1], [], []>} : vector<256x64xbf16>, vector<64x12xbf16>, vector<256x12xf32> -> vector<256x12xf32>
    %c0_15 = arith.constant 0 : index
    %c0_16 = arith.constant 0 : index
    %20 = vector.load %arg12[%c0_15, %c0_16] : memref<1x12xf32, #tpu.memory_space<vmem>>, vector<1x12xf32>
    %21 = vector.broadcast %20 : vector<1x12xf32> to vector<256x12xf32>
    %22 = arith.addf %19, %21 : vector<256x12xf32>
    %cst_17 = arith.constant 0.000000e+00 : f32
    %23 = vector.broadcast %cst_17 : f32 to vector<256x12xf32>
    %24 = arith.maximumf %22, %23 : vector<256x12xf32>
    %25 = arith.truncf %24 : vector<256x12xf32> to vector<256x12xbf16>
    %c0_18 = arith.constant 0 : index
    %c0_19 = arith.constant 0 : index
    %26 = vector.load %arg5[%c0_18, %c0_19] : memref<12x3xbf16, #tpu.memory_space<vmem>>, vector<12x3xbf16>
    %cst_20 = arith.constant dense<0.000000e+00> : vector<256x3xf32>
    %27 = tpu.matmul %25, %26, %cst_20 {dimension_numbers = #tpu.dot_dimension_numbers<[1], [0], [0], [1], [0, 0, 1, 1], [], []>} : vector<256x12xbf16>, vector<12x3xbf16>, vector<256x3xf32> -> vector<256x3xf32>
    %c0_21 = arith.constant 0 : index
    %c0_22 = arith.constant 0 : index
    %28 = vector.load %arg13[%c0_21, %c0_22] : memref<1x3xf32, #tpu.memory_space<vmem>>, vector<1x3xf32>
    %29 = vector.broadcast %28 : vector<1x3xf32> to vector<256x3xf32>
    %30 = arith.addf %27, %29 : vector<256x3xf32>
    %31 = arith.truncf %30 : vector<256x3xf32> to vector<256x3xbf16>
    %c0_23 = arith.constant 0 : index
    %c0_24 = arith.constant 0 : index
    %32 = vector.load %arg6[%c0_23, %c0_24] : memref<3x12xbf16, #tpu.memory_space<vmem>>, vector<3x12xbf16>
    %cst_25 = arith.constant dense<0.000000e+00> : vector<256x12xf32>
    %33 = tpu.matmul %31, %32, %cst_25 {dimension_numbers = #tpu.dot_dimension_numbers<[1], [0], [0], [1], [0, 0, 1, 1], [], []>} : vector<256x3xbf16>, vector<3x12xbf16>, vector<256x12xf32> -> vector<256x12xf32>
    %c0_26 = arith.constant 0 : index
    %c0_27 = arith.constant 0 : index
    %34 = vector.load %arg14[%c0_26, %c0_27] : memref<1x12xf32, #tpu.memory_space<vmem>>, vector<1x12xf32>
    %35 = vector.broadcast %34 : vector<1x12xf32> to vector<256x12xf32>
    %36 = arith.addf %33, %35 : vector<256x12xf32>
    %cst_28 = arith.constant 0.000000e+00 : f32
    %37 = vector.broadcast %cst_28 : f32 to vector<256x12xf32>
    %38 = arith.maximumf %36, %37 : vector<256x12xf32>
    %39 = arith.truncf %38 : vector<256x12xf32> to vector<256x12xbf16>
    %c0_29 = arith.constant 0 : index
    %c0_30 = arith.constant 0 : index
    %40 = vector.load %arg7[%c0_29, %c0_30] : memref<12x64xbf16, #tpu.memory_space<vmem>>, vector<12x64xbf16>
    %cst_31 = arith.constant dense<0.000000e+00> : vector<256x64xf32>
    %41 = tpu.matmul %39, %40, %cst_31 {dimension_numbers = #tpu.dot_dimension_numbers<[1], [0], [0], [1], [0, 0, 1, 1], [], []>} : vector<256x12xbf16>, vector<12x64xbf16>, vector<256x64xf32> -> vector<256x64xf32>
    %c0_32 = arith.constant 0 : index
    %c0_33 = arith.constant 0 : index
    %42 = vector.load %arg15[%c0_32, %c0_33] : memref<1x64xf32, #tpu.memory_space<vmem>>, vector<1x64xf32>
    %43 = vector.broadcast %42 : vector<1x64xf32> to vector<256x64xf32>
    %44 = arith.addf %41, %43 : vector<256x64xf32>
    %cst_34 = arith.constant 0.000000e+00 : f32
    %45 = vector.broadcast %cst_34 : f32 to vector<256x64xf32>
    %46 = arith.maximumf %44, %45 : vector<256x64xf32>
    %47 = arith.truncf %46 : vector<256x64xf32> to vector<256x64xbf16>
    %c0_35 = arith.constant 0 : index
    %c0_36 = arith.constant 0 : index
    %48 = vector.load %arg8[%c0_35, %c0_36] : memref<64x128xbf16, #tpu.memory_space<vmem>>, vector<64x128xbf16>
    %cst_37 = arith.constant dense<0.000000e+00> : vector<256x128xf32>
    %49 = tpu.matmul %47, %48, %cst_37 {dimension_numbers = #tpu.dot_dimension_numbers<[1], [0], [0], [1], [0, 0, 1, 1], [], []>} : vector<256x64xbf16>, vector<64x128xbf16>, vector<256x128xf32> -> vector<256x128xf32>
    %c0_38 = arith.constant 0 : index
    %c0_39 = arith.constant 0 : index
    %50 = vector.load %arg16[%c0_38, %c0_39] : memref<1x128xf32, #tpu.memory_space<vmem>>, vector<1x128xf32>
    %51 = vector.broadcast %50 : vector<1x128xf32> to vector<256x128xf32>
    %52 = arith.addf %49, %51 : vector<256x128xf32>
    %cst_40 = arith.constant 0.000000e+00 : f32
    %53 = vector.broadcast %cst_40 : f32 to vector<256x128xf32>
    %54 = arith.maximumf %52, %53 : vector<256x128xf32>
    %55 = arith.truncf %54 : vector<256x128xf32> to vector<256x128xbf16>
    %c0_41 = arith.constant 0 : index
    %c0_42 = arith.constant 0 : index
    %56 = vector.load %arg9[%c0_41, %c0_42] : memref<128x896xbf16, #tpu.memory_space<vmem>>, vector<128x896xbf16>
    %cst_43 = arith.constant dense<0.000000e+00> : vector<256x896xf32>
    %57 = tpu.matmul %55, %56, %cst_43 {dimension_numbers = #tpu.dot_dimension_numbers<[1], [0], [0], [1], [0, 0, 1, 1], [], []>} : vector<256x128xbf16>, vector<128x896xbf16>, vector<256x896xf32> -> vector<256x896xf32>
    %c0_44 = arith.constant 0 : index
    %c0_45 = arith.constant 0 : index
    %58 = vector.load %arg17[%c0_44, %c0_45] : memref<1x896xf32, #tpu.memory_space<vmem>>, vector<1x896xf32>
    %59 = vector.broadcast %58 : vector<1x896xf32> to vector<256x896xf32>
    %60 = arith.addf %57, %59 : vector<256x896xf32>
    %61 = arith.negf %60 : vector<256x896xf32>
    %62 = math.exp %61 : vector<256x896xf32>
    %cst_46 = arith.constant 1.000000e+00 : f32
    %63 = vector.broadcast %cst_46 : f32 to vector<256x896xf32>
    %64 = arith.addf %63, %62 : vector<256x896xf32>
    %65 = arith.divf %63, %64 : vector<256x896xf32>
    %c0_47 = arith.constant 0 : index
    %c0_48 = arith.constant 0 : index
    %66 = vector.load %arg18[%c0_47, %c0_48] : memref<256x896xf32, #tpu.memory_space<vmem>>, vector<256x896xf32>
    tpu.vector_store %arg18[%c0_47, %c0_48], %65 {strides = array<i32>} : memref<256x896xf32, #tpu.memory_space<vmem>>, vector<256x896xf32>,
    return
  }
  func.func @transform_0(%arg0: i32) -> (i32, i32) {
    %c0_i32 = arith.constant 0 : i32
    %c0_i32_0 = arith.constant 0 : i32
    return %arg0, %c0_i32 : i32, i32
  }
  func.func @transform_1(%arg0: i32) -> (i32, i32) {
    %c0_i32 = arith.constant 0 : i32
    %c0_i32_0 = arith.constant 0 : i32
    %c0_i32_1 = arith.constant 0 : i32
    return %c0_i32, %c0_i32_0 : i32, i32
  }
  func.func @transform_2(%arg0: i32) -> (i32, i32) {
    %c0_i32 = arith.constant 0 : i32
    %c0_i32_0 = arith.constant 0 : i32
    %c0_i32_1 = arith.constant 0 : i32
    return %c0_i32, %c0_i32_0 : i32, i32
  }
  func.func @transform_3(%arg0: i32) -> (i32, i32) {
    %c0_i32 = arith.constant 0 : i32
    %c0_i32_0 = arith.constant 0 : i32
    %c0_i32_1 = arith.constant 0 : i32
    return %c0_i32, %c0_i32_0 : i32, i32
  }
  func.func @transform_4(%arg0: i32) -> (i32, i32) {
    %c0_i32 = arith.constant 0 : i32
    %c0_i32_0 = arith.constant 0 : i32
    %c0_i32_1 = arith.constant 0 : i32
    return %c0_i32, %c0_i32_0 : i32, i32
  }
  func.func @transform_5(%arg0: i32) -> (i32, i32) {
    %c0_i32 = arith.constant 0 : i32
    %c0_i32_0 = arith.constant 0 : i32
    %c0_i32_1 = arith.constant 0 : i32
    return %c0_i32, %c0_i32_0 : i32, i32
  }
  func.func @transform_6(%arg0: i32) -> (i32, i32) {
    %c0_i32 = arith.constant 0 : i32
    %c0_i32_0 = arith.constant 0 : i32
    %c0_i32_1 = arith.constant 0 : i32
    return %c0_i32, %c0_i32_0 : i32, i32
  }
  func.func @transform_7(%arg0: i32) -> (i32, i32) {
    %c0_i32 = arith.constant 0 : i32
    %c0_i32_0 = arith.constant 0 : i32
    %c0_i32_1 = arith.constant 0 : i32
    return %c0_i32, %c0_i32_0 : i32, i32
  }
  func.func @transform_8(%arg0: i32) -> (i32, i32) {
    %c0_i32 = arith.constant 0 : i32
    %c0_i32_0 = arith.constant 0 : i32
    %c0_i32_1 = arith.constant 0 : i32
    return %c0_i32, %c0_i32_0 : i32, i32
  }
  func.func @transform_9(%arg0: i32) -> (i32, i32) {
    %c0_i32 = arith.constant 0 : i32
    %c0_i32_0 = arith.constant 0 : i32
    %c0_i32_1 = arith.constant 0 : i32
    return %c0_i32, %c0_i32_0 : i32, i32
  }
  func.func @transform_10(%arg0: i32) -> (i32, i32) {
    %c0_i32 = arith.constant 0 : i32
    %c0_i32_0 = arith.constant 0 : i32
    %c0_i32_1 = arith.constant 0 : i32
    return %c0_i32, %c0_i32_0 : i32, i32
  }
  func.func @transform_11(%arg0: i32) -> (i32, i32) {
    %c0_i32 = arith.constant 0 : i32
    %c0_i32_0 = arith.constant 0 : i32
    %c0_i32_1 = arith.constant 0 : i32
    return %c0_i32, %c0_i32_0 : i32, i32
  }
  func.func @transform_12(%arg0: i32) -> (i32, i32) {
    %c0_i32 = arith.constant 0 : i32
    %c0_i32_0 = arith.constant 0 : i32
    %c0_i32_1 = arith.constant 0 : i32
    return %c0_i32, %c0_i32_0 : i32, i32
  }
  func.func @transform_13(%arg0: i32) -> (i32, i32) {
    %c0_i32 = arith.constant 0 : i32
    %c0_i32_0 = arith.constant 0 : i32
    %c0_i32_1 = arith.constant 0 : i32
    return %c0_i32, %c0_i32_0 : i32, i32
  }
  func.func @transform_14(%arg0: i32) -> (i32, i32) {
    %c0_i32 = arith.constant 0 : i32
    %c0_i32_0 = arith.constant 0 : i32
    %c0_i32_1 = arith.constant 0 : i32
    return %c0_i32, %c0_i32_0 : i32, i32
  }
  func.func @transform_15(%arg0: i32) -> (i32, i32) {
    %c0_i32 = arith.constant 0 : i32
    %c0_i32_0 = arith.constant 0 : i32
    %c0_i32_1 = arith.constant 0 : i32
    return %c0_i32, %c0_i32_0 : i32, i32
  }
  func.func @transform_16(%arg0: i32) -> (i32, i32) {
    %c0_i32 = arith.constant 0 : i32
    %c0_i32_0 = arith.constant 0 : i32
    %c0_i32_1 = arith.constant 0 : i32
    return %c0_i32, %c0_i32_0 : i32, i32
  }
  func.func @transform_17(%arg0: i32) -> (i32, i32) {
    %c0_i32 = arith.constant 0 : i32
    %c0_i32_0 = arith.constant 0 : i32
    return %arg0, %c0_i32 : i32, i32
  }
}

</mosaic_0001>

<bundles_post_ra>
// kernel: autoencoder_forward.1
= control target key start
LH: loop header
LB: loop body
LE: loop exit
PB: predicated region body
PF: predicated region fallthrough
CT: control target
= control target key end

     0   :  { %s8901_s24 = smov 0   ;;  %s11276_s0 = inlined_call_operand.vmem [shape: f32[512,896], index: 0, kind: input, shape index: {}]   ;;  %s11277_s1 = inlined_call_operand.vmem [shape: bf16[896,128], index: 1, kind: input, shape index: {}]   ;;  %s11278_s2 = inlined_call_operand.vmem [shape: bf16[128,64], index: 2, kind: input, shape index: {}]   ;;  %s11279_s3 = inlined_call_operand.vmem [shape: bf16[64,12], index: 3, kind: input, shape index: {}]   ;;  %s11280_s4 = inlined_call_operand.vmem [shape: bf16[12,3], index: 4, kind: input, shape index: {}]   ;;  %s11281_s5 = inlined_call_operand.vmem [shape: bf16[3,12], index: 5, kind: input, shape index: {}]   ;;  %s11282_s6 = inlined_call_operand.vmem [shape: bf16[12,64], index: 6, kind: input, shape index: {}]   ;;  %s11283_s7 = inlined_call_operand.vmem [shape: bf16[64,128], index: 7, kind: input, shape index: {}]   ;;  %s11284_s8 = inlined_call_operand.vmem [shape: bf16[128,896], index: 8, kind: input, shape index: {}]   ;;  %s11285_s9 = inlined_call_operand.vmem [shape: f32[1,128], index: 9, kind: input, shape index: {}]   ;;  %s11286_s10 = inlined_call_operand.vmem [shape: f32[1,64], index: 10, kind: input, shape index: {}]   ;;  %s11287_s11 = inlined_call_operand.vmem [shape: f32[1,12], index: 11, kind: input, shape index: {}]   ;;  %s11288_s12 = inlined_call_operand.vmem [shape: f32[1,3], index: 12, kind: input, shape index: {}]   ;;  %s11289_s13 = inlined_call_operand.vmem [shape: f32[1,12], index: 13, kind: input, shape index: {}]   ;;  %s11290_s14 = inlined_call_operand.vmem [shape: f32[1,64], index: 14, kind: input, shape index: {}]   ;;  %s11291_s15 = inlined_call_operand.vmem [shape: f32[1,128], index: 15, kind: input, shape index: {}]   ;;  %s11292_s16 = inlined_call_operand.vmem [shape: f32[1,896], index: 16, kind: input, shape index: {}]   ;;  %s11293_s17 = inlined_call_operand.vmem [shape: f32[512,896], index: 17, kind: output, shape index: {}]  }
   0x1   :  { %11297 = sst [smem:[#allocation29_spill]] %s11276_s0 }
   0x2   :  { %11298 = sst [smem:[#allocation30_spill]] %s11277_s1 }
   0x3 LB: > { %s6460_s25 = sadd.s32 4294967295, %s8807_s24   ;;  %p6464_p0 = scmp.ge.s32.totalorder %s8807_s24, 1  ;;  %s8807_s24 = sphi %s8901_s24, %s27_s24  }
   0x4   : > { %p489_p1 = scmp.lt.s32.totalorder %s8807_s24, 3 }
   0x6   : > { %p490_p2 = pnand %p6464_p0, %p489_p1 }
   0x8   : > { %493 = sbr.rel (%p490_p2) target bundleno = 2433 (0x981), region = 88 }
   0xf   : > { %s11299_s28 = sld [smem:[#allocation30_spill]]  ;;  %s6465_s30 = sshll.u32 %s6460_s25, 5  ;;  %vm2681_vm0 = vcmask 1045504   ;;  %vm2360_vm1 = vcmask 523264   ;;  %vm2919_vm2 = vcmask 1040384   ;;  %vm2920_vm3 = vcmask 1041408  }
  0x10   : > { %p544_p3 = scmp.lt.s32.totalorder %s6465_s30, 63  ;;  %s11300_s27 = sld [smem:[#allocation29_spill]]  ;;  %vm2632_vm4 = vcmask 97280   ;;  %vm2870_vm5 = vcmask 23552  }
  0x12   : > { %s11386_s30 = smov (!%p544_p3, %s6465_s30), 63 }
  0x13   : > { %s7739_s29 = smul.u32 56, %s11386_s30 }
  0x15   : > { %v7750_v0 = vld [vmem:[%s11299_s28 + $0x40] sm:$0xff]   ;;  %v7754_v4 = vld [vmem:[%s11299_s28 + $0x48] sm:$0xff]   ;;  %v7758_v8 = vld [vmem:[%s11299_s28 + $0x50] sm:$0xff]   ;;  %s10222_s25 = scalar_lea.vmem %s11293_s17, %s7739_s29 }
  0x16   : > { %v7751_v1 = vld [vmem:[%s11299_s28] sm:$0xff]   ;;  %6912 = vmatprep.subr.bf16.mxu0 %v7750_v0  ;;  %v7755_v5 = vld [vmem:[%s11299_s28 + $0x8] sm:$0xff]   ;;  %v7759_v9 = vld [vmem:[%s11299_s28 + $0x10] sm:$0xff]   ;;  %s9006_s0 = scalar_lea.vmem %s11300_s27, %s7739_s29 }
  0x17   : > { %v7752_v2 = vld [vmem:[%s11299_s28 + $0xc0] sm:$0xff]   ;;  %6913 = vmatpush3.bf16.msra.mxu0 %v7751_v1  ;;  %v7756_v6 = vld [vmem:[%s11299_s28 + $0xc8] sm:$0xff]   ;;  %v7760_v10 = vld [vmem:[%s11299_s28 + $0xd0] sm:$0xff]  }
  0x18   : > { %v7753_v3 = vld [vmem:[%s11299_s28 + $0x80] sm:$0xff]   ;;  %7024 = vmatprep.subr.bf16.mxu1 %v7752_v2  ;;  %6914 = vmatprep.subr.bf16.mxu0 %v7754_v4  ;;  %v7757_v7 = vld [vmem:[%s11299_s28 + $0x88] sm:$0xff]   ;;  %v7761_v11 = vld [vmem:[%s11299_s28 + $0x90] sm:$0xff]  }
  0x19   : > { %7025 = vmatpush3.bf16.msra.mxu1 %v7753_v3  ;;  %v7762_v12 = vld [vmem:[%s11299_s28 + $0x58] sm:$0xff]   ;;  %v7766_v16 = vld [vmem:[%s11299_s28 + $0x60] sm:$0xff]   ;;  %v7770_v20 = vld [vmem:[%s11299_s28 + $0x68] sm:$0xff]  }
  0x1a   : > { %7026 = vmatprep.subr.bf16.mxu1 %v7756_v6  ;;  %v7763_v13 = vld [vmem:[%s11299_s28 + $0x18] sm:$0xff]   ;;  %v7767_v17 = vld [vmem:[%s11299_s28 + $0x20] sm:$0xff]   ;;  %v7771_v21 = vld [vmem:[%s11299_s28 + $0x28] sm:$0xff]  }
  0x1b   : > { %6915 = vmatpush3.bf16.msra.mxu0 %v7755_v5  ;;  %v7764_v14 = vld [vmem:[%s11299_s28 + $0xd8] sm:$0xff]   ;;  %v7768_v18 = vld [vmem:[%s11299_s28 + $0xe0] sm:$0xff]   ;;  %v7772_v22 = vld [vmem:[%s11299_s28 + $0xe8] sm:$0xff]  }
  0x1c   : > { %6916 = vmatprep.subr.bf16.mxu0 %v7758_v8  ;;  %v7765_v15 = vld [vmem:[%s11299_s28 + $0x98] sm:$0xff]   ;;  %v7769_v19 = vld [vmem:[%s11299_s28 + $0xa0] sm:$0xff]   ;;  %v7773_v23 = vld [vmem:[%s11299_s28 + $0xa8] sm:$0xff]  }
  0x1d   : > { %7027 = vmatpush3.bf16.msra.mxu1 %v7757_v7  ;;  %v7774_v24 = vld [vmem:[%s11299_s28 + $0x70] sm:$0xff]   ;;  %v7778_v28 = vld [vmem:[%s11299_s28 + $0x78] sm:$0xff]   ;;  %v559_v31 = vld [vmem:[%s9006_s0 + $0x8] sm:$0xff] }
  0x1e   : > { %7028 = vmatprep.subr.bf16.mxu1 %v7760_v10  ;;  %v7775_v25 = vld [vmem:[%s11299_s28 + $0x30] sm:$0xff]   ;;  %v7779_v29 = vld [vmem:[%s11299_s28 + $0x38] sm:$0xff]   ;;  %v566_v32 = vld [vmem:[%s9006_s0 + $0x40] sm:$0xff] }
  0x1f   : > { %6917 = vmatpush3.bf16.msra.mxu0 %v7759_v9  ;;  %v7776_v26 = vld [vmem:[%s11299_s28 + $0xf0] sm:$0xff]   ;;  %v7780_v30 = vld [vmem:[%s11299_s28 + $0xf8] sm:$0xff]   ;;  %v783_v33 = vpack.c.bf16 %v566_v32, %v559_v31  ;;  %v558_v35 = vld [vmem:[%s9006_s0] sm:$0xff] }
  0x20   : > { %6918 = vmatprep.subr.bf16.mxu0 %v7762_v12  ;;  %v7777_v27 = vld [vmem:[%s11299_s28 + $0xb0] sm:$0xff]   ;;  %v7781_v34 = vld [vmem:[%s11299_s28 + $0xb8] sm:$0xff]   ;;  %v7782_v38 = vld [vmem:[%s11299_s28 + $0x140] sm:$0xff]  }
  0x21   : > { %7029 = vmatpush3.bf16.msra.mxu1 %v7761_v11  ;;  %v565_v36 = vld [vmem:[%s9006_s0 + $0x38] sm:$0xff]  ;;  %1381 = vmatprep.mubr.bf16.mxu0 %v783_v33  ;;  %v568_v40 = vld [vmem:[%s9006_s0 + $0x50] sm:$0xff]  ;;  %v7783_v42 = vld [vmem:[%s11299_s28 + $0x100] sm:$0xff]  }
  0x22   : > { %7030 = vmatprep.subr.bf16.mxu1 %v7764_v14  ;;  %v782_v37 = vpack.c.bf16 %v565_v36, %v558_v35  ;;  %v561_v39 = vld [vmem:[%s9006_s0 + $0x18] sm:$0xff]  ;;  %v560_v43 = vld [vmem:[%s9006_s0 + $0x10] sm:$0xff]  ;;  %v567_v44 = vld [vmem:[%s9006_s0 + $0x48] sm:$0xff] }
  0x23   : > { %6919 = vmatpush3.bf16.msra.mxu0 %v7763_v13  ;;  %v785_v41 = vpack.c.bf16 %v568_v40, %v561_v39  ;;  %v573_v45 = vld [vmem:[%s9006_s0 + $0x78] sm:$0xff]  ;;  %v784_v46 = vpack.c.bf16 %v567_v44, %v560_v43  ;;  %v580_v47 = vld [vmem:[%s9006_s0 + $0xb0] sm:$0xff]  ;;  %v579_v49 = vld [vmem:[%s9006_s0 + $0xa8] sm:$0xff] }
  0x24   : > { %6920 = vmatprep.subr.bf16.mxu0 %v7766_v16  ;;  %v572_v48 = vld [vmem:[%s9006_s0 + $0x70] sm:$0xff]  ;;  %v790_v50 = vpack.c.bf16 %v580_v47, %v573_v45  ;;  %v575_v51 = vld [vmem:[%s9006_s0 + $0x88] sm:$0xff]  ;;  %v582_v52 = vld [vmem:[%s9006_s0 + $0xc0] sm:$0xff] }
  0x25   : > { %7031 = vmatpush3.bf16.msra.mxu1 %v7765_v15  ;;  %1542 = vmatprep.mubr.bf16.mxu1 %v785_v41  ;;  %v574_v53 = vld [vmem:[%s9006_s0 + $0x80] sm:$0xff]  ;;  %v792_v54 = vpack.c.bf16 %v582_v52, %v575_v51  ;;  %v581_v55 = vld [vmem:[%s9006_s0 + $0xb8] sm:$0xff]  ;;  %v789_v56 = vpack.c.bf16 %v579_v49, %v572_v48  ;;  %v587_v58 = vld [vmem:[%s9006_s0 + $0xe8] sm:$0xff] }
  0x26   : > { %7032 = vmatprep.subr.bf16.mxu1 %v7768_v18  ;;  %v7784_v57 = vld [vmem:[%s11299_s28 + $0x180] sm:$0xff]   ;;  %v7785_v61 = vld [vmem:[%s11299_s28 + $0x148] sm:$0xff]   ;;  %v589_v62 = vld [vmem:[%s9006_s0 + $0xf8] sm:$0xff]  ;;  %v791_v63 = vpack.c.bf16 %v581_v55, %v574_v53 }
  0x27   : > { %6921 = vmatpush3.bf16.msra.mxu0 %v7767_v17  ;;  %v594_v59 = vld [vmem:[%s9006_s0 + $0x120] sm:$0xff]  ;;  %v596_v0 = vld [vmem:[%s9006_s0 + $0x130] sm:$0xff]  ;;  %v7786_v2 = vld [vmem:[%s11299_s28 + $0x108] sm:$0xff]  }
  0x28   : > { %6922 = vmatprep.subr.bf16.mxu0 %v7770_v20  ;;  %v797_v60 = vpack.c.bf16 %v594_v59, %v587_v58  ;;  %v799_v1 = vpack.c.bf16 %v596_v0, %v589_v62  ;;  %v586_v3 = vld [vmem:[%s9006_s0 + $0xe0] sm:$0xff]  ;;  %v593_v4 = vld [vmem:[%s9006_s0 + $0x118] sm:$0xff]  ;;  %v608_v6 = vld [vmem:[%s9006_s0 + $0x190] sm:$0xff] }
  0x29   : > { %7033 = vmatpush3.bf16.msra.mxu1 %v7769_v19  ;;  %v601_v5 = vld [vmem:[%s9006_s0 + $0x158] sm:$0xff]  ;;  %v588_v7 = vld [vmem:[%s9006_s0 + $0xf0] sm:$0xff]  ;;  %v796_v8 = vpack.c.bf16 %v593_v4, %v586_v3  ;;  %v595_v9 = vld [vmem:[%s9006_s0 + $0x128] sm:$0xff] }
  0x2a   : > { %7034 = vmatprep.subr.bf16.mxu1 %v7772_v22  ;;  %v7787_v10 = vld [vmem:[%s11299_s28 + $0x188] sm:$0xff]   ;;  %v804_v11 = vpack.c.bf16 %v608_v6, %v601_v5  ;;  %v610_v13 = vld [vmem:[%s9006_s0 + $0x1a0] sm:$0xff]  ;;  %v7788_v14 = vld [vmem:[%s11299_s28 + $0x150] sm:$0xff]   ;;  %v798_v15 = vpack.c.bf16 %v595_v9, %v588_v7 }
  0x2b   : > { %6923 = vmatpush3.bf16.msra.mxu0 %v7771_v21  ;;  %v603_v12 = vld [vmem:[%s9006_s0 + $0x168] sm:$0xff]  ;;  %v7789_v17 = vld [vmem:[%s11299_s28 + $0x110] sm:$0xff]   ;;  %v622_v21 = vld [vmem:[%s9006_s0 + $0x200] sm:$0xff] }
  0x2c   : > { %6924 = vmatprep.subr.bf16.mxu0 %v7774_v24  ;;  %v806_v16 = vpack.c.bf16 %v610_v13, %v603_v12  ;;  %v600_v18 = vld [vmem:[%s9006_s0 + $0x150] sm:$0xff]  ;;  %v607_v19 = vld [vmem:[%s9006_s0 + $0x188] sm:$0xff]  ;;  %v602_v22 = vld [vmem:[%s9006_s0 + $0x160] sm:$0xff] }
  0x2d   : > { %7035 = vmatpush3.bf16.msra.mxu1 %v7773_v23  ;;  %v615_v20 = vld [vmem:[%s9006_s0 + $0x1c8] sm:$0xff]  ;;  %v609_v23 = vld [vmem:[%s9006_s0 + $0x198] sm:$0xff]  ;;  %v803_v24 = vpack.c.bf16 %v607_v19, %v600_v18  ;;  %v614_v33 = vld [vmem:[%s9006_s0 + $0x1c0] sm:$0xff] }
  0x2e   : > { %7036 = vmatprep.subr.bf16.mxu1 %v7776_v26  ;;  %v811_v26 = vpack.c.bf16 %v622_v21, %v615_v20  ;;  %v7792_v32 = vld [vmem:[%s11299_s28 + $0x118] sm:$0xff]   ;;  %v636_v36 = vld [vmem:[%s9006_s0 + $0x270] sm:$0xff]  ;;  %v623_v39 = vld [vmem:[%s9006_s0 + $0x208] sm:$0xff] }
  0x2f   : > { %6925 = vmatpush3.bf16.msra.mxu0 %v7775_v25  ;;  %v7790_v25 = vld [vmem:[%s11299_s28 + $0x190] sm:$0xff]   ;;  %v629_v35 = vld [vmem:[%s9006_s0 + $0x238] sm:$0xff]  ;;  %v631_v41 = vld [vmem:[%s9006_s0 + $0x248] sm:$0xff] }
  0x30   : > { %6926 = vmatprep.subr.bf16.mxu0 %v7778_v28  ;;  %v624_v28 = vld [vmem:[%s9006_s0 + $0x210] sm:$0xff]  ;;  %v818_v40 = vpack.c.bf16 %v636_v36, %v629_v35  ;;  %v7793_v43 = vld [vmem:[%s11299_s28 + $0x198] sm:$0xff]   ;;  %v7794_v45 = vld [vmem:[%s11299_s28 + $0x160] sm:$0xff]  }
  0x31   : > { %7037 = vmatpush3.bf16.msra.mxu1 %v7777_v27  ;;  %v617_v27 = vld [vmem:[%s9006_s0 + $0x1d8] sm:$0xff]  ;;  %v628_v47 = vld [vmem:[%s9006_s0 + $0x230] sm:$0xff]  ;;  %v635_v48 = vld [vmem:[%s9006_s0 + $0x268] sm:$0xff] }
  0x32   : > { %7038 = vmatprep.subr.bf16.mxu1 %v7780_v30  ;;  %v7791_v30 = vld [vmem:[%s11299_s28 + $0x158] sm:$0xff]   ;;  %v813_v31 = vpack.c.bf16 %v624_v28, %v617_v27  ;;  %v7795_v49 = vld [vmem:[%s11299_s28 + $0x120] sm:$0xff]   ;;  %v817_v53 = vpack.c.bf16 %v635_v48, %v628_v47  ;;  %v7798_v0 = vld [vmem:[%s11299_s28 + $0x128] sm:$0xff]  }
  0x33   : > { %6927 = vmatpush3.bf16.msra.mxu0 %v7779_v29  ;;  %v805_v29 = vpack.c.bf16 %v609_v23, %v602_v22  ;;  %v650_v51 = vld [vmem:[%s9006_s0 + $0x2e0] sm:$0xff]  ;;  %v645_v55 = vld [vmem:[%s9006_s0 + $0x2b8] sm:$0xff]  ;;  %v644_v3 = vld [vmem:[%s9006_s0 + $0x2b0] sm:$0xff] }
  0x34   : > { %7136 = vmatprep.subr.bf16.mxu0 %v7782_v38  ;;  %v630_v52 = vld [vmem:[%s9006_s0 + $0x240] sm:$0xff]  ;;  %v651_v5 = vld [vmem:[%s9006_s0 + $0x2e8] sm:$0xff]  ;;  %v665_v20 = vld [vmem:[%s9006_s0 + $0x358] sm:$0xff] }
  0x35   : > { %7039 = vmatpush3.bf16.msra.mxu1 %v7781_v34  ;;  %v621_v34 = vld [vmem:[%s9006_s0 + $0x1f8] sm:$0xff]  ;;  %v7796_v58 = vld [vmem:[%s11299_s28 + $0x1a0] sm:$0xff]   ;;  %v659_v6 = vld [vmem:[%s9006_s0 + $0x328] sm:$0xff] }
  0x36   : > { %1382 = vmatmul.mubr.bf16.vlgmr.msra.gmra.mrb[0].mxu0 %v782_v37  ;;  %7411 = vmatprep.subr.bf16.mxu1 %v7784_v57  ;;  %v616_v37 = vld [vmem:[%s9006_s0 + $0x1d0] sm:$0xff]  ;;  %v810_v38 = vpack.c.bf16 %v621_v34, %v614_v33  ;;  %v666_v7 = vld [vmem:[%s9006_s0 + $0x360] sm:$0xff]  ;;  %v7799_v9 = vld [vmem:[%s11299_s28 + $0x1a8] sm:$0xff]  }
  0x37   : > { %7137 = vmatpush3.bf16.msra.mxu0 %v7783_v42  ;;  %1389 = vmatprep.mubr.bf16.mxu0 %v790_v50  ;;  %v638_v42 = vld [vmem:[%s9006_s0 + $0x280] sm:$0xff]  ;;  %v812_v44 = vpack.c.bf16 %v623_v39, %v616_v37  ;;  %v643_v50 = vld [vmem:[%s9006_s0 + $0x2a8] sm:$0xff]  ;;  %v834_v13 = vpack.c.bf16 %v666_v7, %v659_v6  ;;  %v673_v21 = vld [vmem:[%s9006_s0 + $0x398] sm:$0xff] }
  0x38   : > { %1543 = vmatmul.mubr.bf16.vlgmr.msra.gmra.mrb[0].mxu1 %v784_v46  ;;  %7138 = vmatprep.subr.bf16.mxu0 %v7785_v61  ;;  %v820_v46 = vpack.c.bf16 %v638_v42, %v631_v41  ;;  %v642_v61 = vld [vmem:[%s9006_s0 + $0x2a0] sm:$0xff]  ;;  %v663_v12 = vld [vmem:[%s9006_s0 + $0x348] sm:$0xff]  ;;  %v680_v23 = vld [vmem:[%s9006_s0 + $0x3d0] sm:$0xff] }
  0x39   : > { %1550 = vmatprep.mubr.bf16.mxu1 %v792_v54  ;;  %7412 = vmatpush3.bf16.msra.mxu1 %v7784_v57  ;;  %v637_v54 = vld [vmem:[%s9006_s0 + $0x278] sm:$0xff]  ;;  %v652_v57 = vld [vmem:[%s9006_s0 + $0x2f0] sm:$0xff]  ;;  %v658_v19 = vld [vmem:[%s9006_s0 + $0x320] sm:$0xff]  ;;  %v841_v27 = vpack.c.bf16 %v680_v23, %v673_v21 }
  0x3a   : > { %7413 = vmatprep.subr.bf16.mxu1 %v7787_v10  ;;  %v819_v59 = vpack.c.bf16 %v637_v54, %v630_v52  ;;  %v827_v62 = vpack.c.bf16 %v652_v57, %v645_v55  ;;  %v7803_v28 = vld [vmem:[%s11299_s28 + $0x178] sm:$0xff]   ;;  %v672_v34 = vld [vmem:[%s9006_s0 + $0x390] sm:$0xff]  ;;  %v679_v35 = vld [vmem:[%s9006_s0 + $0x3c8] sm:$0xff] }
  0x3b   : > { %7139 = vmatpush3.bf16.msra.mxu0 %v7786_v2  ;;  %v664_v2 = vld [vmem:[%s9006_s0 + $0x350] sm:$0xff]  ;;  %v687_v37 = vld [vmem:[%s9006_s0 + $0x408] sm:$0xff]  ;;  %v7805_v39 = vld [vmem:[%s11299_s28 + $0x1b8] sm:$0xff]  }
  0x3c   : > { %7140 = vmatprep.subr.bf16.mxu0 %v7788_v14  ;;  %v7800_v14 = vld [vmem:[%s11299_s28 + $0x170] sm:$0xff]   ;;  %v686_v47 = vld [vmem:[%s9006_s0 + $0x400] sm:$0xff]  ;;  %v693_v48 = vld [vmem:[%s9006_s0 + $0x438] sm:$0xff] }
  0x3d   : > { %7414 = vmatpush3.bf16.msra.mxu1 %v7787_v10  ;;  %v826_v10 = vpack.c.bf16 %v651_v5, %v644_v3  ;;  %v684_v42 = vld [vmem:[%s9006_s0 + $0x3f0] sm:$0xff]  ;;  %v847_v52 = vpack.c.bf16 %v693_v48, %v686_v47  ;;  %v698_v54 = vld [vmem:[%s9006_s0 + $0x460] sm:$0xff]  ;;  %v705_v55 = vld [vmem:[%s9006_s0 + $0x498] sm:$0xff] }
  0x3e   : > { %1390 = vmatmul.mubr.bf16.gmra.mrb[4].mxu0 %v789_v56  ;;  %7415 = vmatprep.subr.bf16.mxu1 %v7790_v25  ;;  %v825_v56 = vpack.c.bf16 %v650_v51, %v643_v50  ;;  %v701_v50 = vld [vmem:[%s9006_s0 + $0x478] sm:$0xff]  ;;  %v708_v51 = vld [vmem:[%s9006_s0 + $0x4b0] sm:$0xff]  ;;  %v719_v3 = vld [vmem:[%s9006_s0 + $0x508] sm:$0xff] }
  0x3f   : > { %1397 = vmatprep.mubr.bf16.mxu0 %v797_v60  ;;  %7141 = vmatpush3.bf16.msra.mxu0 %v7789_v17  ;;  %v7797_v60 = vld [vmem:[%s11299_s28 + $0x168] sm:$0xff]   ;;  %v678_v17 = vld [vmem:[%s9006_s0 + $0x3c0] sm:$0xff]  ;;  %v720_v57 = vld [vmem:[%s9006_s0 + $0x510] sm:$0xff] }
  0x40   : > { %1551 = vmatmul.mubr.bf16.gmra.mrb[4].mxu1 %v791_v63  ;;  %7142 = vmatprep.subr.bf16.mxu0 %v7791_v30  ;;  %v649_v63 = vld [vmem:[%s9006_s0 + $0x2d8] sm:$0xff]  ;;  %v734_v5 = vld [vmem:[%s9006_s0 + $0x580] sm:$0xff] }
  0x41   : > { %1558 = vmatprep.mubr.bf16.mxu1 %v799_v1  ;;  %7416 = vmatpush3.bf16.msra.mxu1 %v7790_v25  ;;  %v657_v1 = vld [vmem:[%s9006_s0 + $0x318] sm:$0xff]  ;;  %v824_v4 = vpack.c.bf16 %v649_v63, %v642_v61  ;;  %v833_v25 = vpack.c.bf16 %v665_v20, %v658_v19  ;;  %v722_v63 = vld [vmem:[%s9006_s0 + $0x520] sm:$0xff]  ;;  %v735_v19 = vld [vmem:[%s9006_s0 + $0x588] sm:$0xff] }
  0x42   : > { %7417 = vmatprep.subr.bf16.mxu1 %v7793_v43  ;;  %v685_v30 = vld [vmem:[%s9006_s0 + $0x3f8] sm:$0xff]  ;;  %v714_v7 = vld [vmem:[%s9006_s0 + $0x4e0] sm:$0xff] }
  0x43   : > { %7143 = vmatpush3.bf16.msra.mxu0 %v7792_v32  ;;  %v7804_v32 = vld [vmem:[%s11299_s28 + $0x138] sm:$0xff]   ;;  %v750_v23 = vld [vmem:[%s9006_s0 + $0x600] sm:$0xff] }
  0x44   : > { %7144 = vmatprep.subr.bf16.mxu0 %v7794_v45  ;;  %v706_v45 = vld [vmem:[%s9006_s0 + $0x4a0] sm:$0xff] }
  0x45   : > { %7418 = vmatpush3.bf16.msra.mxu1 %v7793_v43  ;;  %v691_v43 = vld [vmem:[%s9006_s0 + $0x428] sm:$0xff]  ;;  %v778_v47 = vld [vmem:[%s9006_s0 + $0x6e0] sm:$0xff] }
  0x46   : > { %1398 = vmatmul.mubr.bf16.gmra.mrb[8].mxu0 %v796_v8  ;;  %7419 = vmatprep.subr.bf16.mxu1 %v7796_v58  ;;  %v832_v8 = vpack.c.bf16 %v664_v2, %v657_v1  ;;  %v712_v2 = vld [vmem:[%s9006_s0 + $0x4d0] sm:$0xff] }
  0x47   : > { %1405 = vmatprep.mubr.bf16.mxu0 %v804_v11  ;;  %7145 = vmatpush3.bf16.msra.mxu0 %v7795_v49  ;;  %v656_v11 = vld [vmem:[%s9006_s0 + $0x310] sm:$0xff]  ;;  %v859_v6 = vpack.c.bf16 %v719_v3, %v712_v2  ;;  %v578_v2 = vld [vmem:[%s9006_s0 + $0xa0] sm:$0xff]  ;;  %v585_v3 = vld [vmem:[%s9006_s0 + $0xd8] sm:$0xff] }
  0x48   : > { %1559 = vmatmul.mubr.bf16.gmra.mrb[8].mxu1 %v798_v15  ;;  %7146 = vmatprep.subr.bf16.mxu0 %v7797_v60  ;;  %v7801_v15 = vld [vmem:[%s11299_s28 + $0x130] sm:$0xff]   ;;  %v831_v18 = vpack.c.bf16 %v663_v12, %v656_v11  ;;  %v707_v60 = vld [vmem:[%s9006_s0 + $0x4a8] sm:$0xff] }
  0x49   : > { %1566 = vmatprep.mubr.bf16.mxu1 %v806_v16  ;;  %7420 = vmatpush3.bf16.msra.mxu1 %v7796_v58  ;;  %v671_v16 = vld [vmem:[%s9006_s0 + $0x388] sm:$0xff]  ;;  %v852_v58 = vpack.c.bf16 %v705_v55, %v698_v54  ;;  %v736_v11 = vld [vmem:[%s9006_s0 + $0x590] sm:$0xff]  ;;  %v570_v55 = vld [vmem:[%s9006_s0 + $0x60] sm:$0xff] }
  0x4a   : > { %7421 = vmatprep.subr.bf16.mxu1 %v7799_v9  ;;  %v839_v22 = vpack.c.bf16 %v678_v17, %v671_v16  ;;  %v741_v16 = vld [vmem:[%s9006_s0 + $0x5b8] sm:$0xff]  ;;  %v748_v17 = vld [vmem:[%s9006_s0 + $0x5f0] sm:$0xff]  ;;  %v563_v54 = vld [vmem:[%s9006_s0 + $0x28] sm:$0xff] }
  0x4b   : > { %7147 = vmatpush3.bf16.msra.mxu0 %v7798_v0  ;;  %v874_v21 = vpack.c.bf16 %v748_v17, %v741_v16  ;;  %v613_v16 = vld [vmem:[%s9006_s0 + $0x1b8] sm:$0xff] }
  0x4c   : > { %7148 = vmatprep.subr.bf16.mxu0 %v7800_v14  ;;  %v733_v14 = vld [vmem:[%s9006_s0 + $0x578] sm:$0xff] }
  0x4d   : > { %7422 = vmatpush3.bf16.msra.mxu1 %v7799_v9 }
  0x4e   : > { %1406 = vmatmul.mubr.bf16.gmra.mrb[12].mxu0 %v803_v24  ;;  %v7802_v24 = vld [vmem:[%s11299_s28 + $0x1b0] sm:$0xff]  }
  0x4f   : > { %1413 = vmatprep.mubr.bf16.mxu0 %v811_v26  ;;  %7149 = vmatpush3.bf16.msra.mxu0 %v7801_v15  ;;  %v670_v26 = vld [vmem:[%s9006_s0 + $0x380] sm:$0xff] }
  0x50   : > { %1567 = vmatmul.mubr.bf16.gmra.mrb[12].mxu1 %v805_v29  ;;  %7423 = vmatprep.subr.bf16.mxu1 %v7802_v24  ;;  %v677_v29 = vld [vmem:[%s9006_s0 + $0x3b8] sm:$0xff] }
  0x51   : > { %1574 = vmatprep.mubr.bf16.mxu1 %v813_v31  ;;  %7424 = vmatpush3.bf16.msra.mxu1 %v7802_v24  ;;  %v692_v31 = vld [vmem:[%s9006_s0 + $0x430] sm:$0xff]  ;;  %v838_v33 = vpack.c.bf16 %v677_v29, %v670_v26  ;;  %v749_v29 = vld [vmem:[%s9006_s0 + $0x5f8] sm:$0xff] }
  0x52   : > { %7150 = vmatprep.subr.bf16.mxu0 %v7803_v28  ;;  %v846_v36 = vpack.c.bf16 %v692_v31, %v685_v30  ;;  %7425 = vmatprep.subr.bf16.mxu1 %v7805_v39  ;;  %v740_v26 = vld [vmem:[%s9006_s0 + $0x5b0] sm:$0xff]  ;;  %v742_v28 = vld [vmem:[%s9006_s0 + $0x5c0] sm:$0xff]  ;;  %v755_v30 = vld [vmem:[%s9006_s0 + $0x628] sm:$0xff] }
  0x53   : > { %7151 = vmatpush3.bf16.msra.mxu0 %v7804_v32  ;;  %v762_v31 = vld [vmem:[%s9006_s0 + $0x660] sm:$0xff] }
  0x55   : > { %7426 = vmatpush3.bf16.msra.mxu1 %v7805_v39 }
  0x56   : > { %1414 = vmatmul.mubr.bf16.gmra.mrb[16].mxu0 %v810_v38  ;;  %v694_v38 = vld [vmem:[%s9006_s0 + $0x440] sm:$0xff] }
  0x57   : > { %1421 = vmatprep.mubr.bf16.mxu0 %v818_v40  ;;  %v840_v40 = vpack.c.bf16 %v679_v35, %v672_v34  ;;  %v848_v41 = vpack.c.bf16 %v694_v38, %v687_v37  ;;  %v757_v34 = vld [vmem:[%s9006_s0 + $0x638] sm:$0xff]  ;;  %v764_v35 = vld [vmem:[%s9006_s0 + $0x670] sm:$0xff]  ;;  %v754_v37 = vld [vmem:[%s9006_s0 + $0x620] sm:$0xff] }
  0x58   : > { %1575 = vmatmul.mubr.bf16.gmra.mrb[16].mxu1 %v812_v44  ;;  %v699_v44 = vld [vmem:[%s9006_s0 + $0x468] sm:$0xff]  ;;  %v761_v38 = vld [vmem:[%s9006_s0 + $0x658] sm:$0xff]  ;;  %v883_v39 = vpack.c.bf16 %v764_v35, %v757_v34  ;;  %v604_v34 = vld [vmem:[%s9006_s0 + $0x170] sm:$0xff] }
  0x59   : > { %1582 = vmatprep.mubr.bf16.mxu1 %v820_v46  ;;  %v845_v46 = vpack.c.bf16 %v691_v43, %v684_v42  ;;  %v853_v49 = vpack.c.bf16 %v706_v45, %v699_v44  ;;  %v756_v42 = vld [vmem:[%s9006_s0 + $0x630] sm:$0xff]  ;;  %v763_v43 = vld [vmem:[%s9006_s0 + $0x668] sm:$0xff]  ;;  %v880_v44 = vpack.c.bf16 %v761_v38, %v754_v37  ;;  %v626_v37 = vld [vmem:[%s9006_s0 + $0x220] sm:$0xff] }
  0x5a   : > { %v882_v48 = vpack.c.bf16 %v763_v43, %v756_v42  ;;  %v611_v35 = vld [vmem:[%s9006_s0 + $0x1a8] sm:$0xff]  ;;  %v676_v42 = vld [vmem:[%s9006_s0 + $0x3b0] sm:$0xff] }
  0x5b   : > { %v807_v38 = vpack.c.bf16 %v611_v35, %v604_v34  ;;  %v683_v43 = vld [vmem:[%s9006_s0 + $0x3e8] sm:$0xff] }
  0x5e   : > { %1422 = vmatmul.mubr.bf16.gmra.mrb[20].mxu0 %v817_v53  ;;  %v855_v53 = vpack.c.bf16 %v708_v51, %v701_v50  ;;  %v768_v50 = vld [vmem:[%s9006_s0 + $0x690] sm:$0xff]  ;;  %v775_v51 = vld [vmem:[%s9006_s0 + $0x6c8] sm:$0xff] }
  0x5f   : > { %1429 = vmatprep.mubr.bf16.mxu0 %v825_v56  ;;  %v713_v56 = vld [vmem:[%s9006_s0 + $0x4d8] sm:$0xff] }
  0x60   : > { %1583 = vmatmul.mubr.bf16.gmra.mrb[20].mxu1 %v819_v59  ;;  %v700_v59 = vld [vmem:[%s9006_s0 + $0x470] sm:$0xff]  ;;  %v860_v61 = vpack.c.bf16 %v720_v57, %v713_v56  ;;  %v887_v56 = vpack.c.bf16 %v775_v51, %v768_v50  ;;  %v787_v57 = vpack.c.bf16 %v570_v55, %v563_v54  ;;  %v690_v51 = vld [vmem:[%s9006_s0 + $0x420] sm:$0xff]  ;;  %v711_v55 = vld [vmem:[%s9006_s0 + $0x4c8] sm:$0xff] }
  0x61   : > { %1590 = vmatprep.mubr.bf16.mxu1 %v827_v62  ;;  %v715_v62 = vld [vmem:[%s9006_s0 + $0x4e8] sm:$0xff]  ;;  %v854_v0 = vpack.c.bf16 %v707_v60, %v700_v59  ;;  %v704_v54 = vld [vmem:[%s9006_s0 + $0x490] sm:$0xff] }
  0x62   : > { %v862_v1 = vpack.c.bf16 %v722_v63, %v715_v62  ;;  %v571_v59 = vld [vmem:[%s9006_s0 + $0x68] sm:$0xff]  ;;  %v569_v62 = vld [vmem:[%s9006_s0 + $0x58] sm:$0xff] }
  0x66   : > { %1430 = vmatmul.mubr.bf16.gmra.mrb[24].mxu0 %v824_v4  ;;  %v727_v4 = vld [vmem:[%s9006_s0 + $0x548] sm:$0xff] }
  0x67   : > { %1437 = vmatprep.mubr.bf16.mxu0 %v832_v8  ;;  %v721_v8 = vld [vmem:[%s9006_s0 + $0x518] sm:$0xff]  ;;  %v867_v9 = vpack.c.bf16 %v734_v5, %v727_v4  ;;  %v592_v4 = vld [vmem:[%s9006_s0 + $0x110] sm:$0xff]  ;;  %v599_v5 = vld [vmem:[%s9006_s0 + $0x148] sm:$0xff] }
  0x68   : > { %1591 = vmatmul.mubr.bf16.gmra.mrb[24].mxu1 %v826_v10  ;;  %v729_v10 = vld [vmem:[%s9006_s0 + $0x558] sm:$0xff]  ;;  %v861_v12 = vpack.c.bf16 %v721_v8, %v714_v7  ;;  %v795_v8 = vpack.c.bf16 %v585_v3, %v578_v2  ;;  %v732_v2 = vld [vmem:[%s9006_s0 + $0x570] sm:$0xff]  ;;  %v739_v3 = vld [vmem:[%s9006_s0 + $0x5a8] sm:$0xff] }
  0x69   : > { %1598 = vmatprep.mubr.bf16.mxu1 %v834_v13  ;;  %v726_v13 = vld [vmem:[%s9006_s0 + $0x540] sm:$0xff]  ;;  %v869_v15 = vpack.c.bf16 %v736_v11, %v729_v10  ;;  %v576_v10 = vld [vmem:[%s9006_s0 + $0x90] sm:$0xff]  ;;  %v583_v11 = vld [vmem:[%s9006_s0 + $0xc8] sm:$0xff] }
  0x6a   : > { %v866_v20 = vpack.c.bf16 %v733_v14, %v726_v13  ;;  %v598_v13 = vld [vmem:[%s9006_s0 + $0x140] sm:$0xff]  ;;  %v793_v14 = vpack.c.bf16 %v583_v11, %v576_v10 }
  0x6b   : > { %v7806_v10 = vld [vmem:[%s11278_s2] sm:$0xff]  }
  0x6c   : > { %7459 = vmatprep.subr.bf16.mxu1 %v7806_v10 }
  0x6e   : > { %1438 = vmatmul.mubr.bf16.gmra.mrb[28].mxu0 %v831_v18  ;;  %v728_v18 = vld [vmem:[%s9006_s0 + $0x550] sm:$0xff] }
  0x6f   : > { %1445 = vmatprep.mubr.bf16.mxu0 %v839_v22  ;;  %v743_v22 = vld [vmem:[%s9006_s0 + $0x5c8] sm:$0xff]  ;;  %v868_v24 = vpack.c.bf16 %v735_v19, %v728_v18  ;;  %v620_v18 = vld [vmem:[%s9006_s0 + $0x1f0] sm:$0xff] }
  0x70   : > { %1599 = vmatmul.mubr.bf16.gmra.mrb[28].mxu1 %v833_v25  ;;  %v876_v25 = vpack.c.bf16 %v750_v23, %v743_v22  ;;  %v627_v19 = vld [vmem:[%s9006_s0 + $0x228] sm:$0xff]  ;;  %v590_v22 = vld [vmem:[%s9006_s0 + $0x100] sm:$0xff]  ;;  %v597_v23 = vld [vmem:[%s9006_s0 + $0x138] sm:$0xff] }
  0x71   : > { %1606 = vmatprep.mubr.bf16.mxu1 %v841_v27  ;;  %v747_v27 = vld [vmem:[%s9006_s0 + $0x5e8] sm:$0xff] }
  0x72   : > { %v873_v32 = vpack.c.bf16 %v747_v27, %v740_v26  ;;  %v800_v26 = vpack.c.bf16 %v597_v23, %v590_v22  ;;  %v634_v27 = vld [vmem:[%s9006_s0 + $0x260] sm:$0xff]  ;;  %v7807_v23 = vld [vmem:[%s11278_s2 + $0x8] sm:$0xff]  }
  0x73   : > { %v682_v22 = vld [vmem:[%s9006_s0 + $0x3e0] sm:$0xff] }
  0x76   : > { %1446 = vmatmul.mubr.bf16.gmra.mrb[32].mxu0 %v838_v33  ;;  %v881_v33 = vpack.c.bf16 %v762_v31, %v755_v30  ;;  %v648_v30 = vld [vmem:[%s9006_s0 + $0x2d0] sm:$0xff]  ;;  %v655_v31 = vld [vmem:[%s9006_s0 + $0x308] sm:$0xff] }
  0x77   : > { %1453 = vmatprep.mubr.bf16.mxu0 %v846_v36  ;;  %v875_v36 = vpack.c.bf16 %v749_v29, %v742_v28  ;;  %v641_v28 = vld [vmem:[%s9006_s0 + $0x298] sm:$0xff] }
  0x78   : > { %1607 = vmatmul.mubr.bf16.gmra.mrb[32].mxu1 %v840_v40  ;;  %v769_v40 = vld [vmem:[%s9006_s0 + $0x698] sm:$0xff] }
  0x79   : > { %1614 = vmatprep.mubr.bf16.mxu1 %v848_v41  ;;  %v776_v41 = vld [vmem:[%s9006_s0 + $0x6d0] sm:$0xff] }
  0x7a   : > { %v888_v45 = vpack.c.bf16 %v776_v41, %v769_v40  ;;  %v669_v40 = vld [vmem:[%s9006_s0 + $0x378] sm:$0xff] }
  0x7e   : > { %1454 = vmatmul.mubr.bf16.gmra.mrb[36].mxu0 %v845_v46  ;;  %v771_v46 = vld [vmem:[%s9006_s0 + $0x6a8] sm:$0xff] }
  0x7f   : > { %1461 = vmatprep.mubr.bf16.mxu0 %v853_v49  ;;  %v890_v49 = vpack.c.bf16 %v778_v47, %v771_v46  ;;  %v618_v46 = vld [vmem:[%s9006_s0 + $0x1e0] sm:$0xff]  ;;  %v625_v47 = vld [vmem:[%s9006_s0 + $0x218] sm:$0xff] }
  0x80   : > { %1615 = vmatmul.mubr.bf16.gmra.mrb[36].mxu1 %v847_v52  ;;  %v770_v52 = vld [vmem:[%s9006_s0 + $0x6a0] sm:$0xff]  ;;  %v814_v50 = vpack.c.bf16 %v625_v47, %v618_v46  ;;  %v724_v46 = vld [vmem:[%s9006_s0 + $0x530] sm:$0xff] }
  0x81   : > { %1622 = vmatprep.mubr.bf16.mxu1 %v855_v53  ;;  %v777_v53 = vld [vmem:[%s9006_s0 + $0x6d8] sm:$0xff]  ;;  %v7810_v47 = vld [vmem:[%s11278_s2 + $0x20] sm:$0xff]  }
  0x82   : > { %v889_v60 = vpack.c.bf16 %v777_v53, %v770_v52  ;;  %v697_v52 = vld [vmem:[%s9006_s0 + $0x458] sm:$0xff] }
  0x86   : > { %1462 = vmatmul.mubr.bf16.gmra.mrb[40].mxu0 %v852_v58  ;;  %v564_v58 = vld [vmem:[%s9006_s0 + $0x30] sm:$0xff] }
  0x87   : > { %1469 = vmatprep.mubr.bf16.mxu0 %v860_v61  ;;  %v562_v61 = vld [vmem:[%s9006_s0 + $0x20] sm:$0xff]  ;;  %v788_v63 = vpack.c.bf16 %v571_v59, %v564_v58  ;;  %v632_v58 = vld [vmem:[%s9006_s0 + $0x250] sm:$0xff]  ;;  %v639_v59 = vld [vmem:[%s9006_s0 + $0x288] sm:$0xff] }
  0x88   : > { %1623 = vmatmul.mubr.bf16.gmra.mrb[40].mxu1 %v854_v0  ;;  %v577_v0 = vld [vmem:[%s9006_s0 + $0x98] sm:$0xff] }
  0x89   : > { %1630 = vmatprep.mubr.bf16.mxu1 %v862_v1  ;;  %v584_v1 = vld [vmem:[%s9006_s0 + $0xd0] sm:$0xff] }
  0x8a   : > { %v794_v7 = vpack.c.bf16 %v584_v1, %v577_v0  ;;  %v725_v0 = vld [vmem:[%s9006_s0 + $0x538] sm:$0xff] }
  0x8e   : > { %1470 = vmatmul.mubr.bf16.gmra.mrb[44].mxu0 %v859_v6  ;;  %v786_v6 = vpack.c.bf16 %v569_v62, %v562_v61  ;;  %v654_v61 = vld [vmem:[%s9006_s0 + $0x300] sm:$0xff]  ;;  %v821_v62 = vpack.c.bf16 %v639_v59, %v632_v58 }
  0x8f   : > { %1477 = vmatprep.mubr.bf16.mxu0 %v867_v9  ;;  %v802_v9 = vpack.c.bf16 %v599_v5, %v592_v4  ;;  %v872_v5 = vpack.c.bf16 %v739_v3, %v732_v2 }
  0x90   : > { %1631 = vmatmul.mubr.bf16.gmra.mrb[44].mxu1 %v861_v12  ;;  %v591_v12 = vld [vmem:[%s9006_s0 + $0x108] sm:$0xff] }
  0x91   : > { %1638 = vmatprep.mubr.bf16.mxu1 %v869_v15  ;;  %v606_v15 = vld [vmem:[%s9006_s0 + $0x180] sm:$0xff]  ;;  %v801_v17 = vpack.c.bf16 %v598_v13, %v591_v12  ;;  %v753_v13 = vld [vmem:[%s9006_s0 + $0x618] sm:$0xff] }
  0x92   : > { %v746_v12 = vld [vmem:[%s9006_s0 + $0x5e0] sm:$0xff] }
  0x96   : > { %1478 = vmatmul.mubr.bf16.gmra.mrb[48].mxu0 %v866_v20  ;;  %v809_v20 = vpack.c.bf16 %v613_v16, %v606_v15  ;;  %v760_v15 = vld [vmem:[%s9006_s0 + $0x650] sm:$0xff]  ;;  %v767_v16 = vld [vmem:[%s9006_s0 + $0x688] sm:$0xff] }
  0x97   : > { %1485 = vmatprep.mubr.bf16.mxu0 %v874_v21  ;;  %v816_v21 = vpack.c.bf16 %v627_v19, %v620_v18  ;;  %v886_v18 = vpack.c.bf16 %v767_v16, %v760_v15  ;;  %v660_v19 = vld [vmem:[%s9006_s0 + $0x330] sm:$0xff] }
  0x98   : > { %1639 = vmatmul.mubr.bf16.gmra.mrb[48].mxu1 %v868_v24  ;;  %v605_v24 = vld [vmem:[%s9006_s0 + $0x178] sm:$0xff] }
  0x99   : > { %1646 = vmatprep.mubr.bf16.mxu1 %v876_v25  ;;  %v612_v25 = vld [vmem:[%s9006_s0 + $0x1b0] sm:$0xff] }
  0x9a   : > { %v808_v29 = vpack.c.bf16 %v612_v25, %v605_v24  ;;  %v774_v25 = vld [vmem:[%s9006_s0 + $0x6c0] sm:$0xff] }
  0x9e   : > { %1486 = vmatmul.mubr.bf16.gmra.mrb[52].mxu0 %v873_v32  ;;  %v823_v32 = vpack.c.bf16 %v641_v28, %v634_v27 }
  0x9f   : > { %1493 = vmatprep.mubr.bf16.mxu0 %v881_v33  ;;  %v830_v33 = vpack.c.bf16 %v655_v31, %v648_v30  ;;  %v681_v30 = vld [vmem:[%s9006_s0 + $0x3d8] sm:$0xff] }
  0xa0   : > { %1647 = vmatmul.mubr.bf16.gmra.mrb[52].mxu1 %v875_v36  ;;  %v619_v36 = vld [vmem:[%s9006_s0 + $0x1e8] sm:$0xff]  ;;  %v689_v31 = vld [vmem:[%s9006_s0 + $0x418] sm:$0xff] }
  0xa1   : > { %1654 = vmatprep.mubr.bf16.mxu1 %v883_v39  ;;  %v662_v39 = vld [vmem:[%s9006_s0 + $0x340] sm:$0xff]  ;;  %v815_v41 = vpack.c.bf16 %v626_v37, %v619_v36  ;;  %v688_v36 = vld [vmem:[%s9006_s0 + $0x410] sm:$0xff]  ;;  %v695_v37 = vld [vmem:[%s9006_s0 + $0x448] sm:$0xff] }
  0xa6   : > { %1494 = vmatmul.mubr.bf16.gmra.mrb[56].mxu0 %v880_v44  ;;  %v837_v44 = vpack.c.bf16 %v669_v40, %v662_v39  ;;  %v710_v39 = vld [vmem:[%s9006_s0 + $0x4c0] sm:$0xff]  ;;  %v7809_v40 = vld [vmem:[%s11278_s2 + $0x18] sm:$0xff]  }
  0xa7   : > { %1501 = vmatprep.mubr.bf16.mxu0 %v888_v45  ;;  %v844_v45 = vpack.c.bf16 %v683_v43, %v676_v42  ;;  %v702_v43 = vld [vmem:[%s9006_s0 + $0x480] sm:$0xff] }
  0xa8   : > { %1655 = vmatmul.mubr.bf16.gmra.mrb[56].mxu1 %v882_v48  ;;  %v633_v48 = vld [vmem:[%s9006_s0 + $0x258] sm:$0xff] }
  0xa9   : > { %1662 = vmatprep.mubr.bf16.mxu1 %v890_v49  ;;  %v640_v49 = vld [vmem:[%s9006_s0 + $0x290] sm:$0xff] }
  0xaa   : > { %v822_v53 = vpack.c.bf16 %v640_v49, %v633_v48 }
  0xae   : > { %1502 = vmatmul.mubr.bf16.gmra.mrb[60].mxu0 %v887_v56  ;;  %v851_v56 = vpack.c.bf16 %v697_v52, %v690_v51  ;;  %v723_v51 = vld [vmem:[%s9006_s0 + $0x528] sm:$0xff] }
  0xaf   : > { %1703 = vmatprep.mubr.bf16.mxu0 %v787_v57  ;;  %v858_v57 = vpack.c.bf16 %v711_v55, %v704_v54  ;;  %v731_v52 = vld [vmem:[%s9006_s0 + $0x568] sm:$0xff] }
  0xb0   : > { %1663 = vmatmul.mubr.bf16.gmra.mrb[60].mxu1 %v889_v60  ;;  %v647_v60 = vld [vmem:[%s9006_s0 + $0x2c8] sm:$0xff] }
  0xb1   : > { %7427 = vmatprep.mubr.bf16.mxu1 %v788_v63  ;;  %v718_v63 = vld [vmem:[%s9006_s0 + $0x500] sm:$0xff]  ;;  %v829_v1 = vpack.c.bf16 %v654_v61, %v647_v60  ;;  %v7811_v54 = vld [vmem:[%s11278_s2 + $0x28] sm:$0xff]  }
  0xb2   : > { %v865_v4 = vpack.c.bf16 %v725_v0, %v718_v63 }
  0xb6   : > { %1704 = vmatmul.mubr.bf16.vlgmr.msra.gmra.mrb[64].mxu0 %v786_v6  ;;  %v646_v6 = vld [vmem:[%s9006_s0 + $0x2c0] sm:$0xff] }
  0xb7   : > { %1711 = vmatprep.mubr.bf16.mxu0 %v794_v7  ;;  %v653_v7 = vld [vmem:[%s9006_s0 + $0x2f8] sm:$0xff] }
  0xb8   : > { %7428 = vmatmul.mubr.bf16.vlgmr.msra.gmra.mrb[64].mxu1 %v795_v8  ;;  %v661_v8 = vld [vmem:[%s9006_s0 + $0x338] sm:$0xff]  ;;  %v828_v11 = vpack.c.bf16 %v653_v7, %v646_v6  ;;  %v730_v7 = vld [vmem:[%s9006_s0 + $0x560] sm:$0xff] }
  0xb9   : > { %7431 = vmatprep.mubr.bf16.mxu1 %v802_v9  ;;  %v668_v9 = vld [vmem:[%s9006_s0 + $0x370] sm:$0xff]  ;;  %7460 = vmatpush3.bf16.msra.mxu1 %v7806_v10  ;;  %v745_v10 = vld [vmem:[%s9006_s0 + $0x5d8] sm:$0xff] }
  0xba   : > { %7461 = vmatprep.subr.bf16.mxu1 %v7807_v23 }
  0xbd   : > { %7462 = vmatpush3.bf16.msra.mxu1 %v7807_v23 }
  0xbe   : > { %1712 = vmatmul.mubr.bf16.gmra.mrb[68].mxu0 %v793_v14  ;;  %v836_v14 = vpack.c.bf16 %v668_v9, %v661_v8  ;;  %v737_v8 = vld [vmem:[%s9006_s0 + $0x598] sm:$0xff] }
  0xbf   : > { %1719 = vmatprep.mubr.bf16.mxu0 %v801_v17  ;;  %v879_v17 = vpack.c.bf16 %v753_v13, %v746_v12  ;;  %v870_v16 = vpack.c.bf16 %v737_v8, %v730_v7 }
  0xc0   : > { %7432 = vmatmul.mubr.bf16.gmra.mrb[68].mxu1 %v809_v20  ;;  %v667_v20 = vld [vmem:[%s9006_s0 + $0x368] sm:$0xff] }
  0xc1   : > { %7435 = vmatprep.mubr.bf16.mxu1 %v816_v21  ;;  %v675_v21 = vld [vmem:[%s9006_s0 + $0x3a8] sm:$0xff]  ;;  %v835_v24 = vpack.c.bf16 %v667_v20, %v660_v19 }
  0xc2   : > { %v843_v27 = vpack.c.bf16 %v682_v22, %v675_v21 }
  0xc6   : > { %1720 = vmatmul.mubr.bf16.gmra.mrb[72].mxu0 %v800_v26  ;;  %v781_v26 = vld [vmem:[%s9006_s0 + $0x6f8] sm:$0xff] }
  0xc7   : > { %1727 = vmatprep.mubr.bf16.mxu0 %v808_v29  ;;  %v893_v28 = vpack.c.bf16 %v781_v26, %v774_v25  ;;  %v674_v29 = vld [vmem:[%s9006_s0 + $0x3a0] sm:$0xff] }
  0xc8   : > { %7436 = vmatmul.mubr.bf16.gmra.mrb[72].mxu1 %v823_v32  ;;  %v696_v32 = vld [vmem:[%s9006_s0 + $0x450] sm:$0xff]  ;;  %v842_v34 = vpack.c.bf16 %v681_v30, %v674_v29 }
  0xc9   : > { %7439 = vmatprep.mubr.bf16.mxu1 %v830_v33  ;;  %v7808_v33 = vld [vmem:[%s11278_s2 + $0x10] sm:$0xff]   ;;  %v850_v35 = vpack.c.bf16 %v696_v32, %v689_v31  ;;  %v751_v31 = vld [vmem:[%s9006_s0 + $0x608] sm:$0xff] }
  0xca   : > { %7463 = vmatprep.subr.bf16.mxu1 %v7808_v33  ;;  %v744_v30 = vld [vmem:[%s9006_s0 + $0x5d0] sm:$0xff] }
  0xcb   : > { %7464 = vmatpush3.bf16.msra.mxu1 %v7808_v33  ;;  %v759_v33 = vld [vmem:[%s9006_s0 + $0x648] sm:$0xff] }
  0xcc   : > { %7465 = vmatprep.subr.bf16.mxu1 %v7809_v40 }
  0xce   : > { %1728 = vmatmul.mubr.bf16.gmra.mrb[76].mxu0 %v807_v38  ;;  %v703_v38 = vld [vmem:[%s9006_s0 + $0x488] sm:$0xff] }
  0xcf   : > { %1735 = vmatprep.mubr.bf16.mxu0 %v815_v41  ;;  %v849_v41 = vpack.c.bf16 %v695_v37, %v688_v36  ;;  %v857_v42 = vpack.c.bf16 %v710_v39, %v703_v38  ;;  %7466 = vmatpush3.bf16.msra.mxu1 %v7809_v40  ;;  %v877_v38 = vpack.c.bf16 %v751_v31, %v744_v30  ;;  %v7813_v40 = vld [vmem:[%s11278_s2 + $0x38] sm:$0xff]  }
  0xd0   : > { %7440 = vmatmul.mubr.bf16.gmra.mrb[76].mxu1 %v837_v44  ;;  %v709_v44 = vld [vmem:[%s9006_s0 + $0x4b8] sm:$0xff]  ;;  %7467 = vmatprep.subr.bf16.mxu1 %v7810_v47 }
  0xd1   : > { %7443 = vmatprep.mubr.bf16.mxu1 %v844_v45  ;;  %v717_v45 = vld [vmem:[%s9006_s0 + $0x4f8] sm:$0xff]  ;;  %v856_v48 = vpack.c.bf16 %v709_v44, %v702_v43 }
  0xd2   : > { %v864_v49 = vpack.c.bf16 %v724_v46, %v717_v45 }
  0xd3   : > { %7468 = vmatpush3.bf16.msra.mxu1 %v7810_v47 }
  0xd4   : > { %7469 = vmatprep.subr.bf16.mxu1 %v7811_v54 }
  0xd6   : > { %1736 = vmatmul.mubr.bf16.gmra.mrb[80].mxu0 %v814_v50  ;;  %v716_v50 = vld [vmem:[%s9006_s0 + $0x4f0] sm:$0xff] }
  0xd7   : > { %1743 = vmatprep.mubr.bf16.mxu0 %v822_v53  ;;  %v738_v53 = vld [vmem:[%s9006_s0 + $0x5a0] sm:$0xff]  ;;  %v863_v58 = vpack.c.bf16 %v723_v51, %v716_v50  ;;  %7470 = vmatpush3.bf16.msra.mxu1 %v7811_v54  ;;  %v765_v54 = vld [vmem:[%s9006_s0 + $0x678] sm:$0xff] }
  0xd8   : > { %7444 = vmatmul.mubr.bf16.gmra.mrb[80].mxu1 %v851_v56  ;;  %v9320_v56 = vld [vmem:[%s11285_s9] ss:$0 sm:$0xff]  ;;  %v871_v61 = vpack.c.bf16 %v738_v53, %v731_v52 }
  0xd9   : > { %7447 = vmatprep.mubr.bf16.mxu1 %v858_v57  ;;  %v758_v53 = vld [vmem:[%s9006_s0 + $0x640] sm:$0xff] }
  0xde   : > { %1744 = vmatmul.mubr.bf16.gmra.mrb[84].mxu0 %v821_v62 }
  0xdf   : > { %1751 = vmatprep.mubr.bf16.mxu0 %v829_v1 }
  0xe0   : > { %7448 = vmatmul.mubr.bf16.gmra.mrb[84].mxu1 %v865_v4 }
  0xe1   : > { %7451 = vmatprep.mubr.bf16.mxu1 %v872_v5 }
  0xe6   : > { %1752 = vmatmul.mubr.bf16.gmra.mrb[88].mxu0 %v828_v11  ;;  %v752_v11 = vld [vmem:[%s9006_s0 + $0x610] sm:$0xff] }
  0xe7   : > { %1759 = vmatprep.mubr.bf16.mxu0 %v836_v14  ;;  %v7812_v14 = vld [vmem:[%s11278_s2 + $0x30] sm:$0xff]   ;;  %v878_v20 = vpack.c.bf16 %v752_v11, %v745_v10 }
  0xe8   : > { %7452 = vmatmul.mubr.bf16.gmra.mrb[88].mxu1 %v879_v17  ;;  %7471 = vmatprep.subr.bf16.mxu1 %v7812_v14 }
  0xe9   : > { %7455 = vmatprep.mubr.bf16.mxu1 %v886_v18  ;;  %7472 = vmatpush3.bf16.msra.mxu1 %v7812_v14  ;;  %v779_v14 = vld [vmem:[%s9006_s0 + $0x6e8] sm:$0xff] }
  0xea   : > { %7473 = vmatprep.subr.bf16.mxu1 %v7813_v40 }
  0xed   : > { %7474 = vmatpush3.bf16.msra.mxu1 %v7813_v40 }
  0xee   : > { %1760 = vmatmul.mubr.bf16.gmra.mrb[92].mxu0 %v835_v24 }
  0xef   : > { %1767 = vmatprep.mubr.bf16.mxu0 %v843_v27 }
  0xf0   : > { %7456 = vmatmul.mubr.bf16.gmra.mrb[92].mxu1 %v893_v28 }
  0xf6   : > { %1768 = vmatmul.mubr.bf16.gmra.mrb[96].mxu0 %v842_v34  ;;  %v766_v34 = vld [vmem:[%s9006_s0 + $0x680] sm:$0xff] }
  0xf7   : > { %1775 = vmatprep.mubr.bf16.mxu0 %v850_v35  ;;  %v885_v43 = vpack.c.bf16 %v766_v34, %v759_v33 }
  0xfe   : > { %1776 = vmatmul.mubr.bf16.gmra.mrb[100].mxu0 %v849_v41 }
  0xff   : > { %1783 = vmatprep.mubr.bf16.mxu0 %v857_v42 }
 0x106   : > { %1784 = vmatmul.mubr.bf16.gmra.mrb[104].mxu0 %v856_v48 }
 0x107   : > { %1791 = vmatprep.mubr.bf16.mxu0 %v864_v49 }
 0x109   : > { %v6928_v55 = vpop.f32.mrb[0].mxu0 }
 0x10a   : > { %v6929_v57 = vpop.f32.mrb[1].mxu0 }
 0x10b   : > { %v6930_v59 = vadd.f32 %v6929_v57, %v6928_v55  ;;  %v6931_v60 = vpop.f32.mrb[2].mxu0  ;;  %v7040_v62 = vpop.f32.mrb[0].mxu1  ;;  %v773_v57 = vld [vmem:[%s9006_s0 + $0x6b8] sm:$0xff] }
 0x10c   : > { %v6932_v63 = vpop.f32.mrb[3].mxu0  ;;  %v7041_v2 = vpop.f32.mrb[1].mxu1 }
 0x10d   : > { %v1384_v0 = vadd.f32 %v6930_v59, %v9320_v56  ;;  %v6933_v1 = vadd.f32 %v6932_v63, %v6931_v60  ;;  %v7042_v3 = vadd.f32 %v7041_v2, %v7040_v62  ;;  %v7043_v4 = vpop.f32.mrb[2].mxu1  ;;  %v884_v62 = vpack.c.bf16 %v765_v54, %v758_v53 }
 0x10e   : > { %1792 = vmatmul.mubr.bf16.gmra.mrb[108].mxu0 %v863_v58  ;;  %v7044_v6 = vpop.f32.mrb[3].mxu1  ;;  %v780_v58 = vld [vmem:[%s9006_s0 + $0x6f0] sm:$0xff] }
 0x10f   : > { %v1387_v5 = vadd.f32 %v6933_v1, %v9320_v56  ;;  %1799 = vmatprep.mubr.bf16.mxu0 %v871_v61  ;;  %v7045_v9 = vadd.f32 %v7044_v6, %v7043_v4  ;;  %v9328_v12 = vadd.f32 %v7042_v3, %v1384_v0  ;;  %v892_v2 = vpack.c.bf16 %v780_v58, %v773_v57 }
 0x111   : > { %v6934_v13 = vpop.f32.mrb[4].mxu0  ;;  %v9333_v17 = vadd.f32 %v7045_v9, %v1387_v5 }
 0x112   : > { %v6935_v15 = vpop.f32.mrb[5].mxu0 }
 0x113   : > { %v6936_v18 = vadd.f32 %v6935_v15, %v6934_v13  ;;  %v6937_v19 = vpop.f32.mrb[6].mxu0  ;;  %v7046_v21 = vpop.f32.mrb[4].mxu1  ;;  %v772_v13 = vld [vmem:[%s9006_s0 + $0x6b0] sm:$0xff] }
 0x114   : > { %v6938_v22 = vpop.f32.mrb[7].mxu0  ;;  %v7047_v25 = vpop.f32.mrb[5].mxu1 }
 0x115   : > { %v1392_v23 = vadd.f32 %v6936_v18, %v9320_v56  ;;  %v6939_v24 = vadd.f32 %v6938_v22, %v6937_v19  ;;  %v7048_v26 = vadd.f32 %v7047_v25, %v7046_v21  ;;  %v7049_v27 = vpop.f32.mrb[6].mxu1 }
 0x116   : > { %1800 = vmatmul.mubr.bf16.gmra.mrb[112].mxu0 %v870_v16  ;;  %v7050_v29 = vpop.f32.mrb[7].mxu1 }
 0x117   : > { %v1395_v28 = vadd.f32 %v6939_v24, %v9320_v56  ;;  %1807 = vmatprep.mubr.bf16.mxu0 %v878_v20  ;;  %v7051_v32 = vadd.f32 %v7050_v29, %v7049_v27  ;;  %v9341_v35 = vadd.f32 %v7048_v26, %v1392_v23  ;;  %v891_v20 = vpack.c.bf16 %v779_v14, %v772_v13 }
 0x119   : > { %v6940_v36 = vpop.f32.mrb[8].mxu0  ;;  %v9343_v39 = vadd.f32 %v7051_v32, %v1395_v28 }
 0x11a   : > { %v6941_v37 = vpop.f32.mrb[9].mxu0 }
 0x11b   : > { %v6942_v41 = vadd.f32 %v6941_v37, %v6940_v36  ;;  %v6943_v42 = vpop.f32.mrb[10].mxu0  ;;  %v7052_v44 = vpop.f32.mrb[8].mxu1 }
 0x11c   : > { %v6944_v45 = vpop.f32.mrb[11].mxu0  ;;  %v7053_v48 = vpop.f32.mrb[9].mxu1 }
 0x11d   : > { %v1400_v46 = vadd.f32 %v6942_v41, %v9320_v56  ;;  %v6945_v47 = vadd.f32 %v6944_v45, %v6943_v42  ;;  %v7054_v49 = vadd.f32 %v7053_v48, %v7052_v44  ;;  %v7055_v50 = vpop.f32.mrb[10].mxu1 }
 0x11e   : > { %1808 = vmatmul.mubr.bf16.gmra.mrb[116].mxu0 %v877_v38  ;;  %v7056_v52 = vpop.f32.mrb[11].mxu1 }
 0x11f   : > { %v1403_v51 = vadd.f32 %v6945_v47, %v9320_v56  ;;  %1815 = vmatprep.mubr.bf16.mxu0 %v885_v43  ;;  %v7057_v55 = vadd.f32 %v7056_v52, %v7055_v50  ;;  %v9354_v59 = vadd.f32 %v7054_v49, %v1400_v46 }
 0x121   : > { %v6946_v60 = vpop.f32.mrb[12].mxu0  ;;  %v9356_v63 = vadd.f32 %v7057_v55, %v1403_v51 }
 0x122   : > { %v6947_v61 = vpop.f32.mrb[13].mxu0 }
 0x123   : > { %v6948_v0 = vadd.f32 %v6947_v61, %v6946_v60  ;;  %v6949_v1 = vpop.f32.mrb[14].mxu0  ;;  %v7058_v3 = vpop.f32.mrb[12].mxu1 }
 0x124   : > { %v6950_v4 = vpop.f32.mrb[15].mxu0  ;;  %v7059_v7 = vpop.f32.mrb[13].mxu1 }
 0x125   : > { %v1408_v5 = vadd.f32 %v6948_v0, %v9320_v56  ;;  %v6951_v6 = vadd.f32 %v6950_v4, %v6949_v1  ;;  %v7060_v8 = vadd.f32 %v7059_v7, %v7058_v3  ;;  %v7061_v9 = vpop.f32.mrb[14].mxu1 }
 0x126   : > { %1816 = vmatmul.mubr.bf16.gmra.mrb[120].mxu0 %v884_v62  ;;  %v7062_v11 = vpop.f32.mrb[15].mxu1 }
 0x127   : > { %v1411_v10 = vadd.f32 %v6951_v6, %v9320_v56  ;;  %1823 = vmatprep.mubr.bf16.mxu0 %v892_v2  ;;  %v7063_v15 = vadd.f32 %v7062_v11, %v7061_v9  ;;  %v9362_v16 = vadd.f32 %v7060_v8, %v1408_v5 }
 0x129   : > { %v6952_v18 = vpop.f32.mrb[16].mxu0  ;;  %v9364_v21 = vadd.f32 %v7063_v15, %v1411_v10 }
 0x12a   : > { %v6953_v19 = vpop.f32.mrb[17].mxu0 }
 0x12b   : > { %v6954_v22 = vadd.f32 %v6953_v19, %v6952_v18  ;;  %v6955_v23 = vpop.f32.mrb[18].mxu0  ;;  %v7064_v24 = vpop.f32.mrb[16].mxu1 }
 0x12c   : > { %v6956_v25 = vpop.f32.mrb[19].mxu0  ;;  %v7065_v28 = vpop.f32.mrb[17].mxu1 }
 0x12d   : > { %v1416_v26 = vadd.f32 %v6954_v22, %v9320_v56  ;;  %v6957_v27 = vadd.f32 %v6956_v25, %v6955_v23  ;;  %v7066_v29 = vadd.f32 %v7065_v28, %v7064_v24  ;;  %v7067_v30 = vpop.f32.mrb[18].mxu1 }
 0x12e   : > { %1824 = vmatmul.mubr.bf16.gmra.mrb[124].mxu0 %v891_v20  ;;  %v7068_v32 = vpop.f32.mrb[19].mxu1 }
 0x12f   : > { %v1419_v31 = vadd.f32 %v6957_v27, %v9320_v56  ;;  %v7069_v33 = vadd.f32 %v7068_v32, %v7067_v30  ;;  %v9368_v34 = vadd.f32 %v7066_v29, %v1416_v26 }
 0x131   : > { %v6958_v36 = vpop.f32.mrb[20].mxu0  ;;  %v9370_v38 = vadd.f32 %v7069_v33, %v1419_v31 }
 0x132   : > { %v6959_v37 = vpop.f32.mrb[21].mxu0 }
 0x133   : > { %v6960_v40 = vadd.f32 %v6959_v37, %v6958_v36  ;;  %v6961_v41 = vpop.f32.mrb[22].mxu0  ;;  %v7070_v42 = vpop.f32.mrb[20].mxu1 }
 0x134   : > { %v6962_v43 = vpop.f32.mrb[23].mxu0  ;;  %v7071_v46 = vpop.f32.mrb[21].mxu1 }
 0x135   : > { %v1424_v44 = vadd.f32 %v6960_v40, %v9320_v56  ;;  %v6963_v45 = vadd.f32 %v6962_v43, %v6961_v41  ;;  %v7072_v47 = vadd.f32 %v7071_v46, %v7070_v42  ;;  %v7073_v48 = vpop.f32.mrb[22].mxu1 }
 0x136   : > { %v7074_v50 = vpop.f32.mrb[23].mxu1 }
 0x137   : > { %v1427_v49 = vadd.f32 %v6963_v45, %v9320_v56  ;;  %v7075_v51 = vadd.f32 %v7074_v50, %v7073_v48  ;;  %v9374_v52 = vadd.f32 %v7072_v47, %v1424_v44 }
 0x139   : > { %v6964_v53 = vpop.f32.mrb[24].mxu0  ;;  %v9376_v55 = vadd.f32 %v7075_v51, %v1427_v49 }
 0x13a   : > { %v6965_v54 = vpop.f32.mrb[25].mxu0 }
 0x13b   : > { %v6966_v57 = vadd.f32 %v6965_v54, %v6964_v53  ;;  %v6967_v58 = vpop.f32.mrb[26].mxu0  ;;  %v7076_v60 = vpop.f32.mrb[24].mxu1 }
 0x13c   : > { %v6968_v61 = vpop.f32.mrb[27].mxu0  ;;  %v7077_v1 = vpop.f32.mrb[25].mxu1 }
 0x13d   : > { %v1432_v62 = vadd.f32 %v6966_v57, %v9320_v56  ;;  %v6969_v0 = vadd.f32 %v6968_v61, %v6967_v58  ;;  %v7078_v2 = vadd.f32 %v7077_v1, %v7076_v60  ;;  %v7079_v3 = vpop.f32.mrb[26].mxu1 }
 0x13e   : > { %v7080_v5 = vpop.f32.mrb[27].mxu1 }
 0x13f   : > { %v1435_v4 = vadd.f32 %v6969_v0, %v9320_v56  ;;  %v7081_v6 = vadd.f32 %v7080_v5, %v7079_v3  ;;  %v9380_v7 = vadd.f32 %v7078_v2, %v1432_v62 }
 0x141   : > { %v6970_v8 = vpop.f32.mrb[28].mxu0  ;;  %v9382_v10 = vadd.f32 %v7081_v6, %v1435_v4 }
 0x142   : > { %v6971_v9 = vpop.f32.mrb[29].mxu0 }
 0x143   : > { %v6972_v11 = vadd.f32 %v6971_v9, %v6970_v8  ;;  %v6973_v13 = vpop.f32.mrb[30].mxu0  ;;  %v7082_v14 = vpop.f32.mrb[28].mxu1 }
 0x144   : > { %v6974_v15 = vpop.f32.mrb[31].mxu0  ;;  %v7083_v20 = vpop.f32.mrb[29].mxu1 }
 0x145   : > { %v1440_v18 = vadd.f32 %v6972_v11, %v9320_v56  ;;  %v6975_v19 = vadd.f32 %v6974_v15, %v6973_v13  ;;  %v7084_v22 = vadd.f32 %v7083_v20, %v7082_v14  ;;  %v7085_v23 = vpop.f32.mrb[30].mxu1 }
 0x146   : > { %v7086_v25 = vpop.f32.mrb[31].mxu1 }
 0x147   : > { %v1443_v24 = vadd.f32 %v6975_v19, %v9320_v56  ;;  %v7087_v26 = vadd.f32 %v7086_v25, %v7085_v23  ;;  %v9386_v27 = vadd.f32 %v7084_v22, %v1440_v18 }
 0x149   : > { %v6976_v28 = vpop.f32.mrb[32].mxu0  ;;  %v9388_v30 = vadd.f32 %v7087_v26, %v1443_v24 }
 0x14a   : > { %v6977_v29 = vpop.f32.mrb[33].mxu0 }
 0x14b   : > { %v6978_v31 = vadd.f32 %v6977_v29, %v6976_v28  ;;  %v6979_v32 = vpop.f32.mrb[34].mxu0  ;;  %v7088_v33 = vpop.f32.mrb[32].mxu1 }
 0x14c   : > { %v6980_v36 = vpop.f32.mrb[35].mxu0  ;;  %v7089_v41 = vpop.f32.mrb[33].mxu1 }
 0x14d   : > { %v1448_v37 = vadd.f32 %v6978_v31, %v9320_v56  ;;  %v6981_v40 = vadd.f32 %v6980_v36, %v6979_v32  ;;  %v7090_v42 = vadd.f32 %v7089_v41, %v7088_v33  ;;  %v7091_v43 = vpop.f32.mrb[34].mxu1 }
 0x14e   : > { %v7092_v45 = vpop.f32.mrb[35].mxu1 }
 0x14f   : > { %v1451_v44 = vadd.f32 %v6981_v40, %v9320_v56  ;;  %v7093_v46 = vadd.f32 %v7092_v45, %v7091_v43  ;;  %v9392_v47 = vadd.f32 %v7090_v42, %v1448_v37 }
 0x151   : > { %v6982_v48 = vpop.f32.mrb[36].mxu0  ;;  %v9394_v50 = vadd.f32 %v7093_v46, %v1451_v44 }
 0x152   : > { %v6983_v49 = vpop.f32.mrb[37].mxu0 }
 0x153   : > { %v6984_v51 = vadd.f32 %v6983_v49, %v6982_v48  ;;  %v6985_v53 = vpop.f32.mrb[38].mxu0  ;;  %v7094_v54 = vpop.f32.mrb[36].mxu1 }
 0x154   : > { %v6986_v57 = vpop.f32.mrb[39].mxu0  ;;  %v7095_v61 = vpop.f32.mrb[37].mxu1 }
 0x155   : > { %v1456_v58 = vadd.f32 %v6984_v51, %v9320_v56  ;;  %v6987_v60 = vadd.f32 %v6986_v57, %v6985_v53  ;;  %v7096_v62 = vadd.f32 %v7095_v61, %v7094_v54  ;;  %v7097_v0 = vpop.f32.mrb[38].mxu1 }
 0x156   : > { %v7098_v2 = vpop.f32.mrb[39].mxu1 }
 0x157   : > { %v1459_v1 = vadd.f32 %v6987_v60, %v9320_v56  ;;  %v7099_v3 = vadd.f32 %v7098_v2, %v7097_v0  ;;  %v9398_v4 = vadd.f32 %v7096_v62, %v1456_v58 }
 0x159   : > { %v6988_v5 = vpop.f32.mrb[40].mxu0  ;;  %v9400_v8 = vadd.f32 %v7099_v3, %v1459_v1 }
 0x15a   : > { %v6989_v6 = vpop.f32.mrb[41].mxu0 }
 0x15b   : > { %v6990_v9 = vadd.f32 %v6989_v6, %v6988_v5  ;;  %v6991_v11 = vpop.f32.mrb[42].mxu0  ;;  %v7100_v13 = vpop.f32.mrb[40].mxu1 }
 0x15c   : > { %v6992_v14 = vpop.f32.mrb[43].mxu0  ;;  %v7101_v19 = vpop.f32.mrb[41].mxu1 }
 0x15d   : > { %v1464_v15 = vadd.f32 %v6990_v9, %v9320_v56  ;;  %v6993_v18 = vadd.f32 %v6992_v14, %v6991_v11  ;;  %v7102_v20 = vadd.f32 %v7101_v19, %v7100_v13  ;;  %v7103_v22 = vpop.f32.mrb[42].mxu1 }
 0x15e   : > { %v7104_v24 = vpop.f32.mrb[43].mxu1 }
 0x15f   : > { %v1467_v23 = vadd.f32 %v6993_v18, %v9320_v56  ;;  %v7105_v25 = vadd.f32 %v7104_v24, %v7103_v22  ;;  %v9404_v26 = vadd.f32 %v7102_v20, %v1464_v15 }
 0x161   : > { %v6994_v28 = vpop.f32.mrb[44].mxu0  ;;  %v9406_v31 = vadd.f32 %v7105_v25, %v1467_v23 }
 0x162   : > { %v6995_v29 = vpop.f32.mrb[45].mxu0 }
 0x163   : > { %v6996_v32 = vadd.f32 %v6995_v29, %v6994_v28  ;;  %v6997_v33 = vpop.f32.mrb[46].mxu0  ;;  %v7106_v36 = vpop.f32.mrb[44].mxu1 }
 0x164   : > { %v6998_v37 = vpop.f32.mrb[47].mxu0  ;;  %v7107_v42 = vpop.f32.mrb[45].mxu1 }
 0x165   : > { %v1472_v40 = vadd.f32 %v6996_v32, %v9320_v56  ;;  %v6999_v41 = vadd.f32 %v6998_v37, %v6997_v33  ;;  %v7108_v43 = vadd.f32 %v7107_v42, %v7106_v36  ;;  %v7109_v44 = vpop.f32.mrb[46].mxu1 }
 0x166   : > { %v7110_v46 = vpop.f32.mrb[47].mxu1 }
 0x167   : > { %v1475_v45 = vadd.f32 %v6999_v41, %v9320_v56  ;;  %v7111_v48 = vadd.f32 %v7110_v46, %v7109_v44  ;;  %v9410_v49 = vadd.f32 %v7108_v43, %v1472_v40 }
 0x169   : > { %v7000_v51 = vpop.f32.mrb[48].mxu0  ;;  %v9412_v54 = vadd.f32 %v7111_v48, %v1475_v45 }
 0x16a   : > { %v7001_v53 = vpop.f32.mrb[49].mxu0 }
 0x16b   : > { %v7002_v57 = vadd.f32 %v7001_v53, %v7000_v51  ;;  %v7003_v58 = vpop.f32.mrb[50].mxu0  ;;  %v7112_v60 = vpop.f32.mrb[48].mxu1 }
 0x16c   : > { %v7004_v61 = vpop.f32.mrb[51].mxu0  ;;  %v7113_v1 = vpop.f32.mrb[49].mxu1 }
 0x16d   : > { %v1480_v62 = vadd.f32 %v7002_v57, %v9320_v56  ;;  %v7005_v0 = vadd.f32 %v7004_v61, %v7003_v58  ;;  %v7114_v2 = vadd.f32 %v7113_v1, %v7112_v60  ;;  %v7115_v3 = vpop.f32.mrb[50].mxu1  ;;  %v7814_v57 = vld [vmem:[%s11279_s3] sm:$0xff]  }
 0x16e   : > { %v7116_v6 = vpop.f32.mrb[51].mxu1  ;;  %7507 = vmatprep.subr.bf16.mxu0 %v7814_v57 }
 0x16f   : > { %v1483_v5 = vadd.f32 %v7005_v0, %v9320_v56  ;;  %v7117_v9 = vadd.f32 %v7116_v6, %v7115_v3  ;;  %v9416_v11 = vadd.f32 %v7114_v2, %v1480_v62  ;;  %7508 = vmatpush3.bf16.msra.mxu0 %v7814_v57 }
 0x171   : > { %v7006_v13 = vpop.f32.mrb[52].mxu0  ;;  %v9418_v15 = vadd.f32 %v7117_v9, %v1483_v5 }
 0x172   : > { %v7007_v14 = vpop.f32.mrb[53].mxu0 }
 0x173   : > { %v7008_v18 = vadd.f32 %v7007_v14, %v7006_v13  ;;  %v7009_v19 = vpop.f32.mrb[54].mxu0  ;;  %v7118_v20 = vpop.f32.mrb[52].mxu1 }
 0x174   : > { %v7010_v22 = vpop.f32.mrb[55].mxu0  ;;  %v7119_v25 = vpop.f32.mrb[53].mxu1 }
 0x175   : > { %v1488_v23 = vadd.f32 %v7008_v18, %v9320_v56  ;;  %v7011_v24 = vadd.f32 %v7010_v22, %v7009_v19  ;;  %v7120_v28 = vadd.f32 %v7119_v25, %v7118_v20  ;;  %v7121_v29 = vpop.f32.mrb[54].mxu1 }
 0x176   : > { %v7122_v33 = vpop.f32.mrb[55].mxu1 }
 0x177   : > { %v1491_v32 = vadd.f32 %v7011_v24, %v9320_v56  ;;  %v7123_v36 = vadd.f32 %v7122_v33, %v7121_v29  ;;  %v9422_v37 = vadd.f32 %v7120_v28, %v1488_v23 }
 0x179   : > { %v7012_v40 = vpop.f32.mrb[56].mxu0  ;;  %v9424_v42 = vadd.f32 %v7123_v36, %v1491_v32 }
 0x17a   : > { %v7013_v41 = vpop.f32.mrb[57].mxu0 }
 0x17b   : > { %v7014_v43 = vadd.f32 %v7013_v41, %v7012_v40  ;;  %v7015_v44 = vpop.f32.mrb[58].mxu0  ;;  %v7124_v45 = vpop.f32.mrb[56].mxu1 }
 0x17c   : > { %v7016_v46 = vpop.f32.mrb[59].mxu0  ;;  %v7125_v53 = vpop.f32.mrb[57].mxu1 }
 0x17d   : > { %v1496_v48 = vadd.f32 %v7014_v43, %v9320_v56  ;;  %v7017_v51 = vadd.f32 %v7016_v46, %v7015_v44  ;;  %v7126_v58 = vadd.f32 %v7125_v53, %v7124_v45  ;;  %v7127_v60 = vpop.f32.mrb[58].mxu1 }
 0x17e   : > { %v7128_v62 = vpop.f32.mrb[59].mxu1 }
 0x17f   : > { %v1499_v61 = vadd.f32 %v7017_v51, %v9320_v56  ;;  %v7129_v0 = vadd.f32 %v7128_v62, %v7127_v60  ;;  %v9431_v1 = vadd.f32 %v7126_v58, %v1496_v48  ;;  %v7815_v58 = vld [vmem:[%s11279_s3 + $0x8] sm:$0xff]   ;;  %v7816_v60 = vld [vmem:[%s11279_s3 + $0x10] sm:$0xff]  }
 0x180   : > { %7509 = vmatprep.subr.bf16.mxu0 %v7815_v58 }
 0x181   : > { %v7018_v2 = vpop.f32.mrb[60].mxu0  ;;  %v9433_v5 = vadd.f32 %v7129_v0, %v1499_v61  ;;  %7510 = vmatpush3.bf16.msra.mxu0 %v7815_v58 }
 0x182   : > { %v7019_v3 = vpop.f32.mrb[61].mxu0  ;;  %7511 = vmatprep.subr.bf16.mxu0 %v7816_v60 }
 0x183   : > { %v7020_v6 = vadd.f32 %v7019_v3, %v7018_v2  ;;  %v7021_v9 = vpop.f32.mrb[62].mxu0  ;;  %v7130_v13 = vpop.f32.mrb[60].mxu1 }
 0x184   : > { %v7022_v14 = vpop.f32.mrb[63].mxu0  ;;  %v7131_v20 = vpop.f32.mrb[61].mxu1 }
 0x185   : > { %v1504_v18 = vadd.f32 %v7020_v6, %v9320_v56  ;;  %v7023_v19 = vadd.f32 %v7022_v14, %v7021_v9  ;;  %v7132_v22 = vadd.f32 %v7131_v20, %v7130_v13  ;;  %v7133_v23 = vpop.f32.mrb[62].mxu1  ;;  %7512 = vmatpush3.bf16.msra.mxu0 %v7816_v60 }
 0x186   : > { %v7134_v25 = vpop.f32.mrb[63].mxu1 }
 0x187   : > { %v1507_v24 = vadd.f32 %v7023_v19, %v9320_v56  ;;  %v7135_v28 = vadd.f32 %v7134_v25, %v7133_v23  ;;  %v9437_v29 = vadd.f32 %v7132_v22, %v1504_v18 }
 0x189   : > { %v7152_v32 = vpop.f32.mrb[64].mxu0  ;;  %v9439_v36 = vadd.f32 %v7135_v28, %v1507_v24 }
 0x18a   : > { %v7153_v33 = vpop.f32.mrb[65].mxu0 }
 0x18b   : > { %v7154_v40 = vadd.f32 %v7153_v33, %v7152_v32  ;;  %v7155_v41 = vpop.f32.mrb[66].mxu0  ;;  %v7429_v44 = vpop.f32.mrb[64].mxu1 }
 0x18c   : > { %v7156_v43 = vpop.f32.mrb[67].mxu0  ;;  %v1866_v48 = vpop.f32.mrb[65].mxu1 }
 0x18d   : > { %v7157_v45 = vadd.f32 %v7156_v43, %v7155_v41  ;;  %v1706_v46 = vadd.f32 %v7154_v40, %v9328_v12  ;;  %v7430_v51 = vpop.f32.mrb[66].mxu1 }
 0x18e   : > { %v1869_v57 = vpop.f32.mrb[67].mxu1 }
 0x18f   : > { %v1867_v53 = vadd.f32 %v1866_v48, %v1706_v46  ;;  %v1709_v56 = vadd.f32 %v7157_v45, %v9333_v17  ;;  %v7817_v17 = vld [vmem:[%s11279_s3 + $0x18] sm:$0xff]  }
 0x190   : > { %7513 = vmatprep.subr.bf16.mxu0 %v7817_v17 }
 0x191   : > { %v1870_v61 = vadd.f32 %v1869_v57, %v1709_v56  ;;  %v7158_v62 = vpop.f32.mrb[68].mxu0  ;;  %v1993_v12 = vmax.f32 %v1867_v53, 0.0  ;;  %7514 = vmatpush3.bf16.msra.mxu0 %v7817_v17 }
 0x192   : > { %v7159_v0 = vpop.f32.mrb[69].mxu0 }
 0x193   : > { %v1994_v2 = vmax.f32 %v1870_v61, 0.0  ;;  %v7160_v3 = vadd.f32 %v7159_v0, %v7158_v62  ;;  %v7161_v6 = vpop.f32.mrb[70].mxu0  ;;  %v7433_v13 = vpop.f32.mrb[68].mxu1 }
 0x194   : > { %v7162_v9 = vpop.f32.mrb[71].mxu0  ;;  %v1882_v20 = vpop.f32.mrb[69].mxu1 }
 0x195   : > { %v2025_v14 = vpack.c.bf16 %v1994_v2, %v1993_v12  ;;  %v1714_v18 = vadd.f32 %v7160_v3, %v9341_v35  ;;  %v7163_v19 = vadd.f32 %v7162_v9, %v7161_v6  ;;  %v7434_v22 = vpop.f32.mrb[70].mxu1 }
 0x196   : > { %v1885_v25 = vpop.f32.mrb[71].mxu1 }
 0x197   : > { %v1875_v23 = vadd.f32 %v7429_v44, %v1714_v18  ;;  %v1717_v24 = vadd.f32 %v7163_v19, %v9343_v39  ;;  %7475 = vmatprep.mubr.bf16.mxu1 %v2025_v14 }
 0x199   : > { %v1878_v28 = vadd.f32 %v7430_v51, %v1717_v24  ;;  %v7164_v32 = vpop.f32.mrb[72].mxu0  ;;  %v1995_v40 = vmax.f32 %v1875_v23, 0.0 }
 0x19a   : > { %v7165_v33 = vpop.f32.mrb[73].mxu0 }
 0x19b   : > { %v1996_v41 = vmax.f32 %v1878_v28, 0.0  ;;  %v7166_v43 = vadd.f32 %v7165_v33, %v7164_v32  ;;  %v7167_v45 = vpop.f32.mrb[74].mxu0  ;;  %v7437_v35 = vpop.f32.mrb[72].mxu1 }
 0x19c   : > { %v7168_v46 = vpop.f32.mrb[75].mxu0  ;;  %v1898_v44 = vpop.f32.mrb[73].mxu1 }
 0x19d   : > { %v2026_v48 = vpack.c.bf16 %v1996_v41, %v1995_v40  ;;  %v7169_v53 = vadd.f32 %v7168_v46, %v7167_v45  ;;  %v1722_v56 = vadd.f32 %v7166_v43, %v9354_v59  ;;  %v7438_v57 = vpop.f32.mrb[74].mxu1 }
 0x19e   : > { %v1901_v51 = vpop.f32.mrb[75].mxu1 }
 0x19f   : > { %v1883_v39 = vadd.f32 %v1882_v20, %v1722_v56  ;;  %7476 = vmatmul.mubr.bf16.vlgmr.msra.gmra.mrb[96].mxu1 %v2026_v48  ;;  %v1725_v58 = vadd.f32 %v7169_v53, %v9356_v63 }
 0x1a1   : > { %v1886_v60 = vadd.f32 %v1885_v25, %v1725_v58  ;;  %v7170_v61 = vpop.f32.mrb[76].mxu0  ;;  %v1997_v0 = vmax.f32 %v1883_v39, 0.0 }
 0x1a2   : > { %v7171_v62 = vpop.f32.mrb[77].mxu0 }
 0x1a3   : > { %v1998_v12 = vmax.f32 %v1886_v60, 0.0  ;;  %v7172_v2 = vadd.f32 %v7171_v62, %v7170_v61  ;;  %v7173_v3 = vpop.f32.mrb[78].mxu0  ;;  %v9456_v17 = vpop.f32.mrb[76].mxu1 }
 0x1a4   : > { %v7174_v6 = vpop.f32.mrb[79].mxu0  ;;  %v1914_v18 = vpop.f32.mrb[77].mxu1 }
 0x1a5   : > { %v2027_v9 = vpack.c.bf16 %v1998_v12, %v1997_v0  ;;  %v1730_v59 = vadd.f32 %v7172_v2, %v9362_v16  ;;  %v7175_v14 = vadd.f32 %v7174_v6, %v7173_v3  ;;  %v9459_v19 = vpop.f32.mrb[78].mxu1 }
 0x1a6   : > { %v1917_v23 = vpop.f32.mrb[79].mxu1 }
 0x1a7   : > { %v1891_v20 = vadd.f32 %v7433_v13, %v1730_v59  ;;  %v1733_v63 = vadd.f32 %v7175_v14, %v9364_v21  ;;  %7479 = vmatprep.mubr.bf16.mxu1 %v2027_v9 }
 0x1a9   : > { %v1894_v24 = vadd.f32 %v7434_v22, %v1733_v63  ;;  %v7176_v25 = vpop.f32.mrb[80].mxu0  ;;  %v1999_v32 = vmax.f32 %v1891_v20, 0.0 }
 0x1aa   : > { %v7177_v28 = vpop.f32.mrb[81].mxu0 }
 0x1ab   : > { %v2000_v33 = vmax.f32 %v1894_v24, 0.0  ;;  %v7178_v40 = vadd.f32 %v7177_v28, %v7176_v25  ;;  %v7179_v41 = vpop.f32.mrb[82].mxu0  ;;  %v9462_v45 = vpop.f32.mrb[80].mxu1 }
 0x1ac   : > { %v7180_v43 = vpop.f32.mrb[83].mxu0  ;;  %v9465_v53 = vpop.f32.mrb[81].mxu1 }
 0x1ad   : > { %v7181_v16 = vadd.f32 %v7180_v43, %v7179_v41  ;;  %v1738_v46 = vadd.f32 %v7178_v40, %v9368_v34  ;;  %v2028_v48 = vpack.c.bf16 %v2000_v33, %v1999_v32  ;;  %v9467_v13 = vpop.f32.mrb[82].mxu1 }
 0x1ae   : > { %v9470_v56 = vpop.f32.mrb[83].mxu1 }
 0x1af   : > { %v1899_v21 = vadd.f32 %v1898_v44, %v1738_v46  ;;  %7480 = vmatmul.mubr.bf16.gmra.mrb[100].mxu1 %v2028_v48  ;;  %v1741_v22 = vadd.f32 %v7181_v16, %v9370_v38 }
 0x1b1   : > { %v1902_v39 = vadd.f32 %v1901_v51, %v1741_v22  ;;  %v7182_v58 = vpop.f32.mrb[84].mxu0  ;;  %v2001_v61 = vmax.f32 %v1899_v21, 0.0 }
 0x1b2   : > { %v7183_v60 = vpop.f32.mrb[85].mxu0 }
 0x1b3   : > { %v2002_v62 = vmax.f32 %v1902_v39, 0.0  ;;  %v7184_v0 = vadd.f32 %v7183_v60, %v7182_v58  ;;  %v7185_v12 = vpop.f32.mrb[86].mxu0  ;;  %v9472_v34 = vpop.f32.mrb[84].mxu1 }
 0x1b4   : > { %v7186_v2 = vpop.f32.mrb[87].mxu0  ;;  %v9475_v44 = vpop.f32.mrb[85].mxu1 }
 0x1b5   : > { %v2029_v3 = vpack.c.bf16 %v2002_v62, %v2001_v61  ;;  %v1746_v6 = vadd.f32 %v7184_v0, %v9374_v52  ;;  %v7187_v9 = vadd.f32 %v7186_v2, %v7185_v12  ;;  %v9477_v59 = vpop.f32.mrb[86].mxu1 }
 0x1b6   : > { %v9480_v14 = vpop.f32.mrb[87].mxu1 }
 0x1b7   : > { %v1907_v38 = vadd.f32 %v7437_v35, %v1746_v6  ;;  %v1749_v51 = vadd.f32 %v7187_v9, %v9376_v55  ;;  %7483 = vmatprep.mubr.bf16.mxu1 %v2029_v3 }
 0x1b9   : > { %v1910_v20 = vadd.f32 %v7438_v57, %v1749_v51  ;;  %v7188_v63 = vpop.f32.mrb[88].mxu0  ;;  %v2003_v25 = vmax.f32 %v1907_v38, 0.0 }
 0x1ba   : > { %v7189_v24 = vpop.f32.mrb[89].mxu0 }
 0x1bb   : > { %v2004_v28 = vmax.f32 %v1910_v20, 0.0  ;;  %v7190_v32 = vadd.f32 %v7189_v24, %v7188_v63  ;;  %v7191_v33 = vpop.f32.mrb[90].mxu0  ;;  %v9482_v52 = vpop.f32.mrb[88].mxu1 }
 0x1bc   : > { %v7192_v40 = vpop.f32.mrb[91].mxu0  ;;  %v9485_v35 = vpop.f32.mrb[89].mxu1 }
 0x1bd   : > { %v7193_v41 = vadd.f32 %v7192_v40, %v7191_v33  ;;  %v1754_v43 = vadd.f32 %v7190_v32, %v9380_v7  ;;  %v2030_v16 = vpack.c.bf16 %v2004_v28, %v2003_v25  ;;  %v9487_v55 = vpop.f32.mrb[90].mxu1 }
 0x1be   : > { %v9490_v48 = vpop.f32.mrb[91].mxu1 }
 0x1bf   : > { %v1915_v46 = vadd.f32 %v1914_v18, %v1754_v43  ;;  %7484 = vmatmul.mubr.bf16.gmra.mrb[104].mxu1 %v2030_v16  ;;  %v1757_v57 = vadd.f32 %v7193_v41, %v9382_v10 }
 0x1c1   : > { %v1918_v21 = vadd.f32 %v1917_v23, %v1757_v57  ;;  %v7194_v22 = vpop.f32.mrb[92].mxu0  ;;  %v2005_v58 = vmax.f32 %v1915_v46, 0.0 }
 0x1c2   : > { %v7195_v39 = vpop.f32.mrb[93].mxu0 }
 0x1c3   : > { %v2006_v60 = vmax.f32 %v1918_v21, 0.0  ;;  %v7196_v61 = vadd.f32 %v7195_v39, %v7194_v22  ;;  %v7197_v62 = vpop.f32.mrb[94].mxu0  ;;  %v9492_v7 = vpop.f32.mrb[92].mxu1 }
 0x1c4   : > { %v7198_v0 = vpop.f32.mrb[95].mxu0  ;;  %v9495_v18 = vpop.f32.mrb[93].mxu1 }
 0x1c5   : > { %v2031_v12 = vpack.c.bf16 %v2006_v60, %v2005_v58  ;;  %v1762_v2 = vadd.f32 %v7196_v61, %v9386_v27  ;;  %v7199_v3 = vadd.f32 %v7198_v0, %v7197_v62  ;;  %v9497_v6 = vpop.f32.mrb[94].mxu1 }
 0x1c6   : > { %v9501_v9 = vpop.f32.mrb[95].mxu1 }
 0x1c7   : > { %v1923_v10 = vadd.f32 %v9456_v17, %v1762_v2  ;;  %v1765_v23 = vadd.f32 %v7199_v3, %v9388_v30  ;;  %7487 = vmatprep.mubr.bf16.mxu1 %v2031_v12 }
 0x1c9   : > { %v1926_v38 = vadd.f32 %v9459_v19, %v1765_v23  ;;  %v7200_v51 = vpop.f32.mrb[96].mxu0  ;;  %v2007_v63 = vmax.f32 %v1923_v10, 0.0 }
 0x1ca   : > { %v7201_v20 = vpop.f32.mrb[97].mxu0 }
 0x1cb   : > { %v2008_v24 = vmax.f32 %v1926_v38, 0.0  ;;  %v7202_v25 = vadd.f32 %v7201_v20, %v7200_v51  ;;  %v7203_v27 = vpop.f32.mrb[98].mxu0 }
 0x1cc   : > { %v7204_v28 = vpop.f32.mrb[99].mxu0 }
 0x1cd   : > { %v7205_v32 = vadd.f32 %v7204_v28, %v7203_v27  ;;  %v1770_v33 = vadd.f32 %v7202_v25, %v9392_v47  ;;  %v2032_v40 = vpack.c.bf16 %v2008_v24, %v2007_v63 }
 0x1cf   : > { %v1931_v17 = vadd.f32 %v9465_v53, %v1770_v33  ;;  %7488 = vmatmul.mubr.bf16.gmra.mrb[108].mxu1 %v2032_v40  ;;  %v1773_v30 = vadd.f32 %v7205_v32, %v9394_v50 }
 0x1d1   : > { %v1934_v41 = vadd.f32 %v9470_v56, %v1773_v30  ;;  %v7206_v43 = vpop.f32.mrb[100].mxu0  ;;  %v2009_v16 = vmax.f32 %v1931_v17, 0.0 }
 0x1d2   : > { %v7207_v19 = vpop.f32.mrb[101].mxu0 }
 0x1d3   : > { %v2010_v46 = vmax.f32 %v1934_v41, 0.0  ;;  %v7208_v57 = vadd.f32 %v7207_v19, %v7206_v43  ;;  %v7209_v21 = vpop.f32.mrb[102].mxu0 }
 0x1d4   : > { %v7210_v22 = vpop.f32.mrb[103].mxu0 }
 0x1d5   : > { %v2033_v39 = vpack.c.bf16 %v2010_v46, %v2009_v16  ;;  %v1778_v58 = vadd.f32 %v7208_v57, %v9398_v4  ;;  %v7211_v60 = vadd.f32 %v7210_v22, %v7209_v21 }
 0x1d7   : > { %v1939_v47 = vadd.f32 %v9462_v45, %v1778_v58  ;;  %v1781_v53 = vadd.f32 %v7211_v60, %v9400_v8  ;;  %7491 = vmatprep.mubr.bf16.mxu1 %v2033_v39 }
 0x1d9   : > { %v1942_v50 = vadd.f32 %v9467_v13, %v1781_v53  ;;  %v7212_v61 = vpop.f32.mrb[104].mxu0  ;;  %v2011_v62 = vmax.f32 %v1939_v47, 0.0 }
 0x1da   : > { %v7213_v56 = vpop.f32.mrb[105].mxu0 }
 0x1db   : > { %v2012_v0 = vmax.f32 %v1942_v50, 0.0  ;;  %v7214_v12 = vadd.f32 %v7213_v56, %v7212_v61  ;;  %v7215_v2 = vpop.f32.mrb[106].mxu0 }
 0x1dc   : > { %v7216_v3 = vpop.f32.mrb[107].mxu0 }
 0x1dd   : > { %v7217_v10 = vadd.f32 %v7216_v3, %v7215_v2  ;;  %v1786_v23 = vadd.f32 %v7214_v12, %v9404_v26  ;;  %v2034_v38 = vpack.c.bf16 %v2012_v0, %v2011_v62 }
 0x1df   : > { %v1947_v4 = vadd.f32 %v9475_v44, %v1786_v23  ;;  %7492 = vmatmul.mubr.bf16.gmra.mrb[112].mxu1 %v2034_v38  ;;  %v1789_v45 = vadd.f32 %v7217_v10, %v9406_v31 }
 0x1e1   : > { %v1950_v8 = vadd.f32 %v9480_v14, %v1789_v45  ;;  %v7218_v51 = vpop.f32.mrb[108].mxu0  ;;  %v2013_v20 = vmax.f32 %v1947_v4, 0.0 }
 0x1e2   : > { %v7219_v13 = vpop.f32.mrb[109].mxu0 }
 0x1e3   : > { %v2014_v63 = vmax.f32 %v1950_v8, 0.0  ;;  %v7220_v24 = vadd.f32 %v7219_v13, %v7218_v51  ;;  %v7221_v25 = vpop.f32.mrb[110].mxu0 }
 0x1e4   : > { %v7222_v27 = vpop.f32.mrb[111].mxu0 }
 0x1e5   : > { %v2035_v28 = vpack.c.bf16 %v2014_v63, %v2013_v20  ;;  %v1794_v32 = vadd.f32 %v7220_v24, %v9410_v49  ;;  %v7223_v33 = vadd.f32 %v7222_v27, %v7221_v25 }
 0x1e7   : > { %v1955_v26 = vadd.f32 %v9472_v34, %v1794_v32  ;;  %v1797_v44 = vadd.f32 %v7223_v33, %v9412_v54  ;;  %7495 = vmatprep.mubr.bf16.mxu1 %v2035_v28  ;;  %v7818_v32 = vld [vmem:[%s11280_s4] sm:$0x3f]  }
 0x1e8   : > { %7737 = vmatprep.subr.msk.bf16.mxu1 %vm2681_vm0, %v7818_v32 }
 0x1e9   : > { %v1958_v31 = vadd.f32 %v9477_v59, %v1797_v44  ;;  %v7224_v40 = vpop.f32.mrb[112].mxu0  ;;  %v2015_v17 = vmax.f32 %v1955_v26, 0.0 }
 0x1ea   : > { %v7225_v14 = vpop.f32.mrb[113].mxu0 }
 0x1eb   : > { %v2016_v30 = vmax.f32 %v1958_v31, 0.0  ;;  %v7226_v41 = vadd.f32 %v7225_v14, %v7224_v40  ;;  %v7227_v43 = vpop.f32.mrb[114].mxu0 }
 0x1ec   : > { %v7228_v19 = vpop.f32.mrb[115].mxu0 }
 0x1ed   : > { %v7229_v16 = vadd.f32 %v7228_v19, %v7227_v43  ;;  %v1802_v46 = vadd.f32 %v7226_v41, %v9416_v11  ;;  %v2036_v57 = vpack.c.bf16 %v2016_v30, %v2015_v17 }
 0x1ef   : > { %v1963_v49 = vadd.f32 %v9485_v35, %v1802_v46  ;;  %7496 = vmatmul.mubr.bf16.gmra.mrb[116].mxu1 %v2036_v57  ;;  %v1805_v34 = vadd.f32 %v7229_v16, %v9418_v15 }
 0x1f1   : > { %v1966_v54 = vadd.f32 %v9490_v48, %v1805_v34  ;;  %v7230_v21 = vpop.f32.mrb[116].mxu0  ;;  %v2017_v22 = vmax.f32 %v1963_v49, 0.0 }
 0x1f2   : > { %v7231_v59 = vpop.f32.mrb[117].mxu0 }
 0x1f3   : > { %v2018_v39 = vmax.f32 %v1966_v54, 0.0  ;;  %v7232_v58 = vadd.f32 %v7231_v59, %v7230_v21  ;;  %v7233_v60 = vpop.f32.mrb[118].mxu0 }
 0x1f4   : > { %v7234_v47 = vpop.f32.mrb[119].mxu0 }
 0x1f5   : > { %v2037_v53 = vpack.c.bf16 %v2018_v39, %v2017_v22  ;;  %v1810_v50 = vadd.f32 %v7232_v58, %v9422_v37  ;;  %v7235_v61 = vadd.f32 %v7234_v47, %v7233_v60 }
 0x1f7   : > { %v1971_v11 = vadd.f32 %v9482_v52, %v1810_v50  ;;  %v1813_v35 = vadd.f32 %v7235_v61, %v9424_v42  ;;  %7499 = vmatprep.mubr.bf16.mxu1 %v2037_v53 }
 0x1f9   : > { %v1974_v15 = vadd.f32 %v9487_v55, %v1813_v35  ;;  %v7236_v56 = vpop.f32.mrb[120].mxu0  ;;  %v2019_v62 = vmax.f32 %v1971_v11, 0.0 }
 0x1fa   : > { %v7237_v48 = vpop.f32.mrb[121].mxu0 }
 0x1fb   : > { %v2020_v0 = vmax.f32 %v1974_v15, 0.0  ;;  %v7238_v12 = vadd.f32 %v7237_v48, %v7236_v56  ;;  %v7239_v2 = vpop.f32.mrb[122].mxu0 }
 0x1fc   : > { %v7240_v3 = vpop.f32.mrb[123].mxu0 }
 0x1fd   : > { %v7241_v10 = vadd.f32 %v7240_v3, %v7239_v2  ;;  %v1818_v23 = vadd.f32 %v7238_v12, %v9431_v1  ;;  %v2038_v38 = vpack.c.bf16 %v2020_v0, %v2019_v62 }
 0x1ff   : > { %v1979_v37 = vadd.f32 %v9495_v18, %v1818_v23  ;;  %7500 = vmatmul.mubr.bf16.gmra.mrb[120].mxu1 %v2038_v38  ;;  %v1821_v52 = vadd.f32 %v7241_v10, %v9433_v5 }
 0x201   : > { %v1982_v42 = vadd.f32 %v9501_v9, %v1821_v52  ;;  %v7242_v4 = vpop.f32.mrb[124].mxu0  ;;  %v2021_v45 = vmax.f32 %v1979_v37, 0.0 }
 0x202   : > { %v7243_v55 = vpop.f32.mrb[125].mxu0 }
 0x203   : > { %v2022_v8 = vmax.f32 %v1982_v42, 0.0  ;;  %v7244_v51 = vadd.f32 %v7243_v55, %v7242_v4  ;;  %v7245_v13 = vpop.f32.mrb[126].mxu0 }
 0x204   : > { %v7246_v20 = vpop.f32.mrb[127].mxu0 }
 0x205   : > { %v2039_v63 = vpack.c.bf16 %v2022_v8, %v2021_v45  ;;  %v1826_v24 = vadd.f32 %v7244_v51, %v9437_v29  ;;  %v7247_v25 = vadd.f32 %v7246_v20, %v7245_v13  ;;  %v2683_v29 = vsel %vm2681_vm0, %v7818_v32, 0 }
 0x206   : > { %7548 = vmatpush3.bf16.msra.mxu1 %v2683_v29 }
 0x207   : > { %v1987_v1 = vadd.f32 %v9492_v7, %v1826_v24  ;;  %v1829_v18 = vadd.f32 %v7247_v25, %v9439_v36  ;;  %7503 = vmatprep.mubr.bf16.mxu1 %v2039_v63  ;;  %v9544_v36 = vld [vmem:[%s11286_s10] ss:$0 sm:$0xff] }
 0x209   : > { %v1990_v5 = vadd.f32 %v9497_v6, %v1829_v18  ;;  %v2023_v27 = vmax.f32 %v1987_v1, 0.0 }
 0x20b   : > { %v2024_v9 = vmax.f32 %v1990_v5, 0.0 }
 0x20d   : > { %v2040_v28 = vpack.c.bf16 %v2024_v9, %v2023_v27 }
 0x20f   : > { %7504 = vmatmul.mubr.bf16.gmra.mrb[124].mxu1 %v2040_v28 }
 0x272   : > { %v7477_v7 = vpop.f32.mrb[96].mxu1 }
 0x273   : > { %v2155_v6 = vadd.f32 %v7477_v7, %v9544_v36  ;;  %v2146_v33 = vpop.f32.mrb[97].mxu1 }
 0x274   : > { %v2147_v26 = vadd.f32 %v9544_v36, %v2146_v33  ;;  %v7478_v44 = vpop.f32.mrb[98].mxu1 }
 0x275   : > { %v2158_v31 = vadd.f32 %v7478_v44, %v9544_v36  ;;  %v2149_v40 = vpop.f32.mrb[99].mxu1  ;;  %v2275_v17 = vmax.f32 %v2155_v6, 0.0 }
 0x276   : > { %v2150_v14 = vadd.f32 %v9544_v36, %v2149_v40  ;;  %v2273_v41 = vmax.f32 %v2147_v26, 0.0 }
 0x277   : > { %v2276_v30 = vmax.f32 %v2158_v31, 0.0 }
 0x278   : > { %v2274_v43 = vmax.f32 %v2150_v14, 0.0 }
 0x279   : > { %v2306_v19 = vpack.c.bf16 %v2276_v30, %v2275_v17 }
 0x27a   : > { %v2305_v16 = vpack.c.bf16 %v2274_v43, %v2273_v41 }
 0x27c   : > { %7515 = vmatprep.mubr.msk.bf16.mxu0 %vm2360_vm1, %v2305_v16 }
 0x27d   : > { %7516 = vmatmul.mubr.msk.bf16.vlgmr.msra.gmra.mrb[128].mxu0 %vm2360_vm1, %v2306_v19 }
 0x282   : > { %v7481_v46 = vpop.f32.mrb[100].mxu1 }
 0x283   : > { %v2171_v57 = vadd.f32 %v7481_v46, %v9544_v36  ;;  %v2162_v49 = vpop.f32.mrb[101].mxu1 }
 0x284   : > { %v2163_v34 = vadd.f32 %v9544_v36, %v2162_v49  ;;  %v7482_v54 = vpop.f32.mrb[102].mxu1 }
 0x285   : > { %v2174_v21 = vadd.f32 %v7482_v54, %v9544_v36  ;;  %v2165_v59 = vpop.f32.mrb[103].mxu1  ;;  %v2279_v39 = vmax.f32 %v2171_v57, 0.0 }
 0x286   : > { %v2166_v22 = vadd.f32 %v9544_v36, %v2165_v59  ;;  %v2277_v60 = vmax.f32 %v2163_v34, 0.0 }
 0x287   : > { %v2280_v58 = vmax.f32 %v2174_v21, 0.0 }
 0x288   : > { %v2278_v47 = vmax.f32 %v2166_v22, 0.0 }
 0x289   : > { %v2308_v53 = vpack.c.bf16 %v2280_v58, %v2279_v39 }
 0x28a   : > { %v2307_v50 = vpack.c.bf16 %v2278_v47, %v2277_v60 }
 0x28c   : > { %7519 = vmatprep.mubr.msk.bf16.mxu0 %vm2360_vm1, %v2307_v50 }
 0x28d   : > { %7520 = vmatmul.mubr.msk.bf16.gmra.mrb[132].mxu0 %vm2360_vm1, %v2308_v53 }
 0x292   : > { %v7485_v61 = vpop.f32.mrb[104].mxu1 }
 0x293   : > { %v2187_v11 = vadd.f32 %v7485_v61, %v9544_v36  ;;  %v2178_v35 = vpop.f32.mrb[105].mxu1 }
 0x294   : > { %v2179_v15 = vadd.f32 %v9544_v36, %v2178_v35  ;;  %v7486_v56 = vpop.f32.mrb[106].mxu1 }
 0x295   : > { %v2190_v48 = vadd.f32 %v7486_v56, %v9544_v36  ;;  %v2181_v62 = vpop.f32.mrb[107].mxu1  ;;  %v2283_v12 = vmax.f32 %v2187_v11, 0.0 }
 0x296   : > { %v2182_v0 = vadd.f32 %v9544_v36, %v2181_v62  ;;  %v2281_v3 = vmax.f32 %v2179_v15, 0.0 }
 0x297   : > { %v2284_v2 = vmax.f32 %v2190_v48, 0.0 }
 0x298   : > { %v2282_v10 = vmax.f32 %v2182_v0, 0.0 }
 0x299   : > { %v2310_v23 = vpack.c.bf16 %v2284_v2, %v2283_v12 }
 0x29a   : > { %v2309_v38 = vpack.c.bf16 %v2282_v10, %v2281_v3 }
 0x29c   : > { %7523 = vmatprep.mubr.msk.bf16.mxu0 %vm2360_vm1, %v2309_v38 }
 0x29d   : > { %7524 = vmatmul.mubr.msk.bf16.gmra.mrb[136].mxu0 %vm2360_vm1, %v2310_v23 }
 0x2a2   : > { %v7489_v37 = vpop.f32.mrb[108].mxu1 }
 0x2a3   : > { %v2203_v52 = vadd.f32 %v7489_v37, %v9544_v36  ;;  %v2194_v42 = vpop.f32.mrb[109].mxu1 }
 0x2a4   : > { %v2195_v4 = vadd.f32 %v9544_v36, %v2194_v42  ;;  %v7490_v55 = vpop.f32.mrb[110].mxu1 }
 0x2a5   : > { %v2206_v45 = vadd.f32 %v7490_v55, %v9544_v36  ;;  %v2197_v8 = vpop.f32.mrb[111].mxu1  ;;  %v2287_v13 = vmax.f32 %v2203_v52, 0.0 }
 0x2a6   : > { %v2198_v51 = vadd.f32 %v9544_v36, %v2197_v8  ;;  %v2285_v63 = vmax.f32 %v2195_v4, 0.0 }
 0x2a7   : > { %v2288_v20 = vmax.f32 %v2206_v45, 0.0 }
 0x2a8   : > { %v2286_v24 = vmax.f32 %v2198_v51, 0.0  ;;  %v2862_v51 = vld [vmem:[%s11281_s5] sm:$0x3] }
 0x2a9   : > { %v2312_v25 = vpack.c.bf16 %v2288_v20, %v2287_v13  ;;  %v8809_v13 = vmov 65535  }
 0x2aa   : > { %v2311_v1 = vpack.c.bf16 %v2286_v24, %v2285_v63  ;;  %v2921_v20 = vsel %vm2919_vm2, 4294967295, %v8809_v13 }
 0x2ab   : > { %v2922_v63 = vsel %vm2920_vm3, %v2921_v20, 0 }
 0x2ac   : > { %7527 = vmatprep.mubr.msk.bf16.mxu0 %vm2360_vm1, %v2311_v1  ;;  %v2924_v24 = vand.u32 %v2922_v63, %v2862_v51 }
 0x2ad   : > { %7528 = vmatmul.mubr.msk.bf16.gmra.mrb[140].mxu0 %vm2360_vm1, %v2312_v25 }
 0x2ae   : > { %7581 = vmatprep.subr.bf16.mxu0 %v2924_v24 }
 0x2af   : > { %7582 = vmatpush3.bf16.msra.mxu0 %v2924_v24 }
 0x2b2   : > { %v7493_v18 = vpop.f32.mrb[112].mxu1 }
 0x2b3   : > { %v2219_v5 = vadd.f32 %v7493_v18, %v9544_v36  ;;  %v2210_v27 = vpop.f32.mrb[113].mxu1 }
 0x2b4   : > { %v2211_v9 = vadd.f32 %v9544_v36, %v2210_v27  ;;  %v7494_v28 = vpop.f32.mrb[114].mxu1 }
 0x2b5   : > { %v2222_v32 = vadd.f32 %v7494_v28, %v9544_v36  ;;  %v2213_v29 = vpop.f32.mrb[115].mxu1  ;;  %v2291_v6 = vmax.f32 %v2219_v5, 0.0 }
 0x2b6   : > { %v2214_v7 = vadd.f32 %v9544_v36, %v2213_v29  ;;  %v2289_v26 = vmax.f32 %v2211_v9, 0.0 }
 0x2b7   : > { %v2292_v33 = vmax.f32 %v2222_v32, 0.0 }
 0x2b8   : > { %v2290_v44 = vmax.f32 %v2214_v7, 0.0 }
 0x2b9   : > { %v2314_v31 = vpack.c.bf16 %v2292_v33, %v2291_v6 }
 0x2ba   : > { %v2313_v40 = vpack.c.bf16 %v2290_v44, %v2289_v26 }
 0x2bc   : > { %7531 = vmatprep.mubr.msk.bf16.mxu0 %vm2360_vm1, %v2313_v40 }
 0x2bd   : > { %7532 = vmatmul.mubr.msk.bf16.gmra.mrb[144].mxu0 %vm2360_vm1, %v2314_v31 }
 0x2c2   : > { %v7497_v14 = vpop.f32.mrb[116].mxu1 }
 0x2c3   : > { %v2235_v17 = vadd.f32 %v7497_v14, %v9544_v36  ;;  %v2226_v30 = vpop.f32.mrb[117].mxu1 }
 0x2c4   : > { %v2227_v41 = vadd.f32 %v9544_v36, %v2226_v30  ;;  %v7498_v43 = vpop.f32.mrb[118].mxu1 }
 0x2c5   : > { %v2238_v19 = vadd.f32 %v7498_v43, %v9544_v36  ;;  %v2229_v16 = vpop.f32.mrb[119].mxu1  ;;  %v2295_v57 = vmax.f32 %v2235_v17, 0.0 }
 0x2c6   : > { %v2230_v46 = vadd.f32 %v9544_v36, %v2229_v16  ;;  %v2293_v34 = vmax.f32 %v2227_v41, 0.0 }
 0x2c7   : > { %v2296_v49 = vmax.f32 %v2238_v19, 0.0 }
 0x2c8   : > { %v2294_v54 = vmax.f32 %v2230_v46, 0.0 }
 0x2c9   : > { %v2316_v21 = vpack.c.bf16 %v2296_v49, %v2295_v57 }
 0x2ca   : > { %v2315_v59 = vpack.c.bf16 %v2294_v54, %v2293_v34 }
 0x2cc   : > { %7535 = vmatprep.mubr.msk.bf16.mxu0 %vm2360_vm1, %v2315_v59 }
 0x2cd   : > { %7536 = vmatmul.mubr.msk.bf16.gmra.mrb[148].mxu0 %vm2360_vm1, %v2316_v21 }
 0x2d2   : > { %v7501_v22 = vpop.f32.mrb[120].mxu1 }
 0x2d3   : > { %v2251_v39 = vadd.f32 %v7501_v22, %v9544_v36  ;;  %v2242_v58 = vpop.f32.mrb[121].mxu1 }
 0x2d4   : > { %v2243_v60 = vadd.f32 %v9544_v36, %v2242_v58  ;;  %v7502_v47 = vpop.f32.mrb[122].mxu1 }
 0x2d5   : > { %v2254_v53 = vadd.f32 %v7502_v47, %v9544_v36  ;;  %v2245_v50 = vpop.f32.mrb[123].mxu1  ;;  %v2299_v11 = vmax.f32 %v2251_v39, 0.0 }
 0x2d6   : > { %v2246_v61 = vadd.f32 %v9544_v36, %v2245_v50  ;;  %v2297_v15 = vmax.f32 %v2243_v60, 0.0 }
 0x2d7   : > { %v2300_v35 = vmax.f32 %v2254_v53, 0.0 }
 0x2d8   : > { %v2298_v56 = vmax.f32 %v2246_v61, 0.0 }
 0x2d9   : > { %v2318_v48 = vpack.c.bf16 %v2300_v35, %v2299_v11 }
 0x2da   : > { %v2317_v62 = vpack.c.bf16 %v2298_v56, %v2297_v15 }
 0x2dc   : > { %7539 = vmatprep.mubr.msk.bf16.mxu0 %vm2360_vm1, %v2317_v62 }
 0x2dd   : > { %7540 = vmatmul.mubr.msk.bf16.gmra.mrb[152].mxu0 %vm2360_vm1, %v2318_v48 }
 0x2e2   : > { %v7505_v0 = vpop.f32.mrb[124].mxu1 }
 0x2e3   : > { %v2267_v12 = vadd.f32 %v7505_v0, %v9544_v36  ;;  %v2258_v2 = vpop.f32.mrb[125].mxu1 }
 0x2e4   : > { %v2259_v3 = vadd.f32 %v9544_v36, %v2258_v2  ;;  %v7506_v10 = vpop.f32.mrb[126].mxu1 }
 0x2e5   : > { %v2270_v23 = vadd.f32 %v7506_v10, %v9544_v36  ;;  %v2261_v38 = vpop.f32.mrb[127].mxu1  ;;  %v2303_v52 = vmax.f32 %v2267_v12, 0.0 }
 0x2e6   : > { %v2262_v37 = vadd.f32 %v9544_v36, %v2261_v38  ;;  %v2301_v4 = vmax.f32 %v2259_v3, 0.0  ;;  %v9600_v36 = vld [vmem:[%s11287_s11] ss:$0 sm:$0xff] }
 0x2e7   : > { %v2304_v42 = vmax.f32 %v2270_v23, 0.0 }
 0x2e8   : > { %v2302_v55 = vmax.f32 %v2262_v37, 0.0 }
 0x2e9   : > { %v2320_v45 = vpack.c.bf16 %v2304_v42, %v2303_v52 }
 0x2ea   : > { %v2319_v8 = vpack.c.bf16 %v2302_v55, %v2301_v4 }
 0x2ec   : > { %7543 = vmatprep.mubr.msk.bf16.mxu0 %vm2360_vm1, %v2319_v8 }
 0x2ed   : > { %7544 = vmatmul.mubr.msk.bf16.gmra.mrb[156].mxu0 %vm2360_vm1, %v2320_v45 }
 0x350   : > { %v7517_v25 = vpop.f32.mrb[128].mxu0 }
 0x351   : > { %v2452_v1 = vadd.f32 %v7517_v25, %v9600_v36  ;;  %v2443_v18 = vpop.f32.mrb[129].mxu0 }
 0x352   : > { %v2444_v5 = vadd.f32 %v9600_v36, %v2443_v18  ;;  %v7518_v27 = vpop.f32.mrb[130].mxu0 }
 0x353   : > { %v2455_v9 = vadd.f32 %v7518_v27, %v9600_v36  ;;  %v2446_v28 = vpop.f32.mrb[131].mxu0  ;;  %v2572_v29 = vmax.f32 %v2452_v1, 0.0 }
 0x354   : > { %v2447_v32 = vadd.f32 %v9600_v36, %v2446_v28  ;;  %v2570_v6 = vmax.f32 %v2444_v5, 0.0 }
 0x355   : > { %v2573_v7 = vmax.f32 %v2455_v9, 0.0 }
 0x356   : > { %v2571_v33 = vmax.f32 %v2447_v32, 0.0 }
 0x357   : > { %v2603_v26 = vpack.c.bf16 %v2573_v7, %v2572_v29 }
 0x358   : > { %v2602_v44 = vpack.c.bf16 %v2571_v33, %v2570_v6 }
 0x35a   : > { %7549 = vmatprep.mubr.msk.bf16.mxu1 %vm2632_vm4, %v2602_v44 }
 0x35b   : > { %7550 = vmatmul.mubr.msk.bf16.vlgmr.msra.gmra.mrb[128].mxu1 %vm2632_vm4, %v2603_v26 }
 0x360   : > { %v7521_v31 = vpop.f32.mrb[132].mxu0 }
 0x361   : > { %v2468_v40 = vadd.f32 %v7521_v31, %v9600_v36  ;;  %v2459_v14 = vpop.f32.mrb[133].mxu0 }
 0x362   : > { %v2460_v17 = vadd.f32 %v9600_v36, %v2459_v14  ;;  %v7522_v30 = vpop.f32.mrb[134].mxu0 }
 0x363   : > { %v2471_v41 = vadd.f32 %v7522_v30, %v9600_v36  ;;  %v2462_v43 = vpop.f32.mrb[135].mxu0  ;;  %v2576_v16 = vmax.f32 %v2468_v40, 0.0 }
 0x364   : > { %v2463_v19 = vadd.f32 %v9600_v36, %v2462_v43  ;;  %v2574_v57 = vmax.f32 %v2460_v17, 0.0 }
 0x365   : > { %v2577_v46 = vmax.f32 %v2471_v41, 0.0 }
 0x366   : > { %v2575_v49 = vmax.f32 %v2463_v19, 0.0 }
 0x367   : > { %v2605_v34 = vpack.c.bf16 %v2577_v46, %v2576_v16 }
 0x368   : > { %v2604_v54 = vpack.c.bf16 %v2575_v49, %v2574_v57 }
 0x36a   : > { %7553 = vmatprep.mubr.msk.bf16.mxu1 %vm2632_vm4, %v2604_v54 }
 0x36b   : > { %7554 = vmatmul.mubr.msk.bf16.gmra.mrb[132].mxu1 %vm2632_vm4, %v2605_v34 }
 0x370   : > { %v7525_v21 = vpop.f32.mrb[136].mxu0 }
 0x371   : > { %v2484_v59 = vadd.f32 %v7525_v21, %v9600_v36  ;;  %v2475_v22 = vpop.f32.mrb[137].mxu0 }
 0x372   : > { %v2476_v39 = vadd.f32 %v9600_v36, %v2475_v22  ;;  %v7526_v58 = vpop.f32.mrb[138].mxu0 }
 0x373   : > { %v2487_v60 = vadd.f32 %v7526_v58, %v9600_v36  ;;  %v2478_v47 = vpop.f32.mrb[139].mxu0  ;;  %v2580_v50 = vmax.f32 %v2484_v59, 0.0 }
 0x374   : > { %v2479_v53 = vadd.f32 %v9600_v36, %v2478_v47  ;;  %v2578_v11 = vmax.f32 %v2476_v39, 0.0 }
 0x375   : > { %v2581_v61 = vmax.f32 %v2487_v60, 0.0 }
 0x376   : > { %v2579_v35 = vmax.f32 %v2479_v53, 0.0 }
 0x377   : > { %v2607_v15 = vpack.c.bf16 %v2581_v61, %v2580_v50 }
 0x378   : > { %v2606_v56 = vpack.c.bf16 %v2579_v35, %v2578_v11 }
 0x37a   : > { %7557 = vmatprep.mubr.msk.bf16.mxu1 %vm2632_vm4, %v2606_v56 }
 0x37b   : > { %7558 = vmatmul.mubr.msk.bf16.gmra.mrb[136].mxu1 %vm2632_vm4, %v2607_v15 }
 0x380   : > { %v7529_v48 = vpop.f32.mrb[140].mxu0 }
 0x381   : > { %v2500_v62 = vadd.f32 %v7529_v48, %v9600_v36  ;;  %v2491_v0 = vpop.f32.mrb[141].mxu0 }
 0x382   : > { %v2492_v12 = vadd.f32 %v9600_v36, %v2491_v0  ;;  %v7530_v2 = vpop.f32.mrb[142].mxu0 }
 0x383   : > { %v2503_v3 = vadd.f32 %v7530_v2, %v9600_v36  ;;  %v2494_v10 = vpop.f32.mrb[143].mxu0  ;;  %v2584_v38 = vmax.f32 %v2500_v62, 0.0 }
 0x384   : > { %v2495_v23 = vadd.f32 %v9600_v36, %v2494_v10  ;;  %v2582_v52 = vmax.f32 %v2492_v12, 0.0 }
 0x385   : > { %v2585_v37 = vmax.f32 %v2503_v3, 0.0 }
 0x386   : > { %v2583_v42 = vmax.f32 %v2495_v23, 0.0  ;;  %v7819_v23 = vld [vmem:[%s11282_s6] sm:$0x3f]  }
 0x387   : > { %v2609_v4 = vpack.c.bf16 %v2585_v37, %v2584_v38  ;;  %7738 = vmatprep.subr.msk.bf16.mxu1 %vm2681_vm0, %v7819_v23  ;;  %v3198_v38 = vsel %vm2681_vm0, %v7819_v23, 0  ;;  %v9658_v37 = vld [vmem:[%s11288_s12] ss:$0 sm:$0xff] }
 0x388   : > { %v2608_v55 = vpack.c.bf16 %v2583_v42, %v2582_v52  ;;  %7616 = vmatpush3.bf16.msra.mxu1 %v3198_v38 }
 0x38a   : > { %7561 = vmatprep.mubr.msk.bf16.mxu1 %vm2632_vm4, %v2608_v55 }
 0x38b   : > { %7562 = vmatmul.mubr.msk.bf16.gmra.mrb[140].mxu1 %vm2632_vm4, %v2609_v4 }
 0x390   : > { %v7533_v45 = vpop.f32.mrb[144].mxu0 }
 0x391   : > { %v2516_v8 = vadd.f32 %v7533_v45, %v9600_v36  ;;  %v2507_v51 = vpop.f32.mrb[145].mxu0 }
 0x392   : > { %v2508_v13 = vadd.f32 %v9600_v36, %v2507_v51  ;;  %v7534_v20 = vpop.f32.mrb[146].mxu0 }
 0x393   : > { %v2519_v63 = vadd.f32 %v7534_v20, %v9600_v36  ;;  %v2510_v24 = vpop.f32.mrb[147].mxu0  ;;  %v2588_v1 = vmax.f32 %v2516_v8, 0.0 }
 0x394   : > { %v2511_v25 = vadd.f32 %v9600_v36, %v2510_v24  ;;  %v2586_v5 = vmax.f32 %v2508_v13, 0.0 }
 0x395   : > { %v2589_v18 = vmax.f32 %v2519_v63, 0.0 }
 0x396   : > { %v2587_v27 = vmax.f32 %v2511_v25, 0.0 }
 0x397   : > { %v2611_v9 = vpack.c.bf16 %v2589_v18, %v2588_v1 }
 0x398   : > { %v2610_v28 = vpack.c.bf16 %v2587_v27, %v2586_v5 }
 0x39a   : > { %7565 = vmatprep.mubr.msk.bf16.mxu1 %vm2632_vm4, %v2610_v28 }
 0x39b   : > { %7566 = vmatmul.mubr.msk.bf16.gmra.mrb[144].mxu1 %vm2632_vm4, %v2611_v9 }
 0x3a0   : > { %v7537_v32 = vpop.f32.mrb[148].mxu0 }
 0x3a1   : > { %v2532_v29 = vadd.f32 %v7537_v32, %v9600_v36  ;;  %v2523_v7 = vpop.f32.mrb[149].mxu0 }
 0x3a2   : > { %v2524_v6 = vadd.f32 %v9600_v36, %v2523_v7  ;;  %v7538_v33 = vpop.f32.mrb[150].mxu0 }
 0x3a3   : > { %v2535_v26 = vadd.f32 %v7538_v33, %v9600_v36  ;;  %v2526_v44 = vpop.f32.mrb[151].mxu0  ;;  %v2592_v40 = vmax.f32 %v2532_v29, 0.0 }
 0x3a4   : > { %v2527_v31 = vadd.f32 %v9600_v36, %v2526_v44  ;;  %v2590_v17 = vmax.f32 %v2524_v6, 0.0 }
 0x3a5   : > { %v2593_v14 = vmax.f32 %v2535_v26, 0.0 }
 0x3a6   : > { %v2591_v30 = vmax.f32 %v2527_v31, 0.0 }
 0x3a7   : > { %v2613_v41 = vpack.c.bf16 %v2593_v14, %v2592_v40 }
 0x3a8   : > { %v2612_v43 = vpack.c.bf16 %v2591_v30, %v2590_v17 }
 0x3aa   : > { %7569 = vmatprep.mubr.msk.bf16.mxu1 %vm2632_vm4, %v2612_v43 }
 0x3ab   : > { %7570 = vmatmul.mubr.msk.bf16.gmra.mrb[148].mxu1 %vm2632_vm4, %v2613_v41 }
 0x3b0   : > { %v7541_v19 = vpop.f32.mrb[152].mxu0 }
 0x3b1   : > { %v2548_v16 = vadd.f32 %v7541_v19, %v9600_v36  ;;  %v2539_v46 = vpop.f32.mrb[153].mxu0 }
 0x3b2   : > { %v2540_v57 = vadd.f32 %v9600_v36, %v2539_v46  ;;  %v7542_v49 = vpop.f32.mrb[154].mxu0 }
 0x3b3   : > { %v2551_v34 = vadd.f32 %v7542_v49, %v9600_v36  ;;  %v2542_v54 = vpop.f32.mrb[155].mxu0  ;;  %v2596_v59 = vmax.f32 %v2548_v16, 0.0 }
 0x3b4   : > { %v2543_v21 = vadd.f32 %v9600_v36, %v2542_v54  ;;  %v2594_v39 = vmax.f32 %v2540_v57, 0.0 }
 0x3b5   : > { %v2597_v22 = vmax.f32 %v2551_v34, 0.0 }
 0x3b6   : > { %v2595_v58 = vmax.f32 %v2543_v21, 0.0 }
 0x3b7   : > { %v2615_v60 = vpack.c.bf16 %v2597_v22, %v2596_v59 }
 0x3b8   : > { %v2614_v47 = vpack.c.bf16 %v2595_v58, %v2594_v39 }
 0x3ba   : > { %7573 = vmatprep.mubr.msk.bf16.mxu1 %vm2632_vm4, %v2614_v47 }
 0x3bb   : > { %7574 = vmatmul.mubr.msk.bf16.gmra.mrb[152].mxu1 %vm2632_vm4, %v2615_v60 }
 0x3c0   : > { %v7545_v53 = vpop.f32.mrb[156].mxu0 }
 0x3c1   : > { %v2564_v50 = vadd.f32 %v7545_v53, %v9600_v36  ;;  %v2555_v61 = vpop.f32.mrb[157].mxu0 }
 0x3c2   : > { %v2556_v11 = vadd.f32 %v9600_v36, %v2555_v61  ;;  %v7546_v35 = vpop.f32.mrb[158].mxu0 }
 0x3c3   : > { %v2567_v15 = vadd.f32 %v7546_v35, %v9600_v36  ;;  %v2558_v56 = vpop.f32.mrb[159].mxu0  ;;  %v2600_v62 = vmax.f32 %v2564_v50, 0.0 }
 0x3c4   : > { %v2559_v48 = vadd.f32 %v9600_v36, %v2558_v56  ;;  %v2598_v12 = vmax.f32 %v2556_v11, 0.0 }
 0x3c5   : > { %v2601_v0 = vmax.f32 %v2567_v15, 0.0 }
 0x3c6   : > { %v2599_v2 = vmax.f32 %v2559_v48, 0.0 }
 0x3c7   : > { %v2617_v3 = vpack.c.bf16 %v2601_v0, %v2600_v62 }
 0x3c8   : > { %v2616_v10 = vpack.c.bf16 %v2599_v2, %v2598_v12 }
 0x3ca   : > { %7577 = vmatprep.mubr.msk.bf16.mxu1 %vm2632_vm4, %v2616_v10 }
 0x3cb   : > { %7578 = vmatmul.mubr.msk.bf16.gmra.mrb[156].mxu1 %vm2632_vm4, %v2617_v3 }
 0x42e   : > { %v7551_v36 = vpop.f32.mrb[128].mxu1 }
 0x42f   : > { %v2719_v52 = vpop.f32.mrb[129].mxu1  ;;  %v2728_v4 = vadd.f32 %v7551_v36, %v9658_v37 }
 0x430   : > { %v7552_v42 = vpop.f32.mrb[130].mxu1  ;;  %v2720_v8 = vadd.f32 %v9658_v37, %v2719_v52 }
 0x431   : > { %v2731_v55 = vadd.f32 %v7552_v42, %v9658_v37  ;;  %v2722_v45 = vpop.f32.mrb[131].mxu1 }
 0x432   : > { %v2723_v51 = vadd.f32 %v9658_v37, %v2722_v45 }
 0x433   : > { %v2847_v13 = vpack.c.bf16 %v2731_v55, %v2728_v4 }
 0x434   : > { %v2846_v20 = vpack.c.bf16 %v2723_v51, %v2720_v8 }
 0x436   : > { %7583 = vmatprep.mubr.msk.bf16.mxu0 %vm2870_vm5, %v2846_v20 }
 0x437   : > { %7584 = vmatmul.mubr.msk.bf16.vlgmr.msra.gmra.mrb[160].mxu0 %vm2870_vm5, %v2847_v13 }
 0x43e   : > { %v7555_v63 = vpop.f32.mrb[132].mxu1 }
 0x43f   : > { %v2735_v24 = vpop.f32.mrb[133].mxu1  ;;  %v2744_v1 = vadd.f32 %v7555_v63, %v9658_v37 }
 0x440   : > { %v7556_v25 = vpop.f32.mrb[134].mxu1  ;;  %v2736_v27 = vadd.f32 %v9658_v37, %v2735_v24 }
 0x441   : > { %v2747_v18 = vadd.f32 %v7556_v25, %v9658_v37  ;;  %v2738_v5 = vpop.f32.mrb[135].mxu1 }
 0x442   : > { %v2739_v9 = vadd.f32 %v9658_v37, %v2738_v5 }
 0x443   : > { %v2849_v28 = vpack.c.bf16 %v2747_v18, %v2744_v1 }
 0x444   : > { %v2848_v32 = vpack.c.bf16 %v2739_v9, %v2736_v27  ;;  %v7820_v9 = vld [vmem:[%s11283_s7] sm:$0xff]  }
 0x445   : > { %7649 = vmatprep.subr.bf16.mxu0 %v7820_v9 }
 0x446   : > { %7587 = vmatprep.mubr.msk.bf16.mxu0 %vm2870_vm5, %v2848_v32  ;;  %v9717_v32 = vld [vmem:[%s11289_s13] ss:$0 sm:$0xff]  ;;  %7650 = vmatpush3.bf16.msra.mxu0 %v7820_v9 }
 0x447   : > { %7588 = vmatmul.mubr.msk.bf16.gmra.mrb[164].mxu0 %vm2870_vm5, %v2849_v28  ;;  %v7821_v28 = vld [vmem:[%s11283_s7 + $0x8] sm:$0xff]  }
 0x448   : > { %7651 = vmatprep.subr.bf16.mxu0 %v7821_v28 }
 0x44a   : > { %7652 = vmatpush3.bf16.msra.mxu0 %v7821_v28 }
 0x44e   : > { %v7559_v29 = vpop.f32.mrb[136].mxu1 }
 0x44f   : > { %v2751_v7 = vpop.f32.mrb[137].mxu1  ;;  %v2760_v33 = vadd.f32 %v7559_v29, %v9658_v37 }
 0x450   : > { %v7560_v6 = vpop.f32.mrb[138].mxu1  ;;  %v2752_v31 = vadd.f32 %v9658_v37, %v2751_v7 }
 0x451   : > { %v2763_v26 = vadd.f32 %v7560_v6, %v9658_v37  ;;  %v2754_v44 = vpop.f32.mrb[139].mxu1 }
 0x452   : > { %v2755_v40 = vadd.f32 %v9658_v37, %v2754_v44 }
 0x453   : > { %v2851_v14 = vpack.c.bf16 %v2763_v26, %v2760_v33 }
 0x454   : > { %v2850_v17 = vpack.c.bf16 %v2755_v40, %v2752_v31  ;;  %v7823_v40 = vld [vmem:[%s11283_s7 + $0x18] sm:$0xff]  }
 0x456   : > { %7591 = vmatprep.mubr.msk.bf16.mxu0 %vm2870_vm5, %v2850_v17 }
 0x457   : > { %7592 = vmatmul.mubr.msk.bf16.gmra.mrb[168].mxu0 %vm2870_vm5, %v2851_v14 }
 0x45e   : > { %v7563_v30 = vpop.f32.mrb[140].mxu1 }
 0x45f   : > { %v2767_v41 = vpop.f32.mrb[141].mxu1  ;;  %v2776_v19 = vadd.f32 %v7563_v30, %v9658_v37 }
 0x460   : > { %v7564_v43 = vpop.f32.mrb[142].mxu1  ;;  %v2768_v57 = vadd.f32 %v9658_v37, %v2767_v41 }
 0x461   : > { %v2779_v16 = vadd.f32 %v7564_v43, %v9658_v37  ;;  %v2770_v46 = vpop.f32.mrb[143].mxu1 }
 0x462   : > { %v2771_v49 = vadd.f32 %v9658_v37, %v2770_v46 }
 0x463   : > { %v2853_v34 = vpack.c.bf16 %v2779_v16, %v2776_v19 }
 0x464   : > { %v2852_v54 = vpack.c.bf16 %v2771_v49, %v2768_v57 }
 0x466   : > { %7595 = vmatprep.mubr.msk.bf16.mxu0 %vm2870_vm5, %v2852_v54 }
 0x467   : > { %7596 = vmatmul.mubr.msk.bf16.gmra.mrb[172].mxu0 %vm2870_vm5, %v2853_v34 }
 0x46e   : > { %v7567_v21 = vpop.f32.mrb[144].mxu1 }
 0x46f   : > { %v2783_v59 = vpop.f32.mrb[145].mxu1  ;;  %v2792_v39 = vadd.f32 %v7567_v21, %v9658_v37 }
 0x470   : > { %v7568_v22 = vpop.f32.mrb[146].mxu1  ;;  %v2784_v47 = vadd.f32 %v9658_v37, %v2783_v59 }
 0x471   : > { %v2795_v58 = vadd.f32 %v7568_v22, %v9658_v37  ;;  %v2786_v60 = vpop.f32.mrb[147].mxu1 }
 0x472   : > { %v2787_v53 = vadd.f32 %v9658_v37, %v2786_v60 }
 0x473   : > { %v2855_v50 = vpack.c.bf16 %v2795_v58, %v2792_v39 }
 0x474   : > { %v2854_v61 = vpack.c.bf16 %v2787_v53, %v2784_v47 }
 0x476   : > { %7599 = vmatprep.mubr.msk.bf16.mxu0 %vm2870_vm5, %v2854_v61 }
 0x477   : > { %7600 = vmatmul.mubr.msk.bf16.gmra.mrb[176].mxu0 %vm2870_vm5, %v2855_v50 }
 0x47e   : > { %v7571_v11 = vpop.f32.mrb[148].mxu1 }
 0x47f   : > { %v2799_v35 = vpop.f32.mrb[149].mxu1  ;;  %v2808_v56 = vadd.f32 %v7571_v11, %v9658_v37 }
 0x480   : > { %v7572_v15 = vpop.f32.mrb[150].mxu1  ;;  %v2800_v0 = vadd.f32 %v9658_v37, %v2799_v35 }
 0x481   : > { %v2811_v48 = vadd.f32 %v7572_v15, %v9658_v37  ;;  %v2802_v62 = vpop.f32.mrb[151].mxu1 }
 0x482   : > { %v2803_v12 = vadd.f32 %v9658_v37, %v2802_v62 }
 0x483   : > { %v2857_v2 = vpack.c.bf16 %v2811_v48, %v2808_v56 }
 0x484   : > { %v2856_v3 = vpack.c.bf16 %v2803_v12, %v2800_v0 }
 0x486   : > { %7603 = vmatprep.mubr.msk.bf16.mxu0 %vm2870_vm5, %v2856_v3 }
 0x487   : > { %7604 = vmatmul.mubr.msk.bf16.gmra.mrb[180].mxu0 %vm2870_vm5, %v2857_v2 }
 0x48e   : > { %v7575_v10 = vpop.f32.mrb[152].mxu1 }
 0x48f   : > { %v2815_v23 = vpop.f32.mrb[153].mxu1  ;;  %v2824_v36 = vadd.f32 %v7575_v10, %v9658_v37 }
 0x490   : > { %v7576_v38 = vpop.f32.mrb[154].mxu1  ;;  %v2816_v4 = vadd.f32 %v9658_v37, %v2815_v23 }
 0x491   : > { %v2827_v52 = vadd.f32 %v7576_v38, %v9658_v37  ;;  %v2818_v42 = vpop.f32.mrb[155].mxu1 }
 0x492   : > { %v2819_v55 = vadd.f32 %v9658_v37, %v2818_v42 }
 0x493   : > { %v2859_v45 = vpack.c.bf16 %v2827_v52, %v2824_v36 }
 0x494   : > { %v2858_v8 = vpack.c.bf16 %v2819_v55, %v2816_v4 }
 0x496   : > { %7607 = vmatprep.mubr.msk.bf16.mxu0 %vm2870_vm5, %v2858_v8 }
 0x497   : > { %7608 = vmatmul.mubr.msk.bf16.gmra.mrb[184].mxu0 %vm2870_vm5, %v2859_v45 }
 0x49e   : > { %v7579_v51 = vpop.f32.mrb[156].mxu1 }
 0x49f   : > { %v2831_v13 = vpop.f32.mrb[157].mxu1  ;;  %v2840_v63 = vadd.f32 %v7579_v51, %v9658_v37 }
 0x4a0   : > { %v7580_v20 = vpop.f32.mrb[158].mxu1  ;;  %v2832_v1 = vadd.f32 %v9658_v37, %v2831_v13 }
 0x4a1   : > { %v2843_v24 = vadd.f32 %v7580_v20, %v9658_v37  ;;  %v2834_v25 = vpop.f32.mrb[159].mxu1 }
 0x4a2   : > { %v2835_v18 = vadd.f32 %v9658_v37, %v2834_v25  ;;  %v7822_v37 = vld [vmem:[%s11283_s7 + $0x10] sm:$0xff]  }
 0x4a3   : > { %v2861_v5 = vpack.c.bf16 %v2843_v24, %v2840_v63  ;;  %7653 = vmatprep.subr.bf16.mxu0 %v7822_v37 }
 0x4a4   : > { %v2860_v27 = vpack.c.bf16 %v2835_v18, %v2832_v1  ;;  %7654 = vmatpush3.bf16.msra.mxu0 %v7822_v37 }
 0x4a5   : > { %7655 = vmatprep.subr.bf16.mxu0 %v7823_v40 }
 0x4a6   : > { %7611 = vmatprep.mubr.msk.bf16.mxu0 %vm2870_vm5, %v2860_v27 }
 0x4a7   : > { %7612 = vmatmul.mubr.msk.bf16.gmra.mrb[188].mxu0 %vm2870_vm5, %v2861_v5 }
 0x4a8   : > { %7656 = vmatpush3.bf16.msra.mxu0 %v7823_v40 }
 0x50a   : > { %v7585_v29 = vpop.f32.mrb[160].mxu0 }
 0x50b   : > { %v2969_v7 = vadd.f32 %v7585_v29, %v9717_v32  ;;  %v2960_v6 = vpop.f32.mrb[161].mxu0 }
 0x50c   : > { %v2961_v33 = vadd.f32 %v9717_v32, %v2960_v6  ;;  %v7586_v26 = vpop.f32.mrb[162].mxu0 }
 0x50d   : > { %v2972_v44 = vadd.f32 %v7586_v26, %v9717_v32  ;;  %v2963_v31 = vpop.f32.mrb[163].mxu0  ;;  %v3089_v17 = vmax.f32 %v2969_v7, 0.0 }
 0x50e   : > { %v2964_v14 = vadd.f32 %v9717_v32, %v2963_v31  ;;  %v3087_v41 = vmax.f32 %v2961_v33, 0.0 }
 0x50f   : > { %v3090_v30 = vmax.f32 %v2972_v44, 0.0 }
 0x510   : > { %v3088_v43 = vmax.f32 %v2964_v14, 0.0 }
 0x511   : > { %v3120_v19 = vpack.c.bf16 %v3090_v30, %v3089_v17 }
 0x512   : > { %v3119_v16 = vpack.c.bf16 %v3088_v43, %v3087_v41 }
 0x514   : > { %7617 = vmatprep.mubr.msk.bf16.mxu1 %vm2632_vm4, %v3119_v16 }
 0x515   : > { %7618 = vmatmul.mubr.msk.bf16.vlgmr.msra.gmra.mrb[160].mxu1 %vm2632_vm4, %v3120_v19 }
 0x51a   : > { %v7589_v46 = vpop.f32.mrb[164].mxu0 }
 0x51b   : > { %v2985_v57 = vadd.f32 %v7589_v46, %v9717_v32  ;;  %v2976_v49 = vpop.f32.mrb[165].mxu0 }
 0x51c   : > { %v2977_v34 = vadd.f32 %v9717_v32, %v2976_v49  ;;  %v7590_v54 = vpop.f32.mrb[166].mxu0 }
 0x51d   : > { %v2988_v21 = vadd.f32 %v7590_v54, %v9717_v32  ;;  %v2979_v59 = vpop.f32.mrb[167].mxu0  ;;  %v3093_v39 = vmax.f32 %v2985_v57, 0.0 }
 0x51e   : > { %v2980_v22 = vadd.f32 %v9717_v32, %v2979_v59  ;;  %v3091_v60 = vmax.f32 %v2977_v34, 0.0 }
 0x51f   : > { %v3094_v58 = vmax.f32 %v2988_v21, 0.0 }
 0x520   : > { %v3092_v47 = vmax.f32 %v2980_v22, 0.0 }
 0x521   : > { %v3122_v53 = vpack.c.bf16 %v3094_v58, %v3093_v39 }
 0x522   : > { %v3121_v50 = vpack.c.bf16 %v3092_v47, %v3091_v60 }
 0x524   : > { %7621 = vmatprep.mubr.msk.bf16.mxu1 %vm2632_vm4, %v3121_v50 }
 0x525   : > { %7622 = vmatmul.mubr.msk.bf16.gmra.mrb[164].mxu1 %vm2632_vm4, %v3122_v53 }
 0x52a   : > { %v7593_v61 = vpop.f32.mrb[168].mxu0 }
 0x52b   : > { %v3001_v11 = vadd.f32 %v7593_v61, %v9717_v32  ;;  %v2992_v35 = vpop.f32.mrb[169].mxu0 }
 0x52c   : > { %v2993_v15 = vadd.f32 %v9717_v32, %v2992_v35  ;;  %v7594_v56 = vpop.f32.mrb[170].mxu0 }
 0x52d   : > { %v3004_v48 = vadd.f32 %v7594_v56, %v9717_v32  ;;  %v2995_v62 = vpop.f32.mrb[171].mxu0  ;;  %v3097_v12 = vmax.f32 %v3001_v11, 0.0 }
 0x52e   : > { %v2996_v0 = vadd.f32 %v9717_v32, %v2995_v62  ;;  %v3095_v3 = vmax.f32 %v2993_v15, 0.0 }
 0x52f   : > { %v3098_v2 = vmax.f32 %v3004_v48, 0.0 }
 0x530   : > { %v3096_v10 = vmax.f32 %v2996_v0, 0.0 }
 0x531   : > { %v3124_v23 = vpack.c.bf16 %v3098_v2, %v3097_v12 }
 0x532   : > { %v3123_v38 = vpack.c.bf16 %v3096_v10, %v3095_v3 }
 0x534   : > { %7625 = vmatprep.mubr.msk.bf16.mxu1 %vm2632_vm4, %v3123_v38 }
 0x535   : > { %7626 = vmatmul.mubr.msk.bf16.gmra.mrb[168].mxu1 %vm2632_vm4, %v3124_v23 }
 0x53a   : > { %v7597_v36 = vpop.f32.mrb[172].mxu0 }
 0x53b   : > { %v3017_v52 = vadd.f32 %v7597_v36, %v9717_v32  ;;  %v3008_v42 = vpop.f32.mrb[173].mxu0 }
 0x53c   : > { %v3009_v4 = vadd.f32 %v9717_v32, %v3008_v42  ;;  %v7598_v55 = vpop.f32.mrb[174].mxu0 }
 0x53d   : > { %v3020_v45 = vadd.f32 %v7598_v55, %v9717_v32  ;;  %v3011_v8 = vpop.f32.mrb[175].mxu0  ;;  %v3101_v13 = vmax.f32 %v3017_v52, 0.0 }
 0x53e   : > { %v3012_v51 = vadd.f32 %v9717_v32, %v3011_v8  ;;  %v3099_v63 = vmax.f32 %v3009_v4, 0.0 }
 0x53f   : > { %v3102_v20 = vmax.f32 %v3020_v45, 0.0 }
 0x540   : > { %v3100_v24 = vmax.f32 %v3012_v51, 0.0  ;;  %v7824_v51 = vld [vmem:[%s11284_s8] ss:$28 sps:$4 sm:$0xff]  }
 0x541   : > { %v3126_v25 = vpack.c.bf16 %v3102_v20, %v3101_v13  ;;  %v7826_v13 = vld [vmem:[%s11284_s8 + $0x4] ss:$28 sps:$4 sm:$0xff]  }
 0x542   : > { %v3125_v1 = vpack.c.bf16 %v3100_v24, %v3099_v63  ;;  %4094 = vmatprep.subr.bf16.mxu1 %v7826_v13  ;;  %v9785_v20 = vld [vmem:[%s11290_s14] ss:$0 sm:$0xff]  ;;  %v7827_v63 = vld [vmem:[%s11284_s8 + $0x38] ss:$28 sps:$4 sm:$0xff]   ;;  %v7841_v24 = vld [vmem:[%s11284_s8 + $0xc] ss:$28 sps:$4 sm:$0xff]  }
 0x543   : > { %4095 = vmatpush1.bf16.msra.mxu1 %v7824_v51  ;;  %4287 = vmatprep.subr.bf16.mxu0 %v7841_v24 }
 0x544   : > { %7629 = vmatprep.mubr.msk.bf16.mxu1 %vm2632_vm4, %v3125_v1 }
 0x545   : > { %7630 = vmatmul.mubr.msk.bf16.gmra.mrb[172].mxu1 %vm2632_vm4, %v3126_v25  ;;  %v7832_v25 = vld [vmem:[%s11284_s8 + $0x74] ss:$28 sps:$4 sm:$0xff]  }
 0x54a   : > { %v7601_v18 = vpop.f32.mrb[176].mxu0 }
 0x54b   : > { %v3033_v5 = vadd.f32 %v7601_v18, %v9717_v32  ;;  %v3024_v27 = vpop.f32.mrb[177].mxu0 }
 0x54c   : > { %v3025_v9 = vadd.f32 %v9717_v32, %v3024_v27  ;;  %v7602_v28 = vpop.f32.mrb[178].mxu0 }
 0x54d   : > { %v3036_v37 = vadd.f32 %v7602_v28, %v9717_v32  ;;  %v3027_v29 = vpop.f32.mrb[179].mxu0  ;;  %v3105_v6 = vmax.f32 %v3033_v5, 0.0  ;;  %v7830_v28 = vld [vmem:[%s11284_s8 + $0x70] ss:$28 sps:$4 sm:$0xff]  }
 0x54e   : > { %v3028_v7 = vadd.f32 %v9717_v32, %v3027_v29  ;;  %v3103_v26 = vmax.f32 %v3025_v9, 0.0 }
 0x54f   : > { %v3106_v33 = vmax.f32 %v3036_v37, 0.0 }
 0x550   : > { %v3104_v44 = vmax.f32 %v3028_v7, 0.0  ;;  %v7835_v7 = vld [vmem:[%s11284_s8 + $0xac] ss:$28 sps:$4 sm:$0xff]  }
 0x551   : > { %v3128_v31 = vpack.c.bf16 %v3106_v33, %v3105_v6 }
 0x552   : > { %v3127_v40 = vpack.c.bf16 %v3104_v44, %v3103_v26 }
 0x554   : > { %7633 = vmatprep.mubr.msk.bf16.mxu1 %vm2632_vm4, %v3127_v40  ;;  %v7833_v40 = vld [vmem:[%s11284_s8 + $0xa8] ss:$28 sps:$4 sm:$0xff]  }
 0x555   : > { %7634 = vmatmul.mubr.msk.bf16.gmra.mrb[176].mxu1 %vm2632_vm4, %v3128_v31 }
 0x55a   : > { %v7605_v14 = vpop.f32.mrb[180].mxu0 }
 0x55b   : > { %v3049_v17 = vadd.f32 %v7605_v14, %v9717_v32  ;;  %v3040_v30 = vpop.f32.mrb[181].mxu0 }
 0x55c   : > { %v3041_v41 = vadd.f32 %v9717_v32, %v3040_v30  ;;  %v7606_v43 = vpop.f32.mrb[182].mxu0 }
 0x55d   : > { %v3052_v19 = vadd.f32 %v7606_v43, %v9717_v32  ;;  %v3043_v16 = vpop.f32.mrb[183].mxu0  ;;  %v3109_v57 = vmax.f32 %v3049_v17, 0.0  ;;  %v7838_v17 = vld [vmem:[%s11284_s8 + $0xe4] ss:$28 sps:$4 sm:$0xff]  }
 0x55e   : > { %v3044_v46 = vadd.f32 %v9717_v32, %v3043_v16  ;;  %v3107_v34 = vmax.f32 %v3041_v41, 0.0  ;;  %v7839_v41 = vld [vmem:[%s11284_s8 + $0x8] ss:$28 sps:$4 sm:$0xff]   ;;  %v7847_v16 = vld [vmem:[%s11284_s8 + $0x11c] ss:$28 sps:$4 sm:$0xff]  }
 0x55f   : > { %v3110_v49 = vmax.f32 %v3052_v19, 0.0  ;;  %v7844_v43 = vld [vmem:[%s11284_s8 + $0x44] ss:$28 sps:$4 sm:$0xff]  }
 0x560   : > { %v3108_v54 = vmax.f32 %v3044_v46, 0.0  ;;  %v7836_v19 = vld [vmem:[%s11284_s8 + $0xe0] ss:$28 sps:$4 sm:$0xff]  }
 0x561   : > { %v3130_v21 = vpack.c.bf16 %v3110_v49, %v3109_v57  ;;  %v7842_v46 = vld [vmem:[%s11284_s8 + $0x40] ss:$28 sps:$4 sm:$0xff]   ;;  %v7845_v49 = vld [vmem:[%s11284_s8 + $0x118] ss:$28 sps:$4 sm:$0xff]  }
 0x562   : > { %v3129_v59 = vpack.c.bf16 %v3108_v54, %v3107_v34  ;;  %v7850_v57 = vld [vmem:[%s11284_s8 + $0x7c] ss:$28 sps:$4 sm:$0xff]   ;;  %v7856_v34 = vld [vmem:[%s11284_s8 + $0x154] ss:$28 sps:$4 sm:$0xff]  }
 0x564   : > { %7637 = vmatprep.mubr.msk.bf16.mxu1 %vm2632_vm4, %v3129_v59 }
 0x565   : > { %7638 = vmatmul.mubr.msk.bf16.gmra.mrb[180].mxu1 %vm2632_vm4, %v3130_v21  ;;  %v7848_v21 = vld [vmem:[%s11284_s8 + $0x78] ss:$28 sps:$4 sm:$0xff]  }
 0x56a   : > { %v7609_v22 = vpop.f32.mrb[184].mxu0 }
 0x56b   : > { %v3065_v39 = vadd.f32 %v7609_v22, %v9717_v32  ;;  %v3056_v58 = vpop.f32.mrb[185].mxu0 }
 0x56c   : > { %v3057_v60 = vadd.f32 %v9717_v32, %v3056_v58  ;;  %v7610_v47 = vpop.f32.mrb[186].mxu0 }
 0x56d   : > { %v3068_v53 = vadd.f32 %v7610_v47, %v9717_v32  ;;  %v3059_v50 = vpop.f32.mrb[187].mxu0  ;;  %v3113_v11 = vmax.f32 %v3065_v39, 0.0  ;;  %v7853_v39 = vld [vmem:[%s11284_s8 + $0xb4] ss:$28 sps:$4 sm:$0xff]  }
 0x56e   : > { %v3060_v61 = vadd.f32 %v9717_v32, %v3059_v50  ;;  %v3111_v15 = vmax.f32 %v3057_v60, 0.0  ;;  %v7854_v47 = vld [vmem:[%s11284_s8 + $0x150] ss:$28 sps:$4 sm:$0xff]  }
 0x56f   : > { %v3114_v35 = vmax.f32 %v3068_v53, 0.0 }
 0x570   : > { %v3112_v56 = vmax.f32 %v3060_v61, 0.0 }
 0x571   : > { %v3132_v48 = vpack.c.bf16 %v3114_v35, %v3113_v11  ;;  %v7851_v11 = vld [vmem:[%s11284_s8 + $0xb0] ss:$28 sps:$4 sm:$0xff]  }
 0x572   : > { %v3131_v62 = vpack.c.bf16 %v3112_v56, %v3111_v15  ;;  %v7859_v56 = vld [vmem:[%s11284_s8 + $0xec] ss:$28 sps:$4 sm:$0xff]  }
 0x574   : > { %7641 = vmatprep.mubr.msk.bf16.mxu1 %vm2632_vm4, %v3131_v62 }
 0x575   : > { %7642 = vmatmul.mubr.msk.bf16.gmra.mrb[184].mxu1 %vm2632_vm4, %v3132_v48 }
 0x57a   : > { %v7613_v0 = vpop.f32.mrb[188].mxu0 }
 0x57b   : > { %v3081_v12 = vadd.f32 %v7613_v0, %v9717_v32  ;;  %v3072_v2 = vpop.f32.mrb[189].mxu0 }
 0x57c   : > { %v3073_v3 = vadd.f32 %v9717_v32, %v3072_v2  ;;  %v7614_v10 = vpop.f32.mrb[190].mxu0  ;;  %v7857_v2 = vld [vmem:[%s11284_s8 + $0xe8] ss:$28 sps:$4 sm:$0xff]  }
 0x57d   : > { %v3084_v23 = vadd.f32 %v7614_v10, %v9717_v32  ;;  %v3075_v38 = vpop.f32.mrb[191].mxu0  ;;  %v3117_v52 = vmax.f32 %v3081_v12, 0.0  ;;  %v7860_v10 = vld [vmem:[%s11284_s8 + $0x120] ss:$28 sps:$4 sm:$0xff]  }
 0x57e   : > { %v3076_v36 = vadd.f32 %v9717_v32, %v3075_v38  ;;  %v3115_v4 = vmax.f32 %v3073_v3, 0.0  ;;  %v7829_v32 = vld [vmem:[%s11284_s8 + $0x3c] ss:$28 sps:$4 sm:$0xff]   ;;  %v7862_v3 = vld [vmem:[%s11284_s8 + $0x124] ss:$28 sps:$4 sm:$0xff]  }
 0x57f   : > { %v3118_v42 = vmax.f32 %v3084_v23, 0.0  ;;  %4096 = vmatprep.subr.bf16.mxu1 %v7829_v32 }
 0x580   : > { %v3116_v55 = vmax.f32 %v3076_v36, 0.0  ;;  %4097 = vmatpush1.bf16.msra.mxu1 %v7827_v63 }
 0x581   : > { %v3134_v45 = vpack.c.bf16 %v3118_v42, %v3117_v52  ;;  %4098 = vmatprep.subr.bf16.mxu1 %v7832_v25 }
 0x582   : > { %v3133_v8 = vpack.c.bf16 %v3116_v55, %v3115_v4 }
 0x584   : > { %7645 = vmatprep.mubr.msk.bf16.mxu1 %vm2632_vm4, %v3133_v8  ;;  %4099 = vmatpush1.bf16.msra.mxu1 %v7830_v28 }
 0x585   : > { %7646 = vmatmul.mubr.msk.bf16.gmra.mrb[188].mxu1 %vm2632_vm4, %v3134_v45  ;;  %4100 = vmatprep.subr.bf16.mxu1 %v7835_v7 }
 0x588   : > { %4101 = vmatpush1.bf16.msra.mxu1 %v7833_v40 }
 0x589   : > { %4102 = vmatprep.subr.bf16.mxu1 %v7838_v17 }
 0x58c   : > { %4103 = vmatpush1.bf16.msra.mxu1 %v7836_v19 }
 0x58d   : > { %4104 = vmatprep.subr.bf16.mxu1 %v7847_v16 }
 0x590   : > { %4105 = vmatpush1.bf16.msra.mxu1 %v7845_v49 }
 0x591   : > { %4106 = vmatprep.subr.bf16.mxu1 %v7856_v34 }
 0x594   : > { %4107 = vmatpush1.bf16.msra.mxu1 %v7854_v47 }
 0x5e8   : > { %v7619_v1 = vpop.f32.mrb[160].mxu1 }
 0x5e9   : > { %v3243_v18 = vadd.f32 %v7619_v1, %v9785_v20  ;;  %v3234_v5 = vpop.f32.mrb[161].mxu1 }
 0x5ea   : > { %v3235_v27 = vadd.f32 %v9785_v20, %v3234_v5  ;;  %v7620_v9 = vpop.f32.mrb[162].mxu1 }
 0x5eb   : > { %v3246_v37 = vadd.f32 %v7620_v9, %v9785_v20  ;;  %v3237_v29 = vpop.f32.mrb[163].mxu1  ;;  %v3363_v33 = vmax.f32 %v3243_v18, 0.0 }
 0x5ec   : > { %v3238_v6 = vadd.f32 %v9785_v20, %v3237_v29  ;;  %v3361_v44 = vmax.f32 %v3235_v27, 0.0 }
 0x5ed   : > { %v3364_v26 = vmax.f32 %v3246_v37, 0.0 }
 0x5ee   : > { %v3362_v31 = vmax.f32 %v3238_v6, 0.0 }
 0x5ef   : > { %v3394_v14 = vpack.c.bf16 %v3364_v26, %v3363_v33 }
 0x5f0   : > { %v3393_v30 = vpack.c.bf16 %v3362_v31, %v3361_v44 }
 0x5f2   : > { %7657 = vmatprep.mubr.msk.bf16.mxu0 %vm2360_vm1, %v3393_v30 }
 0x5f3   : > { %7658 = vmatmul.mubr.msk.bf16.vlgmr.msra.gmra.mrb[192].mxu0 %vm2360_vm1, %v3394_v14 }
 0x5f4   : > { %4288 = vmatpush1.bf16.msra.mxu0 %v7839_v41 }
 0x5f5   : > { %4289 = vmatprep.subr.bf16.mxu0 %v7844_v43 }
 0x5f8   : > { %v7623_v54 = vpop.f32.mrb[164].mxu1  ;;  %4290 = vmatpush1.bf16.msra.mxu0 %v7842_v46 }
 0x5f9   : > { %v3259_v59 = vadd.f32 %v7623_v54, %v9785_v20  ;;  %v3250_v22 = vpop.f32.mrb[165].mxu1  ;;  %4291 = vmatprep.subr.bf16.mxu0 %v7850_v57 }
 0x5fa   : > { %v3251_v58 = vadd.f32 %v9785_v20, %v3250_v22  ;;  %v7624_v60 = vpop.f32.mrb[166].mxu1 }
 0x5fb   : > { %v3262_v53 = vadd.f32 %v7624_v60, %v9785_v20  ;;  %v3253_v50 = vpop.f32.mrb[167].mxu1  ;;  %v3367_v35 = vmax.f32 %v3259_v59, 0.0 }
 0x5fc   : > { %v3254_v61 = vadd.f32 %v9785_v20, %v3253_v50  ;;  %4292 = vmatpush1.bf16.msra.mxu0 %v7848_v21  ;;  %v3365_v48 = vmax.f32 %v3251_v58, 0.0 }
 0x5fd   : > { %v3368_v15 = vmax.f32 %v3262_v53, 0.0  ;;  %4293 = vmatprep.subr.bf16.mxu0 %v7853_v39 }
 0x5fe   : > { %v3366_v62 = vmax.f32 %v3254_v61, 0.0 }
 0x5ff   : > { %v3396_v0 = vpack.c.bf16 %v3368_v15, %v3367_v35 }
 0x600   : > { %v3395_v12 = vpack.c.bf16 %v3366_v62, %v3365_v48  ;;  %4294 = vmatpush1.bf16.msra.mxu0 %v7851_v11  ;;  %v7868_v48 = vld [vmem:[%s11284_s8 + $0x15c] ss:$28 sps:$4 sm:$0xff]  }
 0x601   : > { %4295 = vmatprep.subr.bf16.mxu0 %v7859_v56 }
 0x602   : > { %7661 = vmatprep.mubr.msk.bf16.mxu0 %vm2360_vm1, %v3395_v12 }
 0x603   : > { %7662 = vmatmul.mubr.msk.bf16.gmra.mrb[196].mxu0 %vm2360_vm1, %v3396_v0  ;;  %v7866_v0 = vld [vmem:[%s11284_s8 + $0x158] ss:$28 sps:$4 sm:$0xff]  }
 0x604   : > { %4296 = vmatpush1.bf16.msra.mxu0 %v7857_v2 }
 0x605   : > { %4297 = vmatprep.subr.bf16.mxu0 %v7862_v3 }
 0x608   : > { %v7627_v23 = vpop.f32.mrb[168].mxu1  ;;  %4298 = vmatpush1.bf16.msra.mxu0 %v7860_v10 }
 0x609   : > { %v3275_v38 = vadd.f32 %v7627_v23, %v9785_v20  ;;  %v3266_v36 = vpop.f32.mrb[169].mxu1  ;;  %4299 = vmatprep.subr.bf16.mxu0 %v7868_v48 }
 0x60a   : > { %v3267_v52 = vadd.f32 %v9785_v20, %v3266_v36  ;;  %v7628_v42 = vpop.f32.mrb[170].mxu1  ;;  %v7865_v36 = vld [vmem:[%s11284_s8 + $0x18c] ss:$28 sps:$4 sm:$0xff]  }
 0x60b   : > { %v3278_v4 = vadd.f32 %v7628_v42, %v9785_v20  ;;  %v3269_v55 = vpop.f32.mrb[171].mxu1  ;;  %v3371_v8 = vmax.f32 %v3275_v38, 0.0  ;;  %4108 = vmatprep.subr.bf16.mxu1 %v7865_v36 }
 0x60c   : > { %v3270_v45 = vadd.f32 %v9785_v20, %v3269_v55  ;;  %v3369_v13 = vmax.f32 %v3267_v52, 0.0  ;;  %4300 = vmatpush1.bf16.msra.mxu0 %v7866_v0  ;;  %v7871_v52 = vld [vmem:[%s11284_s8 + $0x194] ss:$28 sps:$4 sm:$0xff]  }
 0x60d   : > { %v3372_v51 = vmax.f32 %v3278_v4, 0.0  ;;  %v7863_v4 = vld [vmem:[%s11284_s8 + $0x188] ss:$28 sps:$4 sm:$0xff]   ;;  %v7869_v55 = vld [vmem:[%s11284_s8 + $0x190] ss:$28 sps:$4 sm:$0xff]   ;;  %4301 = vmatprep.subr.bf16.mxu0 %v7871_v52 }
 0x60e   : > { %v3370_v32 = vmax.f32 %v3270_v45, 0.0  ;;  %4109 = vmatpush1.bf16.msra.mxu1 %v7863_v4 }
 0x60f   : > { %v3398_v63 = vpack.c.bf16 %v3372_v51, %v3371_v8 }
 0x610   : > { %v3397_v24 = vpack.c.bf16 %v3370_v32, %v3369_v13  ;;  %4302 = vmatpush1.bf16.msra.mxu0 %v7869_v55  ;;  %v7884_v55 = vld [vmem:[%s11284_s8 + $0xf0] ss:$28 sps:$4 sm:$0xff]  }
 0x612   : > { %7665 = vmatprep.mubr.msk.bf16.mxu0 %vm2360_vm1, %v3397_v24 }
 0x613   : > { %7666 = vmatmul.mubr.msk.bf16.gmra.mrb[200].mxu0 %vm2360_vm1, %v3398_v63  ;;  %v8810_v63 = vmov 0  }
 0x614   : > { %4126 = vmatprep.mubr.bf16.mxu1 %v8810_v63 }
 0x618   : > { %v7631_v25 = vpop.f32.mrb[172].mxu1 }
 0x619   : > { %v3291_v1 = vadd.f32 %v7631_v25, %v9785_v20  ;;  %v3282_v18 = vpop.f32.mrb[173].mxu1  ;;  %v7874_v25 = vld [vmem:[%s11284_s8 + $0x14] ss:$28 sps:$4 sm:$0xff]  }
 0x61a   : > { %v3283_v5 = vadd.f32 %v9785_v20, %v3282_v18  ;;  %v7632_v27 = vpop.f32.mrb[174].mxu1  ;;  %4480 = vmatprep.subr.bf16.mxu1 %v7874_v25  ;;  %v7892_v25 = vld [vmem:[%s11284_s8 + $0x160] ss:$28 sps:$4 sm:$0xff]  }
 0x61b   : > { %v3294_v9 = vadd.f32 %v7632_v27, %v9785_v20  ;;  %v3285_v28 = vpop.f32.mrb[175].mxu1  ;;  %v3375_v29 = vmax.f32 %v3291_v1, 0.0 }
 0x61c   : > { %v3286_v37 = vadd.f32 %v9785_v20, %v3285_v28  ;;  %v3373_v6 = vmax.f32 %v3283_v5, 0.0 }
 0x61d   : > { %v3376_v7 = vmax.f32 %v3294_v9, 0.0 }
 0x61e   : > { %v3374_v33 = vmax.f32 %v3286_v37, 0.0 }
 0x61f   : > { %v3400_v26 = vpack.c.bf16 %v3376_v7, %v3375_v29 }
 0x620   : > { %v3399_v44 = vpack.c.bf16 %v3374_v33, %v3373_v6 }
 0x622   : > { %7669 = vmatprep.mubr.msk.bf16.mxu0 %vm2360_vm1, %v3399_v44 }
 0x623   : > { %7670 = vmatmul.mubr.msk.bf16.gmra.mrb[204].mxu0 %vm2360_vm1, %v3400_v26 }
 0x628   : > { %v7635_v31 = vpop.f32.mrb[176].mxu1 }
 0x629   : > { %v3307_v40 = vadd.f32 %v7635_v31, %v9785_v20  ;;  %v3298_v14 = vpop.f32.mrb[177].mxu1 }
 0x62a   : > { %v3299_v17 = vadd.f32 %v9785_v20, %v3298_v14  ;;  %v7636_v30 = vpop.f32.mrb[178].mxu1 }
 0x62b   : > { %v3310_v41 = vadd.f32 %v7636_v30, %v9785_v20  ;;  %v3301_v43 = vpop.f32.mrb[179].mxu1  ;;  %v3379_v16 = vmax.f32 %v3307_v40, 0.0  ;;  %v7887_v40 = vld [vmem:[%s11284_s8 + $0x18] ss:$28 sps:$4 sm:$0xff]  }
 0x62c   : > { %v3302_v19 = vadd.f32 %v9785_v20, %v3301_v43  ;;  %v3377_v57 = vmax.f32 %v3299_v17, 0.0  ;;  %7689 = vmatprep.subr.bf16.mxu0 %v7887_v40 }
 0x62d   : > { %v3380_v46 = vmax.f32 %v3310_v41, 0.0 }
 0x62e   : > { %v3378_v49 = vmax.f32 %v3302_v19, 0.0 }
 0x62f   : > { %v3402_v34 = vpack.c.bf16 %v3380_v46, %v3379_v16 }
 0x630   : > { %v3401_v54 = vpack.c.bf16 %v3378_v49, %v3377_v57 }
 0x632   : > { %7673 = vmatprep.mubr.msk.bf16.mxu0 %vm2360_vm1, %v3401_v54 }
 0x633   : > { %7674 = vmatmul.mubr.msk.bf16.gmra.mrb[208].mxu0 %vm2360_vm1, %v3402_v34 }
 0x638   : > { %v7639_v21 = vpop.f32.mrb[180].mxu1 }
 0x639   : > { %v3323_v59 = vadd.f32 %v7639_v21, %v9785_v20  ;;  %v3314_v22 = vpop.f32.mrb[181].mxu1 }
 0x63a   : > { %v3315_v39 = vadd.f32 %v9785_v20, %v3314_v22  ;;  %v7640_v58 = vpop.f32.mrb[182].mxu1 }
 0x63b   : > { %v3326_v60 = vadd.f32 %v7640_v58, %v9785_v20  ;;  %v3317_v47 = vpop.f32.mrb[183].mxu1  ;;  %v3383_v50 = vmax.f32 %v3323_v59, 0.0  ;;  %v7872_v59 = vld [vmem:[%s11284_s8 + $0x10] ss:$28 sps:$4 sm:$0xff]  }
 0x63c   : > { %v3318_v53 = vadd.f32 %v9785_v20, %v3317_v47  ;;  %v3381_v11 = vmax.f32 %v3315_v39, 0.0  ;;  %v7877_v39 = vld [vmem:[%s11284_s8 + $0x4c] ss:$28 sps:$4 sm:$0xff]   ;;  %v7880_v47 = vld [vmem:[%s11284_s8 + $0x84] ss:$28 sps:$4 sm:$0xff]  }
 0x63d   : > { %v3384_v61 = vmax.f32 %v3326_v60, 0.0  ;;  %v7891_v58 = vld [vmem:[%s11284_s8 + $0x50] ss:$28 sps:$4 sm:$0xff]   ;;  %v7875_v60 = vld [vmem:[%s11284_s8 + $0x48] ss:$28 sps:$4 sm:$0xff]  }
 0x63e   : > { %v3382_v35 = vmax.f32 %v3318_v53, 0.0 }
 0x63f   : > { %v3404_v15 = vpack.c.bf16 %v3384_v61, %v3383_v50  ;;  %v7878_v50 = vld [vmem:[%s11284_s8 + $0x80] ss:$28 sps:$4 sm:$0xff]   ;;  %v7895_v61 = vld [vmem:[%s11284_s8 + $0x88] ss:$28 sps:$4 sm:$0xff]  }
 0x640   : > { %v3403_v56 = vpack.c.bf16 %v3382_v35, %v3381_v11 }
 0x642   : > { %7677 = vmatprep.mubr.msk.bf16.mxu0 %vm2360_vm1, %v3403_v56 }
 0x643   : > { %7678 = vmatmul.mubr.msk.bf16.gmra.mrb[212].mxu0 %vm2360_vm1, %v3404_v15  ;;  %v7883_v15 = vld [vmem:[%s11284_s8 + $0xbc] ss:$28 sps:$4 sm:$0xff]  }
 0x648   : > { %v7643_v62 = vpop.f32.mrb[184].mxu1 }
 0x649   : > { %v3339_v12 = vadd.f32 %v7643_v62, %v9785_v20  ;;  %v3330_v2 = vpop.f32.mrb[185].mxu1  ;;  %v7896_v62 = vld [vmem:[%s11284_s8 + $0xc0] ss:$28 sps:$4 sm:$0xff]  }
 0x64a   : > { %v3331_v3 = vadd.f32 %v9785_v20, %v3330_v2  ;;  %v7644_v10 = vpop.f32.mrb[186].mxu1 }
 0x64b   : > { %v3342_v23 = vadd.f32 %v7644_v10, %v9785_v20  ;;  %v3333_v38 = vpop.f32.mrb[187].mxu1  ;;  %v3387_v45 = vmax.f32 %v3339_v12, 0.0 }
 0x64c   : > { %v3334_v42 = vadd.f32 %v9785_v20, %v3333_v38  ;;  %v3385_v51 = vmax.f32 %v3331_v3, 0.0  ;;  %v7881_v3 = vld [vmem:[%s11284_s8 + $0xb8] ss:$28 sps:$4 sm:$0xff]  }
 0x64d   : > { %v3388_v8 = vmax.f32 %v3342_v23, 0.0  ;;  %v7886_v38 = vld [vmem:[%s11284_s8 + $0xf4] ss:$28 sps:$4 sm:$0xff]  }
 0x64e   : > { %v3386_v13 = vmax.f32 %v3334_v42, 0.0 }
 0x64f   : > { %v3406_v32 = vpack.c.bf16 %v3388_v8, %v3387_v45  ;;  %v7900_v45 = vld [vmem:[%s11284_s8 + $0xf8] ss:$28 sps:$4 sm:$0xff]   ;;  %v7890_v8 = vld [vmem:[%s11284_s8 + $0x12c] ss:$28 sps:$4 sm:$0xff]  }
 0x650   : > { %v3405_v24 = vpack.c.bf16 %v3386_v13, %v3385_v51  ;;  %v7901_v51 = vld [vmem:[%s11284_s8 + $0x130] ss:$28 sps:$4 sm:$0xff]   ;;  %v7888_v13 = vld [vmem:[%s11284_s8 + $0x128] ss:$28 sps:$4 sm:$0xff]  }
 0x652   : > { %7681 = vmatprep.mubr.msk.bf16.mxu0 %vm2360_vm1, %v3405_v24 }
 0x653   : > { %7682 = vmatmul.mubr.msk.bf16.gmra.mrb[216].mxu0 %vm2360_vm1, %v3406_v32  ;;  %v7894_v32 = vld [vmem:[%s11284_s8 + $0x164] ss:$28 sps:$4 sm:$0xff]  }
 0x658   : > { %v7647_v1 = vpop.f32.mrb[188].mxu1 }
 0x659   : > { %v3355_v18 = vadd.f32 %v7647_v1, %v9785_v20  ;;  %v3346_v5 = vpop.f32.mrb[189].mxu1  ;;  %v7902_v1 = vld [vmem:[%s11284_s8 + $0x168] ss:$28 sps:$4 sm:$0xff]  }
 0x65a   : > { %v3347_v27 = vadd.f32 %v9785_v20, %v3346_v5  ;;  %v7648_v9 = vpop.f32.mrb[190].mxu1 }
 0x65b   : > { %v3358_v28 = vadd.f32 %v7648_v9, %v9785_v20  ;;  %v3349_v37 = vpop.f32.mrb[191].mxu1  ;;  %v3391_v7 = vmax.f32 %v3355_v18, 0.0 }
 0x65c   : > { %v3350_v29 = vadd.f32 %v9785_v20, %v3349_v37  ;;  %v3389_v33 = vmax.f32 %v3347_v27, 0.0  ;;  %v9933_v20 = vld [vmem:[%s11291_s15] ss:$0 sm:$0xff]  ;;  %v7899_v27 = vld [vmem:[%s11284_s8 + $0x19c] ss:$28 sps:$4 sm:$0xff]  }
 0x65d   : > { %v3392_v6 = vmax.f32 %v3358_v28, 0.0  ;;  %v7903_v37 = vld [vmem:[%s11284_s8 + $0x1a0] ss:$28 sps:$4 sm:$0xff]  }
 0x65e   : > { %v3390_v26 = vmax.f32 %v3350_v29, 0.0 }
 0x65f   : > { %v3408_v44 = vpack.c.bf16 %v3392_v6, %v3391_v7 }
 0x660   : > { %v3407_v31 = vpack.c.bf16 %v3390_v26, %v3389_v33  ;;  %v7897_v33 = vld [vmem:[%s11284_s8 + $0x198] ss:$28 sps:$4 sm:$0xff]  }
 0x662   : > { %7685 = vmatprep.mubr.msk.bf16.mxu0 %vm2360_vm1, %v3407_v31 }
 0x663   : > { %7686 = vmatmul.mubr.msk.bf16.gmra.mrb[220].mxu0 %vm2360_vm1, %v3408_v44 }
 0x664   : > { %4319 = vmatprep.mubr.bf16.mxu0 %v8810_v63 }
 0x6c6   : > { %v7659_v14 = vpop.f32.mrb[192].mxu0 }
 0x6c7   : > { %v3539_v17 = vadd.f32 %v7659_v14, %v9933_v20  ;;  %v3530_v30 = vpop.f32.mrb[193].mxu0 }
 0x6c8   : > { %v3531_v41 = vadd.f32 %v9933_v20, %v3530_v30  ;;  %v7660_v43 = vpop.f32.mrb[194].mxu0 }
 0x6c9   : > { %v3542_v19 = vadd.f32 %v7660_v43, %v9933_v20  ;;  %v3533_v16 = vpop.f32.mrb[195].mxu0  ;;  %v3659_v57 = vmax.f32 %v3539_v17, 0.0 }
 0x6ca   : > { %v3534_v46 = vadd.f32 %v9933_v20, %v3533_v16  ;;  %v3657_v34 = vmax.f32 %v3531_v41, 0.0 }
 0x6cb   : > { %v3660_v49 = vmax.f32 %v3542_v19, 0.0 }
 0x6cc   : > { %v3658_v54 = vmax.f32 %v3534_v46, 0.0 }
 0x6cd   : > { %v9939_v21 = vpack.c.bf16 %v3660_v49, %v3659_v57 }
 0x6ce   : > { %v9944_v22 = vpack.c.bf16 %v3658_v54, %v3657_v34 }
 0x6d0   : > { %4127 = vmatmul.mubr.bf16.vlgmr.msra.gmra.mrb[192].mxu1 %v9944_v22  ;;  %4320 = vmatmul.mubr.bf16.vlgmr.msra.gmra.mrb[224].mxu0 %v9944_v22 }
 0x6d1   : > { %4481 = vmatpush1.bf16.msra.mxu1 %v7872_v59  ;;  %4136 = vmatprep.mubr.bf16.mxu1 %v8810_v63 }
 0x6d2   : > { %4329 = vmatprep.mubr.bf16.mxu0 %v8810_v63  ;;  %4482 = vmatprep.subr.bf16.mxu1 %v7877_v39 }
 0x6d3   : > { %7690 = vmatpush3.bf16.msra.mxu0 %v7887_v40 }
 0x6d4   : > { %7691 = vmatprep.subr.bf16.mxu0 %v7891_v58 }
 0x6d5   : > { %4483 = vmatpush1.bf16.msra.mxu1 %v7875_v60 }
 0x6d6   : > { %v7663_v53 = vpop.f32.mrb[196].mxu0  ;;  %4484 = vmatprep.subr.bf16.mxu1 %v7880_v47 }
 0x6d7   : > { %v3555_v11 = vadd.f32 %v7663_v53, %v9933_v20  ;;  %v3546_v35 = vpop.f32.mrb[197].mxu0  ;;  %7692 = vmatpush3.bf16.msra.mxu0 %v7891_v58 }
 0x6d8   : > { %v3547_v56 = vadd.f32 %v9933_v20, %v3546_v35  ;;  %v7664_v48 = vpop.f32.mrb[198].mxu0  ;;  %4137 = vmatmul.mubr.bf16.gmra.mrb[196].mxu1 %v9939_v21  ;;  %4330 = vmatmul.mubr.bf16.gmra.mrb[228].mxu0 %v9939_v21 }
 0x6d9   : > { %v3558_v0 = vadd.f32 %v7664_v48, %v9933_v20  ;;  %v3549_v12 = vpop.f32.mrb[199].mxu0  ;;  %4146 = vmatprep.mubr.bf16.mxu1 %v8810_v63  ;;  %4339 = vmatprep.mubr.bf16.mxu0 %v8810_v63  ;;  %v3663_v10 = vmax.f32 %v3555_v11, 0.0 }
 0x6da   : > { %v3550_v2 = vadd.f32 %v9933_v20, %v3549_v12  ;;  %4485 = vmatpush1.bf16.msra.mxu1 %v7878_v50  ;;  %7693 = vmatprep.subr.bf16.mxu0 %v7895_v61  ;;  %v3661_v36 = vmax.f32 %v3547_v56, 0.0 }
 0x6db   : > { %v3664_v23 = vmax.f32 %v3558_v0, 0.0  ;;  %4486 = vmatprep.subr.bf16.mxu1 %v7883_v15  ;;  %7694 = vmatpush3.bf16.msra.mxu0 %v7895_v61 }
 0x6dc   : > { %v3662_v52 = vmax.f32 %v3550_v2, 0.0  ;;  %7695 = vmatprep.subr.bf16.mxu0 %v7896_v62 }
 0x6dd   : > { %v9988_v42 = vpack.c.bf16 %v3664_v23, %v3663_v10 }
 0x6de   : > { %v9990_v4 = vpack.c.bf16 %v3662_v52, %v3661_v36  ;;  %4487 = vmatpush1.bf16.msra.mxu1 %v7881_v3 }
 0x6df   : > { %4488 = vmatprep.subr.bf16.mxu1 %v7886_v38  ;;  %7696 = vmatpush3.bf16.msra.mxu0 %v7896_v62 }
 0x6e0   : > { %4147 = vmatmul.mubr.bf16.gmra.mrb[200].mxu1 %v9990_v4  ;;  %4340 = vmatmul.mubr.bf16.gmra.mrb[232].mxu0 %v9990_v4 }
 0x6e1   : > { %4156 = vmatprep.mubr.bf16.mxu1 %v8810_v63  ;;  %4349 = vmatprep.mubr.bf16.mxu0 %v8810_v63 }
 0x6e2   : > { %4489 = vmatpush1.bf16.msra.mxu1 %v7884_v55  ;;  %7697 = vmatprep.subr.bf16.mxu0 %v7900_v45 }
 0x6e3   : > { %4490 = vmatprep.subr.bf16.mxu1 %v7890_v8  ;;  %7698 = vmatpush3.bf16.msra.mxu0 %v7900_v45 }
 0x6e4   : > { %7699 = vmatprep.subr.bf16.mxu0 %v7901_v51 }
 0x6e6   : > { %v7667_v24 = vpop.f32.mrb[200].mxu0  ;;  %4491 = vmatpush1.bf16.msra.mxu1 %v7888_v13 }
 0x6e7   : > { %v3571_v18 = vadd.f32 %v7667_v24, %v9933_v20  ;;  %v3562_v5 = vpop.f32.mrb[201].mxu0  ;;  %4492 = vmatprep.subr.bf16.mxu1 %v7894_v32  ;;  %7700 = vmatpush3.bf16.msra.mxu0 %v7901_v51 }
 0x6e8   : > { %v3563_v9 = vadd.f32 %v9933_v20, %v3562_v5  ;;  %v7668_v28 = vpop.f32.mrb[202].mxu0  ;;  %4157 = vmatmul.mubr.bf16.gmra.mrb[204].mxu1 %v9988_v42  ;;  %4350 = vmatmul.mubr.bf16.gmra.mrb[236].mxu0 %v9988_v42 }
 0x6e9   : > { %v3574_v29 = vadd.f32 %v7668_v28, %v9933_v20  ;;  %v3565_v7 = vpop.f32.mrb[203].mxu0  ;;  %4166 = vmatprep.mubr.bf16.mxu1 %v8810_v63  ;;  %4359 = vmatprep.mubr.bf16.mxu0 %v8810_v63  ;;  %v3667_v26 = vmax.f32 %v3571_v18, 0.0 }
 0x6ea   : > { %v3566_v6 = vadd.f32 %v9933_v20, %v3565_v7  ;;  %4493 = vmatpush1.bf16.msra.mxu1 %v7892_v25  ;;  %7701 = vmatprep.subr.bf16.mxu0 %v7902_v1  ;;  %v3665_v31 = vmax.f32 %v3563_v9, 0.0 }
 0x6eb   : > { %v3668_v44 = vmax.f32 %v3574_v29, 0.0  ;;  %4494 = vmatprep.subr.bf16.mxu1 %v7899_v27  ;;  %7702 = vmatpush3.bf16.msra.mxu0 %v7902_v1 }
 0x6ec   : > { %v3666_v40 = vmax.f32 %v3566_v6, 0.0  ;;  %7703 = vmatprep.subr.bf16.mxu0 %v7903_v37 }
 0x6ed   : > { %v10037_v14 = vpack.c.bf16 %v3668_v44, %v3667_v26 }
 0x6ee   : > { %v10039_v17 = vpack.c.bf16 %v3666_v40, %v3665_v31  ;;  %4495 = vmatpush1.bf16.msra.mxu1 %v7897_v33 }
 0x6ef   : > { %7704 = vmatpush3.bf16.msra.mxu0 %v7903_v37 }
 0x6f0   : > { %4167 = vmatmul.mubr.bf16.gmra.mrb[208].mxu1 %v10039_v17  ;;  %4360 = vmatmul.mubr.bf16.gmra.mrb[240].mxu0 %v10039_v17 }
 0x6f1   : > { %4176 = vmatprep.mubr.bf16.mxu1 %v8810_v63  ;;  %4369 = vmatprep.mubr.bf16.mxu0 %v8810_v63 }
 0x6f6   : > { %v7671_v30 = vpop.f32.mrb[204].mxu0 }
 0x6f7   : > { %v3587_v41 = vadd.f32 %v7671_v30, %v9933_v20  ;;  %v3578_v43 = vpop.f32.mrb[205].mxu0 }
 0x6f8   : > { %v3579_v19 = vadd.f32 %v9933_v20, %v3578_v43  ;;  %v7672_v16 = vpop.f32.mrb[206].mxu0  ;;  %4177 = vmatmul.mubr.bf16.gmra.mrb[212].mxu1 %v10037_v14  ;;  %4370 = vmatmul.mubr.bf16.gmra.mrb[244].mxu0 %v10037_v14 }
 0x6f9   : > { %v3590_v46 = vadd.f32 %v7672_v16, %v9933_v20  ;;  %v3581_v57 = vpop.f32.mrb[207].mxu0  ;;  %4186 = vmatprep.mubr.bf16.mxu1 %v8810_v63  ;;  %4379 = vmatprep.mubr.bf16.mxu0 %v8810_v63  ;;  %v3671_v34 = vmax.f32 %v3587_v41, 0.0 }
 0x6fa   : > { %v3582_v49 = vadd.f32 %v9933_v20, %v3581_v57  ;;  %v3669_v59 = vmax.f32 %v3579_v19, 0.0 }
 0x6fb   : > { %v3672_v54 = vmax.f32 %v3590_v46, 0.0 }
 0x6fc   : > { %v3670_v39 = vmax.f32 %v3582_v49, 0.0 }
 0x6fd   : > { %v10053_v58 = vpack.c.bf16 %v3672_v54, %v3671_v34 }
 0x6fe   : > { %v10055_v60 = vpack.c.bf16 %v3670_v39, %v3669_v59 }
 0x700   : > { %4187 = vmatmul.mubr.bf16.gmra.mrb[216].mxu1 %v10055_v60  ;;  %4380 = vmatmul.mubr.bf16.gmra.mrb[248].mxu0 %v10055_v60 }
 0x701   : > { %4196 = vmatprep.mubr.bf16.mxu1 %v8810_v63  ;;  %4389 = vmatprep.mubr.bf16.mxu0 %v8810_v63 }
 0x706   : > { %v7675_v47 = vpop.f32.mrb[208].mxu0 }
 0x707   : > { %v3603_v53 = vadd.f32 %v7675_v47, %v9933_v20  ;;  %v3594_v50 = vpop.f32.mrb[209].mxu0 }
 0x708   : > { %v3595_v61 = vadd.f32 %v9933_v20, %v3594_v50  ;;  %v7676_v11 = vpop.f32.mrb[210].mxu0  ;;  %4197 = vmatmul.mubr.bf16.gmra.mrb[220].mxu1 %v10053_v58  ;;  %4390 = vmatmul.mubr.bf16.gmra.mrb[252].mxu0 %v10053_v58 }
 0x709   : > { %v3606_v35 = vadd.f32 %v7676_v11, %v9933_v20  ;;  %v3597_v15 = vpop.f32.mrb[211].mxu0  ;;  %4206 = vmatprep.mubr.bf16.mxu1 %v8810_v63  ;;  %4399 = vmatprep.mubr.bf16.mxu0 %v8810_v63  ;;  %v3675_v48 = vmax.f32 %v3603_v53, 0.0 }
 0x70a   : > { %v3598_v56 = vadd.f32 %v9933_v20, %v3597_v15  ;;  %v3673_v0 = vmax.f32 %v3595_v61, 0.0 }
 0x70b   : > { %v3676_v62 = vmax.f32 %v3606_v35, 0.0 }
 0x70c   : > { %v3674_v12 = vmax.f32 %v3598_v56, 0.0 }
 0x70d   : > { %v10069_v2 = vpack.c.bf16 %v3676_v62, %v3675_v48 }
 0x70e   : > { %v10071_v3 = vpack.c.bf16 %v3674_v12, %v3673_v0 }
 0x710   : > { %4207 = vmatmul.mubr.bf16.gmra.mrb[224].mxu1 %v10071_v3  ;;  %4400 = vmatmul.mubr.bf16.gmra.mrb[0].mxu0 %v10071_v3 }
 0x711   : > { %4216 = vmatprep.mubr.bf16.mxu1 %v8810_v63  ;;  %4409 = vmatprep.mubr.bf16.mxu0 %v8810_v63 }
 0x716   : > { %v7679_v10 = vpop.f32.mrb[212].mxu0 }
 0x717   : > { %v3619_v23 = vadd.f32 %v7679_v10, %v9933_v20  ;;  %v3610_v38 = vpop.f32.mrb[213].mxu0 }
 0x718   : > { %v3611_v36 = vadd.f32 %v9933_v20, %v3610_v38  ;;  %v7680_v52 = vpop.f32.mrb[214].mxu0  ;;  %4217 = vmatmul.mubr.bf16.gmra.mrb[228].mxu1 %v10069_v2  ;;  %4410 = vmatmul.mubr.bf16.gmra.mrb[4].mxu0 %v10069_v2 }
 0x719   : > { %v3622_v55 = vadd.f32 %v7680_v52, %v9933_v20  ;;  %v3613_v45 = vpop.f32.mrb[215].mxu0  ;;  %4226 = vmatprep.mubr.bf16.mxu1 %v8810_v63  ;;  %4419 = vmatprep.mubr.bf16.mxu0 %v8810_v63  ;;  %v3679_v51 = vmax.f32 %v3619_v23, 0.0 }
 0x71a   : > { %v3614_v8 = vadd.f32 %v9933_v20, %v3613_v45  ;;  %v3677_v32 = vmax.f32 %v3611_v36, 0.0 }
 0x71b   : > { %v3680_v13 = vmax.f32 %v3622_v55, 0.0 }
 0x71c   : > { %v3678_v24 = vmax.f32 %v3614_v8, 0.0 }
 0x71d   : > { %v10085_v25 = vpack.c.bf16 %v3680_v13, %v3679_v51 }
 0x71e   : > { %v10087_v1 = vpack.c.bf16 %v3678_v24, %v3677_v32 }
 0x720   : > { %4227 = vmatmul.mubr.bf16.gmra.mrb[232].mxu1 %v10087_v1  ;;  %4420 = vmatmul.mubr.bf16.gmra.mrb[8].mxu0 %v10087_v1 }
 0x721   : > { %4236 = vmatprep.mubr.bf16.mxu1 %v8810_v63  ;;  %4429 = vmatprep.mubr.bf16.mxu0 %v8810_v63 }
 0x726   : > { %v7683_v18 = vpop.f32.mrb[216].mxu0 }
 0x727   : > { %v3635_v5 = vadd.f32 %v7683_v18, %v9933_v20  ;;  %v3626_v27 = vpop.f32.mrb[217].mxu0 }
 0x728   : > { %v3627_v9 = vadd.f32 %v9933_v20, %v3626_v27  ;;  %v7684_v28 = vpop.f32.mrb[218].mxu0  ;;  %4237 = vmatmul.mubr.bf16.gmra.mrb[236].mxu1 %v10085_v25  ;;  %4430 = vmatmul.mubr.bf16.gmra.mrb[12].mxu0 %v10085_v25 }
 0x729   : > { %v3638_v37 = vadd.f32 %v7684_v28, %v9933_v20  ;;  %v3629_v29 = vpop.f32.mrb[219].mxu0  ;;  %4246 = vmatprep.mubr.bf16.mxu1 %v8810_v63  ;;  %4439 = vmatprep.mubr.bf16.mxu0 %v8810_v63  ;;  %v3683_v6 = vmax.f32 %v3635_v5, 0.0 }
 0x72a   : > { %v3630_v7 = vadd.f32 %v9933_v20, %v3629_v29  ;;  %v3681_v26 = vmax.f32 %v3627_v9, 0.0 }
 0x72b   : > { %v3684_v33 = vmax.f32 %v3638_v37, 0.0 }
 0x72c   : > { %v3682_v44 = vmax.f32 %v3630_v7, 0.0 }
 0x72d   : > { %v10101_v31 = vpack.c.bf16 %v3684_v33, %v3683_v6 }
 0x72e   : > { %v10103_v40 = vpack.c.bf16 %v3682_v44, %v3681_v26 }
 0x730   : > { %4247 = vmatmul.mubr.bf16.gmra.mrb[240].mxu1 %v10103_v40  ;;  %4440 = vmatmul.mubr.bf16.gmra.mrb[16].mxu0 %v10103_v40 }
 0x731   : > { %4256 = vmatprep.mubr.bf16.mxu1 %v8810_v63  ;;  %4449 = vmatprep.mubr.bf16.mxu0 %v8810_v63 }
 0x736   : > { %v7687_v30 = vpop.f32.mrb[220].mxu0 }
 0x737   : > { %v3651_v41 = vadd.f32 %v7687_v30, %v9933_v20  ;;  %v3642_v43 = vpop.f32.mrb[221].mxu0 }
 0x738   : > { %v3643_v19 = vadd.f32 %v9933_v20, %v3642_v43  ;;  %v7688_v16 = vpop.f32.mrb[222].mxu0  ;;  %4257 = vmatmul.mubr.bf16.gmra.mrb[244].mxu1 %v10101_v31  ;;  %4450 = vmatmul.mubr.bf16.gmra.mrb[20].mxu0 %v10101_v31 }
 0x739   : > { %v3654_v46 = vadd.f32 %v7688_v16, %v9933_v20  ;;  %v3645_v57 = vpop.f32.mrb[223].mxu0  ;;  %4266 = vmatprep.mubr.bf16.mxu1 %v8810_v63  ;;  %4459 = vmatprep.mubr.bf16.mxu0 %v8810_v63  ;;  %v3687_v34 = vmax.f32 %v3651_v41, 0.0 }
 0x73a   : > { %v3646_v49 = vadd.f32 %v9933_v20, %v3645_v57  ;;  %v3685_v59 = vmax.f32 %v3643_v19, 0.0  ;;  %v3771_v20 = vlaneseq }
 0x73b   : > { %v3688_v54 = vmax.f32 %v3654_v46, 0.0 }
 0x73c   : > { %v3686_v39 = vmax.f32 %v3646_v49, 0.0 }
 0x73d   : > { %v10117_v47 = vpack.c.bf16 %v3688_v54, %v3687_v34 }
 0x73e   : > { %v10119_v53 = vpack.c.bf16 %v3686_v39, %v3685_v59 }
 0x740   : > { %4267 = vmatmul.mubr.bf16.gmra.mrb[248].mxu1 %v10119_v53  ;;  %4460 = vmatmul.mubr.bf16.gmra.mrb[24].mxu0 %v10119_v53 }
 0x741   : > { %4276 = vmatprep.mubr.bf16.mxu1 %v8810_v63  ;;  %4469 = vmatprep.mubr.bf16.mxu0 %v8810_v63 }
 0x748   : > { %4277 = vmatmul.mubr.bf16.gmra.mrb[252].mxu1 %v10117_v47  ;;  %4470 = vmatmul.mubr.bf16.gmra.mrb[28].mxu0 %v10117_v47 }
 0x749   : > { %7705 = vmatprep.mubr.bf16.mxu0 %v9944_v22  ;;  %4512 = vmatprep.mubr.bf16.mxu1 %v8810_v63 }
 0x750   : > { %4513 = vmatmul.mubr.bf16.vlgmr.msra.gmra.mrb[0].mxu1 %v9944_v22  ;;  %7706 = vmatmul.mubr.bf16.vlgmr.msra.gmra.mrb[32].mxu0 %v9939_v21 }
 0x751   : > { %7709 = vmatprep.mubr.bf16.mxu0 %v9990_v4  ;;  %4522 = vmatprep.mubr.bf16.mxu1 %v8810_v63 }
 0x758   : > { %4523 = vmatmul.mubr.bf16.gmra.mrb[4].mxu1 %v9939_v21  ;;  %7710 = vmatmul.mubr.bf16.gmra.mrb[36].mxu0 %v9988_v42  ;;  %v10163_v21 = vshrl.u32 %v3771_v20, 7 }
 0x759   : > { %7713 = vmatprep.mubr.bf16.mxu0 %v10039_v17  ;;  %4532 = vmatprep.mubr.bf16.mxu1 %v8810_v63 }
 0x75a   : > { %11301 = vst [vmem:[#allocation2_spill] sm:$0xff] %v10163_v21  ;;  %v3773_v22 = vsub.s32 0, %v10163_v21 }
 0x760   : > { %4533 = vmatmul.mubr.bf16.gmra.mrb[8].mxu1 %v9990_v4  ;;  %7714 = vmatmul.mubr.bf16.gmra.mrb[40].mxu0 %v10037_v14  ;;  %v3769_v4 = vld [vmem:[%s11292_s16] sm:$0xff] }
 0x761   : > { %7717 = vmatprep.mubr.bf16.mxu0 %v10055_v60  ;;  %4542 = vmatprep.mubr.bf16.mxu1 %v8810_v63 }
 0x768   : > { %4543 = vmatmul.mubr.bf16.gmra.mrb[12].mxu1 %v9988_v42  ;;  %7718 = vmatmul.mubr.bf16.gmra.mrb[44].mxu0 %v10053_v58  ;;  %v3781_v42 = vsub.s32 2, %v10163_v21 }
 0x769   : > { %7721 = vmatprep.mubr.bf16.mxu0 %v10071_v3  ;;  %4552 = vmatprep.mubr.bf16.mxu1 %v8810_v63 }
 0x770   : > { %4553 = vmatmul.mubr.bf16.gmra.mrb[16].mxu1 %v10039_v17  ;;  %7722 = vmatmul.mubr.bf16.gmra.mrb[48].mxu0 %v10069_v2  ;;  %v3785_v17 = vsub.s32 3, %v10163_v21 }
 0x771   : > { %7725 = vmatprep.mubr.bf16.mxu0 %v10087_v1  ;;  %4562 = vmatprep.mubr.bf16.mxu1 %v8810_v63 }
 0x772   : > { %v10180_v61 = vrot.slane %v3769_v4, %v3785_v17 }
 0x778   : > { %4563 = vmatmul.mubr.bf16.gmra.mrb[20].mxu1 %v10037_v14  ;;  %7726 = vmatmul.mubr.bf16.gmra.mrb[52].mxu0 %v10085_v25  ;;  %v3777_v14 = vsub.s32 1, %v10163_v21 }
 0x779   : > { %7729 = vmatprep.mubr.bf16.mxu0 %v10103_v40  ;;  %4572 = vmatprep.mubr.bf16.mxu1 %v8810_v63 }
 0x77a   : > { %v10178_v50 = vrot.slane %v3769_v4, %v3777_v14 }
 0x780   : > { %4573 = vmatmul.mubr.bf16.gmra.mrb[24].mxu1 %v10055_v60  ;;  %7730 = vmatmul.mubr.bf16.gmra.mrb[56].mxu0 %v10101_v31  ;;  %v10176_v60 = vrot.slane %v3769_v4, %v3781_v42 }
 0x781   : > { %7733 = vmatprep.mubr.bf16.mxu0 %v10119_v53  ;;  %4582 = vmatprep.mubr.bf16.mxu1 %v8810_v63 }
 0x788   : > { %4583 = vmatmul.mubr.bf16.gmra.mrb[28].mxu1 %v10053_v58  ;;  %7734 = vmatmul.mubr.bf16.gmra.mrb[60].mxu0 %v10117_v47  ;;  %v10174_v58 = vrot.slane %v3769_v4, %v3773_v22 }
 0x789   : > { %4592 = vmatprep.mubr.bf16.mxu1 %v8810_v63 }
 0x790   : > { %4593 = vmatmul.mubr.bf16.gmra.mrb[32].mxu1 %v10071_v3 }
 0x791   : > { %4602 = vmatprep.mubr.bf16.mxu1 %v8810_v63 }
 0x798   : > { %4603 = vmatmul.mubr.bf16.gmra.mrb[36].mxu1 %v10069_v2 }
 0x799   : > { %4612 = vmatprep.mubr.bf16.mxu1 %v8810_v63 }
 0x7a0   : > { %4613 = vmatmul.mubr.bf16.gmra.mrb[40].mxu1 %v10087_v1 }
 0x7a1   : > { %4622 = vmatprep.mubr.bf16.mxu1 %v8810_v63 }
 0x7a3   : > { %v4128_v11 = vpop.f32.mrb[192].mxu1  ;;  %v4321_v35 = vpop.f32.mrb[224].mxu0 }
 0x7a4   : > { %v4129_v15 = vadd.f32 %v4128_v11, %v10174_v58  ;;  %v4322_v56 = vadd.f32 %v4321_v35, %v10176_v60  ;;  %v4130_v48 = vpop.f32.mrb[193].mxu1  ;;  %v4323_v62 = vpop.f32.mrb[225].mxu0 }
 0x7a5   : > { %v4131_v0 = vadd.f32 %v4130_v48, %v10178_v50  ;;  %v4324_v12 = vadd.f32 %v4323_v62, %v10180_v61  ;;  %v4132_v2 = vpop.f32.mrb[194].mxu1  ;;  %v4325_v3 = vpop.f32.mrb[226].mxu0 }
 0x7a6   : > { %v6686_v10 = vmul.f32 -1.442695, %v4129_v15  ;;  %v6688_v23 = vmul.f32 -1.442695, %v4322_v56  ;;  %v4133_v38 = vadd.f32 %v4132_v2, %v10174_v58  ;;  %v4326_v36 = vadd.f32 %v4325_v3, %v10176_v60  ;;  %v4134_v52 = vpop.f32.mrb[195].mxu1  ;;  %v4327_v55 = vpop.f32.mrb[227].mxu0 }
 0x7a7   : > { %v6687_v45 = vmul.f32 -1.442695, %v4131_v0  ;;  %v6689_v8 = vmul.f32 -1.442695, %v4324_v12  ;;  %v4135_v51 = vadd.f32 %v4134_v52, %v10178_v50  ;;  %v4328_v13 = vadd.f32 %v4327_v55, %v10180_v61 }
 0x7a8   : > { %7904 = vpow2.f32 %v6686_v10  ;;  %v6693_v32 = vmul.f32 -1.442695, %v4133_v38  ;;  %4623 = vmatmul.mubr.bf16.gmra.mrb[44].mxu1 %v10085_v25  ;;  %v6695_v24 = vmul.f32 -1.442695, %v4326_v36 }
 0x7a9   : > { %7906 = vpow2.f32 %v6688_v23  ;;  %4632 = vmatprep.mubr.bf16.mxu1 %v8810_v63  ;;  %v6694_v1 = vmul.f32 -1.442695, %v4135_v51  ;;  %v6696_v18 = vmul.f32 -1.442695, %v4328_v13 }
 0x7aa   : > { %7908 = vpow2.f32 %v6687_v45 }
 0x7ab   : > { %7910 = vpow2.f32 %v6689_v8  ;;  %v4138_v5 = vpop.f32.mrb[196].mxu1  ;;  %v4331_v27 = vpop.f32.mrb[228].mxu0 }
 0x7ac   : > { %7912 = vpow2.f32 %v6693_v32  ;;  %v4139_v9 = vadd.f32 %v4138_v5, %v10174_v58  ;;  %v4332_v28 = vadd.f32 %v4331_v27, %v10176_v60  ;;  %v4140_v37 = vpop.f32.mrb[197].mxu1  ;;  %v4333_v29 = vpop.f32.mrb[229].mxu0 }
 0x7ad   : > { %7914 = vpow2.f32 %v6695_v24  ;;  %v4141_v25 = vadd.f32 %v4140_v37, %v10178_v50  ;;  %v4334_v7 = vadd.f32 %v4333_v29, %v10180_v61  ;;  %v4142_v6 = vpop.f32.mrb[198].mxu1  ;;  %v4335_v33 = vpop.f32.mrb[230].mxu0 }
 0x7ae   : > { %7916 = vpow2.f32 %v6694_v1  ;;  %v6700_v26 = vmul.f32 -1.442695, %v4139_v9  ;;  %v6702_v44 = vmul.f32 -1.442695, %v4332_v28  ;;  %v4143_v30 = vadd.f32 %v4142_v6, %v10174_v58  ;;  %v4144_v41 = vpop.f32.mrb[199].mxu1  ;;  %v4337_v43 = vpop.f32.mrb[231].mxu0 }
 0x7af   : > { %7918 = vpow2.f32 %v6696_v18  ;;  %v6701_v19 = vmul.f32 -1.442695, %v4141_v25  ;;  %v6703_v16 = vmul.f32 -1.442695, %v4334_v7  ;;  %v4336_v38 = vadd.f32 %v4335_v33, %v10176_v60 }
 0x7b0   : > { %7920 = vpow2.f32 %v6700_v26  ;;  %v6707_v46 = vmul.f32 -1.442695, %v4143_v30  ;;  %4633 = vmatmul.mubr.bf16.gmra.mrb[48].mxu1 %v10103_v40  ;;  %v4145_v55 = vadd.f32 %v4144_v41, %v10178_v50  ;;  %v4338_v51 = vadd.f32 %v4337_v43, %v10180_v61 }
 0x7b1   : > { %7922 = vpow2.f32 %v6702_v44  ;;  %4642 = vmatprep.mubr.bf16.mxu1 %v8810_v63  ;;  %v6709_v37 = vmul.f32 -1.442695, %v4336_v38 }
 0x7b2   : > { %v7905_v57 = vpop.eup %7904  ;;  %7924 = vpow2.f32 %v6701_v19  ;;  %v6708_v26 = vmul.f32 -1.442695, %v4145_v55  ;;  %v6710_v43 = vmul.f32 -1.442695, %v4338_v51 }
 0x7b3   : > { %v7907_v49 = vpop.eup %7906  ;;  %v5506_v34 = vadd.f32 1.0, %v7905_v57  ;;  %7926 = vpow2.f32 %v6703_v16  ;;  %v4148_v54 = vpop.f32.mrb[200].mxu1 }
 0x7b4   : > { %v4341_v59 = vpop.f32.mrb[232].mxu0  ;;  %v7909_v39 = vpop.eup %7908  ;;  %v5508_v20 = vadd.f32 1.0, %v7907_v49  ;;  %7928 = vpow2.f32 %v6707_v46  ;;  %v4149_v18 = vadd.f32 %v4148_v54, %v10174_v58 }
 0x7b5   : > { %v4150_v22 = vpop.f32.mrb[201].mxu1  ;;  %v4343_v42 = vpop.f32.mrb[233].mxu0  ;;  %7930 = vrcp.f32 %v5506_v34  ;;  %v5507_v14 = vadd.f32 1.0, %v7909_v39  ;;  %v4342_v29 = vadd.f32 %v4341_v59, %v10176_v60 }
 0x7b6   : > { %v7911_v4 = vpop.eup %7910  ;;  %v10200_v17 = vpop.f32.mrb[202].mxu1  ;;  %7932 = vrcp.f32 %v5508_v20  ;;  %v4151_v44 = vadd.f32 %v4150_v22, %v10178_v50  ;;  %v4344_v19 = vadd.f32 %v4343_v42, %v10180_v61  ;;  %v6714_v46 = vmul.f32 -1.442695, %v4149_v18 }
 0x7b7   : > { %v10202_v40 = vpop.f32.mrb[234].mxu0  ;;  %v7913_v11 = vpop.eup %7912  ;;  %v5509_v35 = vadd.f32 1.0, %v7911_v4  ;;  %7934 = vrcp.f32 %v5507_v14  ;;  %v4153_v57 = vadd.f32 %v10200_v17, %v10174_v58  ;;  %v6716_v34 = vmul.f32 -1.442695, %v4342_v29 }
 0x7b8   : > { %v10204_v15 = vpop.f32.mrb[203].mxu1  ;;  %v7915_v56 = vpop.eup %7914  ;;  %v5513_v48 = vadd.f32 1.0, %v7913_v11  ;;  %4643 = vmatmul.mubr.bf16.gmra.mrb[52].mxu1 %v10101_v31  ;;  %v4346_v54 = vadd.f32 %v10202_v40, %v10176_v60  ;;  %v6717_v42 = vmul.f32 -1.442695, %v4344_v19 }
 0x7b9   : > { %v10206_v62 = vpop.f32.mrb[235].mxu0  ;;  %v7917_v0 = vpop.eup %7916  ;;  %7936 = vrcp.f32 %v5509_v35  ;;  %v5515_v12 = vadd.f32 1.0, %v7915_v56  ;;  %4652 = vmatprep.mubr.bf16.mxu1 %v8810_v63  ;;  %v4155_v39 = vadd.f32 %v10204_v15, %v10178_v50  ;;  %v6721_v11 = vmul.f32 -1.442695, %v4153_v57 }
 0x7ba   : > { %v7919_v2 = vpop.eup %7918  ;;  %7938 = vrcp.f32 %v5513_v48  ;;  %v5514_v3 = vadd.f32 1.0, %v7917_v0  ;;  %v4348_v4 = vadd.f32 %v10206_v62, %v10180_v61  ;;  %v6723_v62 = vmul.f32 -1.442695, %v4346_v54 }
 0x7bb   : > { %v7921_v10 = vpop.eup %7920  ;;  %7940 = vrcp.f32 %v5515_v12  ;;  %v5516_v23 = vadd.f32 1.0, %v7919_v2  ;;  %v4158_v45 = vpop.f32.mrb[204].mxu1 }
 0x7bc   : > { %v7923_v36 = vpop.eup %7922  ;;  %7942 = vrcp.f32 %v5514_v3  ;;  %v5520_v52 = vadd.f32 1.0, %v7921_v10  ;;  %v10213_v13 = vpop.f32.mrb[236].mxu0  ;;  %v4159_v35 = vadd.f32 %v4158_v45, %v10174_v58  ;;  %v6722_v10 = vmul.f32 -1.442695, %v4155_v39 }
 0x7bd   : > { %v7925_v8 = vpop.eup %7924  ;;  %7944 = vrcp.f32 %v5516_v23  ;;  %v5522_v31 = vadd.f32 1.0, %v7923_v36  ;;  %v10215_v32 = vpop.f32.mrb[205].mxu1  ;;  %v4352_v0 = vadd.f32 %v10213_v13, %v10176_v60  ;;  %v6724_v38 = vmul.f32 -1.442695, %v4348_v4 }
 0x7be   : > { %v7927_v24 = vpop.eup %7926  ;;  %7946 = vrcp.f32 %v5520_v52  ;;  %v5521_v1 = vadd.f32 1.0, %v7925_v8  ;;  %v10225_v5 = vpop.f32.mrb[237].mxu0  ;;  %v6728_v52 = vmul.f32 -1.442695, %v4159_v35  ;;  %v4161_v39 = vadd.f32 %v10215_v32, %v10178_v50 }
 0x7bf   : > { %v10227_v27 = vpop.f32.mrb[206].mxu1  ;;  %v7929_v9 = vpop.eup %7928  ;;  %7948 = vrcp.f32 %v5522_v31  ;;  %v5523_v28 = vadd.f32 1.0, %v7927_v24  ;;  %v6730_v45 = vmul.f32 -1.442695, %v4352_v0 }
 0x7c0   : > { %v10230_v25 = vpop.f32.mrb[238].mxu0  ;;  %v10232_v7 = vpop.f32.mrb[207].mxu1  ;;  %7950 = vrcp.f32 %v5521_v1  ;;  %v5527_v33 = vadd.f32 1.0, %v7929_v9  ;;  %4653 = vmatmul.mubr.bf16.gmra.mrb[56].mxu1 %v10119_v53  ;;  %v6715_v53 = vmul.f32 -1.442695, %v4151_v44  ;;  %v4163_v32 = vadd.f32 %v10227_v27, %v10174_v58 }
 0x7c1   : > { %v7931_v6 = vpop.eup %7930  ;;  %v10235_v30 = vpop.f32.mrb[239].mxu0  ;;  %7952 = vrcp.f32 %v5523_v28  ;;  %4662 = vmatprep.mubr.bf16.mxu1 %v8810_v63  ;;  %v4165_v27 = vadd.f32 %v10232_v7, %v10178_v50 }
 0x7c2   : > { %v7933_v41 = vpop.eup %7932  ;;  %6178 = vst [vmem:[%s10222_s25] sm:$0xff] %v7931_v6  ;;  %7954 = vrcp.f32 %v5527_v33 }
 0x7c3   : > { %v7935_v16 = vpop.eup %7934  ;;  %6180 = vst [vmem:[%s10222_s25 + $0x10] sm:$0xff] %v7933_v41  ;;  %7956 = vpow2.f32 %v6709_v37  ;;  %v10250_v20 = vpop.f32.mrb[208].mxu1 }
 0x7c4   : > { %v7937_v49 = vpop.eup %7936  ;;  %6179 = vst [vmem:[%s10222_s25 + $0x8] sm:$0xff] %v7935_v16  ;;  %7958 = vpow2.f32 %v6708_v26  ;;  %v10252_v22 = vpop.f32.mrb[240].mxu0 }
 0x7c5   : > { %v7939_v59 = vpop.eup %7938  ;;  %6181 = vst [vmem:[%s10222_s25 + $0x18] sm:$0xff] %v7937_v49  ;;  %7960 = vpow2.f32 %v6710_v43  ;;  %v10257_v14 = vpop.f32.mrb[209].mxu1 }
 0x7c6   : > { %v7941_v63 = vpop.eup %7940  ;;  %6185 = vst [vmem:[%s10222_s25 + $0x38] sm:$0xff] %v7939_v59  ;;  %v10259_v17 = vpop.f32.mrb[241].mxu0  ;;  %7962 = vpow2.f32 %v6714_v46 }
 0x7c7   : > { %v7943_v40 = vpop.eup %7942  ;;  %6187 = vst [vmem:[%s10222_s25 + $0x48] sm:$0xff] %v7941_v63  ;;  %v10263_v15 = vpop.f32.mrb[210].mxu1  ;;  %7964 = vpow2.f32 %v6716_v34 }
 0x7c8   : > { %v10265_v56 = vpop.f32.mrb[242].mxu0  ;;  %v7945_v48 = vpop.eup %7944  ;;  %6186 = vst [vmem:[%s10222_s25 + $0x40] sm:$0xff] %v7943_v40  ;;  %7966 = vpow2.f32 %v6715_v53  ;;  %4663 = vmatmul.mubr.bf16.gmra.mrb[60].mxu1 %v10117_v47 }
 0x7c9   : > { %v10270_v12 = vpop.f32.mrb[211].mxu1  ;;  %v10272_v2 = vpop.f32.mrb[243].mxu0  ;;  %6188 = vst [vmem:[%s10222_s25 + $0x50] sm:$0xff] %v7945_v48  ;;  %7968 = vpow2.f32 %v6717_v42 }
 0x7ca   : > { %v7947_v3 = vpop.eup %7946  ;;  %7970 = vpow2.f32 %v6721_v11  ;;  %v4354_v11 = vadd.f32 %v10225_v5, %v10180_v61  ;;  %v4356_v5 = vadd.f32 %v10230_v25, %v10176_v60  ;;  %v6735_v25 = vmul.f32 -1.442695, %v4163_v32 }
 0x7cb   : > { %v7949_v23 = vpop.eup %7948  ;;  %6192 = vst [vmem:[%s10222_s25 + $0x70] sm:$0xff] %v7947_v3  ;;  %7972 = vpow2.f32 %v6723_v62  ;;  %v10280_v31 = vpop.f32.mrb[212].mxu1 }
 0x7cc   : > { %v7951_v36 = vpop.eup %7950  ;;  %6194 = vst [vmem:[%s10222_s25 + $0x80] sm:$0xff] %v7949_v23  ;;  %7974 = vpow2.f32 %v6722_v10  ;;  %v10282_v51 = vpop.f32.mrb[244].mxu0  ;;  %v6737_v7 = vmul.f32 -1.442695, %v4356_v5 }
 0x7cd   : > { %v7953_v55 = vpop.eup %7952  ;;  %6193 = vst [vmem:[%s10222_s25 + $0x78] sm:$0xff] %v7951_v36  ;;  %7976 = vpow2.f32 %v6724_v38  ;;  %v10285_v24 = vpop.f32.mrb[213].mxu1 }
 0x7ce   : > { %v7955_v8 = vpop.eup %7954  ;;  %6195 = vst [vmem:[%s10222_s25 + $0x88] sm:$0xff] %v7953_v55  ;;  %v10287_v47 = vpop.f32.mrb[245].mxu0  ;;  %7978 = vpow2.f32 %v6728_v52 }
 0x7cf   : > { %v7957_v13 = vpop.eup %7956  ;;  %6199 = vst [vmem:[%s10222_s25 + $0xa8] sm:$0xff] %v7955_v8  ;;  %v10289_v9 = vpop.f32.mrb[214].mxu1  ;;  %7980 = vpow2.f32 %v6730_v45  ;;  %v6729_v45 = vmul.f32 -1.442695, %v4161_v39  ;;  %v4173_v39 = vadd.f32 %v10263_v15, %v10174_v58  ;;  %v4175_v15 = vadd.f32 %v10270_v12, %v10178_v50 }
 0x7d0   : > { %v7959_v1 = vpop.eup %7958  ;;  %v5529_v18 = vadd.f32 1.0, %v7957_v13  ;;  %v10291_v28 = vpop.f32.mrb[246].mxu0 }
 0x7d1   : > { %v7961_v37 = vpop.eup %7960  ;;  %v5528_v29 = vadd.f32 1.0, %v7959_v1  ;;  %v10293_v6 = vpop.f32.mrb[215].mxu1  ;;  %v6731_v1 = vmul.f32 -1.442695, %v4354_v11 }
 0x7d2   : > { %v7963_v33 = vpop.eup %7962  ;;  %7982 = vrcp.f32 %v5529_v18  ;;  %v5530_v26 = vadd.f32 1.0, %v7961_v37  ;;  %v10295_v44 = vpop.f32.mrb[247].mxu0  ;;  %v4358_v18 = vadd.f32 %v10235_v30, %v10180_v61 }
 0x7d3   : > { %v7965_v41 = vpop.eup %7964  ;;  %7984 = vrcp.f32 %v5528_v29  ;;  %v5534_v43 = vadd.f32 1.0, %v7963_v33  ;;  %v10297_v54 = vpop.f32.mrb[216].mxu1  ;;  %v4169_v29 = vadd.f32 %v10250_v20, %v10174_v58  ;;  %v4171_v20 = vadd.f32 %v10257_v14, %v10178_v50 }
 0x7d4   : > { %v7967_v19 = vpop.eup %7966  ;;  %7986 = vrcp.f32 %v5530_v26  ;;  %v5536_v16 = vadd.f32 1.0, %v7965_v41  ;;  %v10301_v63 = vpop.f32.mrb[248].mxu0  ;;  %v4362_v26 = vadd.f32 %v10252_v22, %v10176_v60  ;;  %v6738_v22 = vmul.f32 -1.442695, %v4358_v18 }
 0x7d5   : > { %v7969_v46 = vpop.eup %7968  ;;  %7988 = vrcp.f32 %v5534_v43  ;;  %v5535_v57 = vadd.f32 1.0, %v7967_v19  ;;  %v10303_v42 = vpop.f32.mrb[217].mxu1  ;;  %v6736_v19 = vmul.f32 -1.442695, %v4165_v27  ;;  %v6742_v14 = vmul.f32 -1.442695, %v4169_v29 }
 0x7d6   : > { %v7971_v49 = vpop.eup %7970  ;;  %7990 = vrcp.f32 %v5536_v16  ;;  %v5537_v34 = vadd.f32 1.0, %v7969_v46  ;;  %v10307_v35 = vpop.f32.mrb[249].mxu0  ;;  %v6743_v32 = vmul.f32 -1.442695, %v4171_v20 }
 0x7d7   : > { %v7973_v59 = vpop.eup %7972  ;;  %7992 = vrcp.f32 %v5535_v57  ;;  %v5541_v53 = vadd.f32 1.0, %v7971_v49  ;;  %v10309_v48 = vpop.f32.mrb[218].mxu1  ;;  %v4364_v49 = vadd.f32 %v10259_v17, %v10180_v61  ;;  %v6744_v17 = vmul.f32 -1.442695, %v4362_v26 }
 0x7d8   : > { %v7975_v4 = vpop.eup %7974  ;;  %7994 = vrcp.f32 %v5537_v34  ;;  %v5543_v40 = vadd.f32 1.0, %v7973_v59  ;;  %v10313_v3 = vpop.f32.mrb[250].mxu0 }
 0x7d9   : > { %v7977_v62 = vpop.eup %7976  ;;  %7996 = vrcp.f32 %v5541_v53  ;;  %v5542_v0 = vadd.f32 1.0, %v7975_v4  ;;  %v10315_v10 = vpop.f32.mrb[219].mxu1 }
 0x7da   : > { %v7979_v23 = vpop.eup %7978  ;;  %7998 = vrcp.f32 %v5543_v40  ;;  %v5544_v38 = vadd.f32 1.0, %v7977_v62  ;;  %v10319_v36 = vpop.f32.mrb[251].mxu0  ;;  %v4366_v62 = vadd.f32 %v10265_v56, %v10176_v60 }
 0x7db   : > { %v7981_v52 = vpop.eup %7980  ;;  %8000 = vrcp.f32 %v5542_v0  ;;  %v5548_v55 = vadd.f32 1.0, %v7979_v23  ;;  %v10331_v41 = vpop.f32.mrb[220].mxu1 }
 0x7dc   : > { %v7983_v8 = vpop.eup %7982  ;;  %8002 = vrcp.f32 %v5544_v38  ;;  %v5550_v13 = vadd.f32 1.0, %v7981_v52  ;;  %v10333_v43 = vpop.f32.mrb[252].mxu0  ;;  %v6745_v38 = vmul.f32 -1.442695, %v4364_v49  ;;  %v6749_v52 = vmul.f32 -1.442695, %v4173_v39 }
 0x7dd   : > { %v7985_v37 = vpop.eup %7984  ;;  %6201 = vst [vmem:[%s10222_s25 + $0xb8] sm:$0xff] %v7983_v8  ;;  %8004 = vrcp.f32 %v5548_v55  ;;  %v10338_v16 = vpop.f32.mrb[221].mxu1  ;;  %v6751_v56 = vmul.f32 -1.442695, %v4366_v62  ;;  %v6750_v8 = vmul.f32 -1.442695, %v4175_v15 }
 0x7de   : > { %v7987_v33 = vpop.eup %7986  ;;  %6200 = vst [vmem:[%s10222_s25 + $0xb0] sm:$0xff] %v7985_v37  ;;  %8006 = vrcp.f32 %v5550_v13  ;;  %v10340_v46 = vpop.f32.mrb[253].mxu0 }
 0x7df   : > { %v7989_v30 = vpop.eup %7988  ;;  %6202 = vst [vmem:[%s10222_s25 + $0xc0] sm:$0xff] %v7987_v33  ;;  %8008 = vpow2.f32 %v6729_v45  ;;  %v10345_v34 = vpop.f32.mrb[222].mxu1 }
 0x7e0   : > { %v7991_v57 = vpop.eup %7990  ;;  %6206 = vst [vmem:[%s10222_s25 + $0xe0] sm:$0xff] %v7989_v30  ;;  %8010 = vpow2.f32 %v6731_v1  ;;  %v10347_v59 = vpop.f32.mrb[254].mxu0 }
 0x7e1   : > { %v7993_v53 = vpop.eup %7992  ;;  %6208 = vst [vmem:[%s10222_s25 + $0xf0] sm:$0xff] %v7991_v57  ;;  %8012 = vpow2.f32 %v6735_v25  ;;  %v10352_v4 = vpop.f32.mrb[223].mxu1 }
 0x7e2   : > { %v10354_v40 = vpop.f32.mrb[255].mxu0  ;;  %v7995_v11 = vpop.eup %7994  ;;  %6207 = vst [vmem:[%s10222_s25 + $0xe8] sm:$0xff] %v7993_v53  ;;  %8014 = vpow2.f32 %v6737_v7 }
 0x7e3   : > { %v7997_v0 = vpop.eup %7996  ;;  %6209 = vst [vmem:[%s10222_s25 + $0xf8] sm:$0xff] %v7995_v11  ;;  %8016 = vpow2.f32 %v6736_v19  ;;  %v10365_v45 = vpop.f32.mrb[224].mxu1 }
 0x7e4   : > { %v7999_v23 = vpop.eup %7998  ;;  %6213 = vst [vmem:[%s10222_s25 + $0x118] sm:$0xff] %v7997_v0  ;;  %8018 = vpow2.f32 %v6738_v22  ;;  %v10367_v27 = vpop.f32.mrb[0].mxu0 }
 0x7e5   : > { %v8001_v5 = vpop.eup %8000  ;;  %6215 = vst [vmem:[%s10222_s25 + $0x128] sm:$0xff] %v7999_v23  ;;  %8020 = vpow2.f32 %v6742_v14  ;;  %v10370_v13 = vpop.f32.mrb[225].mxu1 }
 0x7e6   : > { %v8003_v55 = vpop.eup %8002  ;;  %6214 = vst [vmem:[%s10222_s25 + $0x120] sm:$0xff] %v8001_v5  ;;  %8022 = vpow2.f32 %v6744_v17  ;;  %v10372_v1 = vpop.f32.mrb[1].mxu0 }
 0x7e7   : > { %v8005_v12 = vpop.eup %8004  ;;  %6216 = vst [vmem:[%s10222_s25 + $0x130] sm:$0xff] %v8003_v55  ;;  %8024 = vpow2.f32 %v6743_v32  ;;  %v10375_v37 = vpop.f32.mrb[226].mxu1 }
 0x7e8   : > { %v8007_v18 = vpop.eup %8006  ;;  %6220 = vst [vmem:[%s10222_s25 + $0x150] sm:$0xff] %v8005_v12  ;;  %8026 = vpow2.f32 %v6745_v38  ;;  %v10377_v25 = vpop.f32.mrb[2].mxu0 }
 0x7e9   : > { %v8009_v29 = vpop.eup %8008  ;;  %6222 = vst [vmem:[%s10222_s25 + $0x160] sm:$0xff] %v8007_v18  ;;  %8028 = vpow2.f32 %v6749_v52  ;;  %v10380_v33 = vpop.f32.mrb[227].mxu1 }
 0x7ea   : > { %v10382_v7 = vpop.f32.mrb[3].mxu0  ;;  %v8011_v26 = vpop.eup %8010  ;;  %v5549_v30 = vadd.f32 1.0, %v8009_v29  ;;  %8030 = vpow2.f32 %v6751_v56  ;;  %v4368_v56 = vadd.f32 %v10272_v2, %v10180_v61 }
 0x7eb   : > { %v8013_v19 = vpop.eup %8012  ;;  %v5551_v20 = vadd.f32 1.0, %v8011_v26  ;;  %8032 = vpow2.f32 %v6750_v8  ;;  %v10384_v11 = vpop.f32.mrb[228].mxu1  ;;  %v4179_v26 = vadd.f32 %v10280_v31, %v10174_v58  ;;  %v4374_v31 = vadd.f32 %v10287_v47, %v10180_v61 }
 0x7ec   : > { %v8015_v57 = vpop.eup %8014  ;;  %8034 = vrcp.f32 %v5549_v30  ;;  %v5555_v22 = vadd.f32 1.0, %v8013_v19  ;;  %v10386_v0 = vpop.f32.mrb[4].mxu0 }
 0x7ed   : > { %v8017_v49 = vpop.eup %8016  ;;  %8036 = vrcp.f32 %v5551_v20  ;;  %v5557_v53 = vadd.f32 1.0, %v8015_v57  ;;  %v10388_v32 = vpop.f32.mrb[229].mxu1  ;;  %v4372_v57 = vadd.f32 %v10282_v51, %v10176_v60  ;;  %v4183_v51 = vadd.f32 %v10289_v9, %v10174_v58 }
 0x7ee   : > { %v8019_v14 = vpop.eup %8018  ;;  %8038 = vrcp.f32 %v5555_v22  ;;  %v5556_v39 = vadd.f32 1.0, %v8017_v49  ;;  %v10390_v38 = vpop.f32.mrb[5].mxu0  ;;  %v4181_v49 = vadd.f32 %v10285_v24, %v10178_v50  ;;  %v4185_v9 = vadd.f32 %v10293_v6, %v10178_v50 }
 0x7ef   : > { %v8021_v17 = vpop.eup %8020  ;;  %8040 = vrcp.f32 %v5557_v53  ;;  %v5558_v62 = vadd.f32 1.0, %v8019_v14  ;;  %v10392_v5 = vpop.f32.mrb[230].mxu1  ;;  %v6758_v24 = vmul.f32 -1.442695, %v4372_v57  ;;  %v4378_v57 = vadd.f32 %v10295_v44, %v10180_v61 }
 0x7f0   : > { %v8023_v15 = vpop.eup %8022  ;;  %8042 = vrcp.f32 %v5556_v39  ;;  %v5562_v23 = vadd.f32 1.0, %v8021_v17  ;;  %v10396_v12 = vpop.f32.mrb[6].mxu0  ;;  %v6752_v39 = vmul.f32 -1.442695, %v4368_v56  ;;  %v6763_v6 = vmul.f32 -1.442695, %v4183_v51 }
 0x7f1   : > { %v8025_v52 = vpop.eup %8024  ;;  %8044 = vrcp.f32 %v5558_v62  ;;  %v5564_v55 = vadd.f32 1.0, %v8023_v15  ;;  %v10398_v8 = vpop.f32.mrb[231].mxu1  ;;  %v6756_v15 = vmul.f32 -1.442695, %v4179_v26  ;;  %v4382_v44 = vadd.f32 %v10301_v63, %v10176_v60 }
 0x7f2   : > { %v8027_v18 = vpop.eup %8026  ;;  %8046 = vrcp.f32 %v5562_v23  ;;  %v5563_v29 = vadd.f32 1.0, %v8025_v52  ;;  %v10402_v30 = vpop.f32.mrb[7].mxu0 }
 0x7f3   : > { %v8029_v19 = vpop.eup %8028  ;;  %8048 = vrcp.f32 %v5564_v55  ;;  %v5565_v20 = vadd.f32 1.0, %v8027_v18  ;;  %v10412_v23 = vpop.f32.mrb[232].mxu1  ;;  %v4376_v55 = vadd.f32 %v10291_v28, %v10176_v60  ;;  %v6759_v28 = vmul.f32 -1.442695, %v4374_v31 }
 0x7f4   : > { %v8031_v22 = vpop.eup %8030  ;;  %8050 = vrcp.f32 %v5563_v29  ;;  %v5569_v2 = vadd.f32 1.0, %v8029_v19  ;;  %v10417_v56 = vpop.f32.mrb[8].mxu0  ;;  %v6757_v29 = vmul.f32 -1.442695, %v4181_v49 }
 0x7f5   : > { %v8033_v53 = vpop.eup %8032  ;;  %8052 = vrcp.f32 %v5565_v20  ;;  %v5571_v14 = vadd.f32 1.0, %v8031_v22  ;;  %v10419_v47 = vpop.f32.mrb[233].mxu1  ;;  %v6765_v31 = vmul.f32 -1.442695, %v4376_v55 }
 0x7f6   : > { %v8035_v17 = vpop.eup %8034  ;;  %8054 = vrcp.f32 %v5569_v2  ;;  %v5570_v62 = vadd.f32 1.0, %v8033_v53  ;;  %v10424_v26 = vpop.f32.mrb[9].mxu0  ;;  %v4189_v53 = vadd.f32 %v10297_v54, %v10174_v58  ;;  %v6766_v54 = vmul.f32 -1.442695, %v4378_v57 }
 0x7f7   : > { %v8037_v52 = vpop.eup %8036  ;;  %6221 = vst [vmem:[%s10222_s25 + $0x158] sm:$0xff] %v8035_v17  ;;  %8056 = vrcp.f32 %v5571_v14  ;;  %v10426_v19 = vpop.f32.mrb[234].mxu1 }
 0x7f8   : > { %v8039_v18 = vpop.eup %8038  ;;  %6223 = vst [vmem:[%s10222_s25 + $0x168] sm:$0xff] %v8037_v52  ;;  %8058 = vrcp.f32 %v5570_v62  ;;  %v10431_v22 = vpop.f32.mrb[10].mxu0  ;;  %v6764_v62 = vmul.f32 -1.442695, %v4185_v9  ;;  %v4384_v52 = vadd.f32 %v10307_v35, %v10180_v61  ;;  %v6770_v63 = vmul.f32 -1.442695, %v4189_v53 }
 0x7f9   : > { %v8041_v20 = vpop.eup %8040  ;;  %6227 = vst [vmem:[%s10222_s25 + $0x188] sm:$0xff] %v8039_v18  ;;  %8060 = vpow2.f32 %v6752_v39  ;;  %v10433_v2 = vpop.f32.mrb[235].mxu1 }
 0x7fa   : > { %v8043_v49 = vpop.eup %8042  ;;  %6229 = vst [vmem:[%s10222_s25 + $0x198] sm:$0xff] %v8041_v20  ;;  %8062 = vpow2.f32 %v6756_v15  ;;  %v10438_v14 = vpop.f32.mrb[11].mxu0  ;;  %v4191_v15 = vadd.f32 %v10303_v42, %v10178_v50  ;;  %v6772_v42 = vmul.f32 -1.442695, %v4382_v44  ;;  %v6773_v53 = vmul.f32 -1.442695, %v4384_v52 }
 0x7fb   : > { %v8045_v39 = vpop.eup %8044  ;;  %6228 = vst [vmem:[%s10222_s25 + $0x190] sm:$0xff] %v8043_v49  ;;  %8064 = vpow2.f32 %v6758_v24  ;;  %v10450_v55 = vpop.f32.mrb[236].mxu1 }
 0x7fc   : > { %v8047_v17 = vpop.eup %8046  ;;  %6230 = vst [vmem:[%s10222_s25 + $0x1a0] sm:$0xff] %v8045_v39  ;;  %8066 = vpow2.f32 %v6757_v29  ;;  %v10452_v18 = vpop.f32.mrb[12].mxu0  ;;  %v6771_v35 = vmul.f32 -1.442695, %v4191_v15 }
 0x7fd   : > { %v8049_v51 = vpop.eup %8048  ;;  %6234 = vst [vmem:[%s10222_s25 + $0x1c0] sm:$0xff] %v8047_v17  ;;  %8068 = vpow2.f32 %v6759_v28  ;;  %v10455_v9 = vpop.f32.mrb[237].mxu1 }
 0x7fe   : > { %v8051_v24 = vpop.eup %8050  ;;  %6236 = vst [vmem:[%s10222_s25 + $0x1d0] sm:$0xff] %v8049_v51  ;;  %8070 = vpow2.f32 %v6763_v6  ;;  %v10457_v20 = vpop.f32.mrb[13].mxu0 }
 0x7ff   : > { %v8053_v29 = vpop.eup %8052  ;;  %6235 = vst [vmem:[%s10222_s25 + $0x1c8] sm:$0xff] %v8051_v24  ;;  %8072 = vpow2.f32 %v6765_v31  ;;  %v10460_v57 = vpop.f32.mrb[238].mxu1 }
 0x800   : > { %v8055_v28 = vpop.eup %8054  ;;  %6237 = vst [vmem:[%s10222_s25 + $0x1d8] sm:$0xff] %v8053_v29  ;;  %8074 = vpow2.f32 %v6764_v62  ;;  %v10462_v49 = vpop.f32.mrb[14].mxu0 }
 0x801   : > { %v8057_v6 = vpop.eup %8056  ;;  %6241 = vst [vmem:[%s10222_s25 + $0x1f8] sm:$0xff] %v8055_v28  ;;  %8076 = vpow2.f32 %v6766_v54  ;;  %v10465_v39 = vpop.f32.mrb[239].mxu1 }
 0x802   : > { %v10467_v31 = vpop.f32.mrb[15].mxu0  ;;  %v8059_v44 = vpop.eup %8058  ;;  %6243 = vst [vmem:[%s10222_s25 + $0x208] sm:$0xff] %v8057_v6  ;;  %8078 = vpow2.f32 %v6770_v63 }
 0x803   : > { %v8061_v17 = vpop.eup %8060  ;;  %6242 = vst [vmem:[%s10222_s25 + $0x200] sm:$0xff] %v8059_v44  ;;  %8080 = vpow2.f32 %v6772_v42  ;;  %v10471_v52 = vpop.f32.mrb[240].mxu1 }
 0x804   : > { %v8063_v62 = vpop.eup %8062  ;;  %v5572_v15 = vadd.f32 1.0, %v8061_v17  ;;  %8082 = vpow2.f32 %v6771_v35  ;;  %v10473_v28 = vpop.f32.mrb[16].mxu0 }
 0x805   : > { %v8065_v51 = vpop.eup %8064  ;;  %v5576_v24 = vadd.f32 1.0, %v8063_v62  ;;  %8084 = vpow2.f32 %v6773_v53  ;;  %11302 = vst [vmem:[#allocation3_spill] sm:$0xff] %v10473_v28  ;;  %v10475_v63 = vpop.f32.mrb[241].mxu1 }
 0x806   : > { %v8067_v29 = vpop.eup %8066  ;;  %8086 = vrcp.f32 %v5572_v15  ;;  %v5578_v54 = vadd.f32 1.0, %v8065_v51  ;;  %11303 = vst [vmem:[#allocation4_spill] sm:$0xff] %v10475_v63  ;;  %v10477_v44 = vpop.f32.mrb[17].mxu0 }
 0x807   : > { %v8069_v21 = vpop.eup %8068  ;;  %8088 = vrcp.f32 %v5576_v24  ;;  %v5577_v6 = vadd.f32 1.0, %v8067_v29  ;;  %11304 = vst [vmem:[#allocation5_spill] sm:$0xff] %v10477_v44  ;;  %v10479_v17 = vpop.f32.mrb[242].mxu1 }
 0x808   : > { %v8071_v42 = vpop.eup %8070  ;;  %8090 = vrcp.f32 %v5578_v54  ;;  %v5579_v35 = vadd.f32 1.0, %v8069_v21  ;;  %11305 = vst [vmem:[#allocation6_spill] sm:$0xff] %v10479_v17  ;;  %v10481_v53 = vpop.f32.mrb[18].mxu0  ;;  %v4193_v21 = vadd.f32 %v10309_v48, %v10174_v58 }
 0x809   : > { %v8073_v62 = vpop.eup %8072  ;;  %8092 = vrcp.f32 %v5577_v6  ;;  %v5583_v15 = vadd.f32 1.0, %v8071_v42  ;;  %v10483_v51 = vpop.f32.mrb[243].mxu1  ;;  %v4386_v6 = vadd.f32 %v10313_v3, %v10176_v60  ;;  %v4199_v3 = vadd.f32 %v10331_v41, %v10174_v58 }
 0x80a   : > { %11306 = vst [vmem:[#allocation7_spill] sm:$0xff] %v10483_v51  ;;  %v8075_v28 = vpop.eup %8074  ;;  %8094 = vrcp.f32 %v5579_v35  ;;  %v5585_v24 = vadd.f32 1.0, %v8073_v62  ;;  %v10485_v29 = vpop.f32.mrb[19].mxu0  ;;  %v4195_v35 = vadd.f32 %v10315_v10, %v10178_v50 }
 0x80b   : > { %11307 = vst [vmem:[#allocation8_spill] sm:$0xff] %v10485_v29  ;;  %v8077_v63 = vpop.eup %8076  ;;  %8096 = vrcp.f32 %v5583_v15  ;;  %v5584_v44 = vadd.f32 1.0, %v8075_v28  ;;  %v4388_v28 = vadd.f32 %v10319_v36, %v10180_v61  ;;  %v10495_v15 = vpop.f32.mrb[244].mxu1  ;;  %v4392_v36 = vadd.f32 %v10333_v43, %v10176_v60 }
 0x80c   : > { %v8079_v54 = vpop.eup %8078  ;;  %8098 = vrcp.f32 %v5585_v24  ;;  %v5586_v17 = vadd.f32 1.0, %v8077_v63  ;;  %11308 = vst [vmem:[#allocation9_spill] sm:$0xff] %v10495_v15  ;;  %v6777_v24 = vmul.f32 -1.442695, %v4193_v21  ;;  %v6778_v41 = vmul.f32 -1.442695, %v4195_v35 }
 0x80d   : > { %v8081_v42 = vpop.eup %8080  ;;  %8100 = vrcp.f32 %v5584_v44  ;;  %v5590_v51 = vadd.f32 1.0, %v8079_v54  ;;  %v10499_v44 = vpop.f32.mrb[20].mxu0  ;;  %v6780_v43 = vmul.f32 -1.442695, %v4388_v28  ;;  %v6784_v35 = vmul.f32 -1.442695, %v4199_v3 }
 0x80e   : > { %v8083_v62 = vpop.eup %8082  ;;  %8102 = vrcp.f32 %v5586_v17  ;;  %v5592_v29 = vadd.f32 1.0, %v8081_v42  ;;  %v10501_v54 = vpop.f32.mrb[245].mxu1  ;;  %v6779_v42 = vmul.f32 -1.442695, %v4386_v6  ;;  %v4396_v28 = vadd.f32 %v10347_v59, %v10176_v60 }
 0x80f   : > { %v8085_v48 = vpop.eup %8084  ;;  %8104 = vrcp.f32 %v5590_v51  ;;  %v5591_v63 = vadd.f32 1.0, %v8083_v62  ;;  %11309 = vst [vmem:[#allocation10_spill] sm:$0xff] %v10501_v54  ;;  %v10505_v15 = vpop.f32.mrb[21].mxu0  ;;  %v4201_v62 = vadd.f32 %v10338_v16, %v10178_v50  ;;  %v4203_v16 = vadd.f32 %v10345_v34, %v10174_v58 }
 0x810   : > { %v8087_v10 = vpop.eup %8086  ;;  %8106 = vrcp.f32 %v5592_v29  ;;  %v5593_v17 = vadd.f32 1.0, %v8085_v48  ;;  %v10507_v51 = vpop.f32.mrb[246].mxu1  ;;  %v4394_v48 = vadd.f32 %v10340_v46, %v10180_v61  ;;  %v4398_v3 = vadd.f32 %v10354_v40, %v10180_v61 }
 0x811   : > { %11310 = vst [vmem:[#allocation11_spill] sm:$0xff] %v10507_v51  ;;  %v8089_v21 = vpop.eup %8088  ;;  %6244 = vst [vmem:[%s10222_s25 + $0x210] sm:$0xff] %v8087_v10  ;;  %8108 = vrcp.f32 %v5591_v63  ;;  %v10512_v54 = vpop.f32.mrb[22].mxu0  ;;  %v6785_v46 = vmul.f32 -1.442695, %v4201_v62 }
 0x812   : > { %v10514_v29 = vpop.f32.mrb[247].mxu1  ;;  %v8091_v6 = vpop.eup %8090  ;;  %6248 = vst [vmem:[%s10222_s25 + $0x230] sm:$0xff] %v8089_v21  ;;  %8110 = vrcp.f32 %v5593_v17  ;;  %v6786_v21 = vmul.f32 -1.442695, %v4392_v36  ;;  %v6787_v34 = vmul.f32 -1.442695, %v4394_v48 }
 0x813   : > { %v10519_v51 = vpop.f32.mrb[23].mxu0  ;;  %v8093_v63 = vpop.eup %8092  ;;  %6250 = vst [vmem:[%s10222_s25 + $0x240] sm:$0xff] %v8091_v6  ;;  %8112 = vpow2.f32 %v6777_v24  ;;  %v4205_v6 = vadd.f32 %v10352_v4, %v10178_v50  ;;  %v4209_v4 = vadd.f32 %v10365_v45, %v10174_v58  ;;  %v6793_v40 = vmul.f32 -1.442695, %v4396_v28 }
 0x814   : > { %v8095_v10 = vpop.eup %8094  ;;  %6249 = vst [vmem:[%s10222_s25 + $0x238] sm:$0xff] %v8093_v63  ;;  %8114 = vpow2.f32 %v6779_v42  ;;  %v10533_v42 = vpop.f32.mrb[248].mxu1 }
 0x815   : > { %v8097_v17 = vpop.eup %8096  ;;  %6251 = vst [vmem:[%s10222_s25 + $0x248] sm:$0xff] %v8095_v10  ;;  %8116 = vpow2.f32 %v6778_v41  ;;  %v10535_v36 = vpop.f32.mrb[24].mxu0  ;;  %v6791_v41 = vmul.f32 -1.442695, %v4203_v16  ;;  %v6792_v45 = vmul.f32 -1.442695, %v4205_v6 }
 0x816   : > { %v8099_v24 = vpop.eup %8098  ;;  %6255 = vst [vmem:[%s10222_s25 + $0x268] sm:$0xff] %v8097_v17  ;;  %8118 = vpow2.f32 %v6780_v43  ;;  %v10540_v62 = vpop.f32.mrb[249].mxu1  ;;  %v6798_v28 = vmul.f32 -1.442695, %v4209_v4 }
 0x817   : > { %v8101_v59 = vpop.eup %8100  ;;  %6257 = vst [vmem:[%s10222_s25 + $0x278] sm:$0xff] %v8099_v24  ;;  %8120 = vpow2.f32 %v6784_v35  ;;  %v10542_v43 = vpop.f32.mrb[25].mxu0 }
 0x818   : > { %v8103_v48 = vpop.eup %8102  ;;  %6256 = vst [vmem:[%s10222_s25 + $0x270] sm:$0xff] %v8101_v59  ;;  %8122 = vpow2.f32 %v6786_v21  ;;  %v10545_v63 = vpop.f32.mrb[250].mxu1  ;;  %v6794_v59 = vmul.f32 -1.442695, %v4398_v3 }
 0x819   : > { %11311 = vst [vmem:[#allocation12_spill] sm:$0xff] %v10545_v63  ;;  %v10547_v10 = vpop.f32.mrb[26].mxu0  ;;  %v8105_v35 = vpop.eup %8104  ;;  %6258 = vst [vmem:[%s10222_s25 + $0x280] sm:$0xff] %v8103_v48  ;;  %8124 = vpow2.f32 %v6785_v46 }
 0x81a   : > { %11312 = vst [vmem:[#allocation13_spill] sm:$0xff] %v10547_v10  ;;  %v10550_v16 = vpop.f32.mrb[251].mxu1  ;;  %v10552_v17 = vpop.f32.mrb[27].mxu0  ;;  %6262 = vst [vmem:[%s10222_s25 + $0x2a0] sm:$0xff] %v8105_v35  ;;  %8126 = vpow2.f32 %v6787_v34 }
 0x81b   : > { %11313 = vst [vmem:[#allocation14_spill] sm:$0xff] %v10552_v17  ;;  %v8107_v24 = vpop.eup %8106  ;;  %8128 = vpow2.f32 %v6791_v41  ;;  %v10558_v48 = vpop.f32.mrb[252].mxu1 }
 0x81c   : > { %v8109_v21 = vpop.eup %8108  ;;  %6264 = vst [vmem:[%s10222_s25 + $0x2b0] sm:$0xff] %v8107_v24  ;;  %8130 = vpow2.f32 %v6793_v40  ;;  %v10560_v17 = vpop.f32.mrb[28].mxu0 }
 0x81d   : > { %v8111_v63 = vpop.eup %8110  ;;  %6263 = vst [vmem:[%s10222_s25 + $0x2a8] sm:$0xff] %v8109_v21  ;;  %8132 = vpow2.f32 %v6792_v45  ;;  %11314 = vst [vmem:[#allocation15_spill] sm:$0xff] %v10560_v17  ;;  %v10562_v3 = vpop.f32.mrb[253].mxu1 }
 0x81e   : > { %v8113_v10 = vpop.eup %8112  ;;  %6265 = vst [vmem:[%s10222_s25 + $0x2b8] sm:$0xff] %v8111_v63  ;;  %8134 = vpow2.f32 %v6794_v59  ;;  %11315 = vst [vmem:[#allocation16_spill] sm:$0xff] %v10562_v3  ;;  %v10564_v41 = vpop.f32.mrb[29].mxu0 }
 0x81f   : > { %v8115_v46 = vpop.eup %8114  ;;  %v5597_v6 = vadd.f32 1.0, %v8113_v10  ;;  %8136 = vpow2.f32 %v6798_v28  ;;  %11316 = vst [vmem:[#allocation17_spill] sm:$0xff] %v10564_v41  ;;  %v10566_v24 = vpop.f32.mrb[254].mxu1 }
 0x820   : > { %v8117_v35 = vpop.eup %8116  ;;  %v5599_v34 = vadd.f32 1.0, %v8115_v46  ;;  %11317 = vst [vmem:[#allocation18_spill] sm:$0xff] %v10566_v24  ;;  %v10568_v63 = vpop.f32.mrb[30].mxu0 }
 0x821   : > { %v8119_v4 = vpop.eup %8118  ;;  %8138 = vrcp.f32 %v5597_v6  ;;  %v5598_v40 = vadd.f32 1.0, %v8117_v35  ;;  %v10570_v59 = vpop.f32.mrb[255].mxu1 }
 0x822   : > { %v8121_v10 = vpop.eup %8120  ;;  %8140 = vrcp.f32 %v5599_v34  ;;  %v5600_v45 = vadd.f32 1.0, %v8119_v4  ;;  %11318 = vst [vmem:[#allocation19_spill] sm:$0xff] %v10570_v59  ;;  %v10572_v28 = vpop.f32.mrb[31].mxu0  ;;  %v4402_v34 = vadd.f32 %v10367_v27, %v10176_v60 }
 0x823   : > { %v8123_v21 = vpop.eup %8122  ;;  %8142 = vrcp.f32 %v5598_v40  ;;  %v5604_v46 = vadd.f32 1.0, %v8121_v10  ;;  %11319 = vst [vmem:[#allocation20_spill] sm:$0xff] %v10572_v28  ;;  %v4211_v40 = vadd.f32 %v10370_v13, %v10178_v50  ;;  %v10578_v10 = vpop.f32.mrb[0].mxu1 }
 0x824   : > { %v8125_v3 = vpop.eup %8124  ;;  %8144 = vrcp.f32 %v5600_v45  ;;  %v5606_v41 = vadd.f32 1.0, %v8123_v21  ;;  %v10582_v21 = vpop.f32.mrb[32].mxu0 }
 0x825   : > { %v8127_v17 = vpop.eup %8126  ;;  %8146 = vrcp.f32 %v5604_v46  ;;  %v5605_v6 = vadd.f32 1.0, %v8125_v3  ;;  %v4404_v3 = vadd.f32 %v10372_v1, %v10180_v61  ;;  %11320 = vst [vmem:[#allocation21_spill] sm:$0xff] %v10582_v21  ;;  %v4213_v46 = vadd.f32 %v10375_v37, %v10174_v58 }
 0x826   : > { %v8129_v35 = vpop.eup %8128  ;;  %8148 = vrcp.f32 %v5606_v41  ;;  %v5607_v24 = vadd.f32 1.0, %v8127_v17  ;;  %v10584_v17 = vpop.f32.mrb[1].mxu1  ;;  %v6799_v21 = vmul.f32 -1.442695, %v4211_v40  ;;  %v4219_v40 = vadd.f32 %v10384_v11, %v10174_v58 }
 0x827   : > { %v8131_v4 = vpop.eup %8130  ;;  %8150 = vrcp.f32 %v5605_v6  ;;  %v5611_v59 = vadd.f32 1.0, %v8129_v35  ;;  %11321 = vst [vmem:[#allocation22_spill] sm:$0xff] %v10584_v17  ;;  %v4406_v35 = vadd.f32 %v10377_v25, %v10176_v60  ;;  %v6801_v37 = vmul.f32 -1.442695, %v4404_v3 }
 0x828   : > { %v8133_v28 = vpop.eup %8132  ;;  %8152 = vrcp.f32 %v5607_v24  ;;  %v5613_v45 = vadd.f32 1.0, %v8131_v4  ;;  %v6800_v24 = vmul.f32 -1.442695, %v4402_v34  ;;  %v4408_v34 = vadd.f32 %v10382_v7, %v10180_v61 }
 0x829   : > { %v8135_v41 = vpop.eup %8134  ;;  %8154 = vrcp.f32 %v5611_v59  ;;  %v5612_v27 = vadd.f32 1.0, %v8133_v28  ;;  %v4215_v59 = vadd.f32 %v10380_v33, %v10178_v50  ;;  %v10592_v28 = vpop.f32.mrb[33].mxu0  ;;  %v6805_v25 = vmul.f32 -1.442695, %v4213_v46 }
 0x82a   : > { %v8137_v13 = vpop.eup %8136  ;;  %8156 = vrcp.f32 %v5613_v45  ;;  %v5614_v6 = vadd.f32 1.0, %v8135_v41  ;;  %v10600_v41 = vpop.f32.mrb[2].mxu1  ;;  %v6807_v3 = vmul.f32 -1.442695, %v4406_v35  ;;  %v4412_v7 = vadd.f32 %v10386_v0, %v10176_v60 }
 0x82b   : > { %v8139_v1 = vpop.eup %8138  ;;  %8158 = vrcp.f32 %v5612_v27  ;;  %v5618_v4 = vadd.f32 1.0, %v8137_v13  ;;  %v10602_v33 = vpop.f32.mrb[34].mxu0  ;;  %v4221_v11 = vadd.f32 %v10388_v32, %v10178_v50  ;;  %v4414_v0 = vadd.f32 %v10390_v38, %v10180_v61 }
 0x82c   : > { %v8141_v17 = vpop.eup %8140  ;;  %6269 = vst [vmem:[%s10222_s25 + $0x2d8] sm:$0xff] %v8139_v1  ;;  %8160 = vrcp.f32 %v5614_v6  ;;  %v10610_v46 = vpop.f32.mrb[3].mxu1  ;;  %v4223_v32 = vadd.f32 %v10392_v5, %v10174_v58 }
 0x82d   : > { %v8143_v45 = vpop.eup %8142  ;;  %6271 = vst [vmem:[%s10222_s25 + $0x2e8] sm:$0xff] %v8141_v17  ;;  %8162 = vrcp.f32 %v5618_v4  ;;  %v6806_v17 = vmul.f32 -1.442695, %v4215_v59  ;;  %v10612_v6 = vpop.f32.mrb[35].mxu0  ;;  %v6814_v59 = vmul.f32 -1.442695, %v4412_v7 }
 0x82e   : > { %v8145_v27 = vpop.eup %8144  ;;  %6270 = vst [vmem:[%s10222_s25 + $0x2e0] sm:$0xff] %v8143_v45  ;;  %8164 = vpow2.f32 %v6800_v24  ;;  %v6808_v24 = vmul.f32 -1.442695, %v4408_v34  ;;  %v6813_v38 = vmul.f32 -1.442695, %v4221_v11 }
 0x82f   : > { %v8147_v13 = vpop.eup %8146  ;;  %6272 = vst [vmem:[%s10222_s25 + $0x2f0] sm:$0xff] %v8145_v27  ;;  %8166 = vpow2.f32 %v6799_v21  ;;  %v6812_v21 = vmul.f32 -1.442695, %v4219_v40  ;;  %v6819_v5 = vmul.f32 -1.442695, %v4223_v32  ;;  %v10626_v27 = vpop.f32.mrb[4].mxu1 }
 0x830   : > { %v8149_v1 = vpop.eup %8148  ;;  %6276 = vst [vmem:[%s10222_s25 + $0x310] sm:$0xff] %v8147_v13  ;;  %8168 = vpow2.f32 %v6801_v37  ;;  %v4416_v37 = vadd.f32 %v10396_v12, %v10176_v60  ;;  %v10631_v13 = vpop.f32.mrb[5].mxu1 }
 0x831   : > { %v8151_v35 = vpop.eup %8150  ;;  %6278 = vst [vmem:[%s10222_s25 + $0x320] sm:$0xff] %v8149_v1  ;;  %8170 = vpow2.f32 %v6805_v25  ;;  %v6815_v25 = vmul.f32 -1.442695, %v4414_v0  ;;  %v10636_v1 = vpop.f32.mrb[6].mxu1 }
 0x832   : > { %v8153_v4 = vpop.eup %8152  ;;  %6277 = vst [vmem:[%s10222_s25 + $0x318] sm:$0xff] %v8151_v35  ;;  %8172 = vpow2.f32 %v6807_v3  ;;  %v10628_v3 = vpop.f32.mrb[36].mxu0  ;;  %v6821_v7 = vmul.f32 -1.442695, %v4416_v37 }
 0x833   : > { %v8155_v34 = vpop.eup %8154  ;;  %6279 = vst [vmem:[%s10222_s25 + $0x328] sm:$0xff] %v8153_v4  ;;  %8174 = vpow2.f32 %v6806_v17  ;;  %v10633_v17 = vpop.f32.mrb[37].mxu0 }
 0x834   : > { %v8157_v45 = vpop.eup %8156  ;;  %6283 = vst [vmem:[%s10222_s25 + $0x348] sm:$0xff] %v8155_v34  ;;  %8176 = vpow2.f32 %v6808_v24  ;;  %v10638_v24 = vpop.f32.mrb[38].mxu0 }
 0x835   : > { %v8159_v40 = vpop.eup %8158  ;;  %6285 = vst [vmem:[%s10222_s25 + $0x358] sm:$0xff] %v8157_v45  ;;  %8178 = vpow2.f32 %v6812_v21  ;;  %11322 = vst [vmem:[#allocation23_spill] sm:$0xff] %v10638_v24  ;;  %v10641_v35 = vpop.f32.mrb[7].mxu1 }
 0x836   : > { %v8161_v12 = vpop.eup %8160  ;;  %6284 = vst [vmem:[%s10222_s25 + $0x350] sm:$0xff] %v8159_v40  ;;  %8180 = vpow2.f32 %v6814_v59  ;;  %11323 = vst [vmem:[#allocation24_spill] sm:$0xff] %v10641_v35  ;;  %v10643_v21 = vpop.f32.mrb[39].mxu0 }
 0x837   : > { %v8163_v11 = vpop.eup %8162  ;;  %6286 = vst [vmem:[%s10222_s25 + $0x360] sm:$0xff] %v8161_v12  ;;  %8182 = vpow2.f32 %v6813_v38  ;;  %11324 = vst [vmem:[#allocation25_spill] sm:$0xff] %v10643_v21 }
 0x838   : > { %v8165_v0 = vpop.eup %8164  ;;  %6290 = vst [vmem:[%s10222_s25 + $0x380] sm:$0xff] %v8163_v11  ;;  %8184 = vpow2.f32 %v6815_v25 }
 0x839   : > { %v8167_v32 = vpop.eup %8166  ;;  %v5620_v4 = vadd.f32 1.0, %v8165_v0  ;;  %8186 = vpow2.f32 %v6819_v5 }
 0x83a   : > { %v8169_v59 = vpop.eup %8168  ;;  %v5619_v37 = vadd.f32 1.0, %v8167_v32  ;;  %8188 = vpow2.f32 %v6821_v7  ;;  %v4225_v7 = vadd.f32 %v10398_v8, %v10178_v50 }
 0x83b   : > { %v8171_v34 = vpop.eup %8170  ;;  %8190 = vrcp.f32 %v5620_v4  ;;  %v5621_v38 = vadd.f32 1.0, %v8169_v59  ;;  %v4418_v59 = vadd.f32 %v10402_v30, %v10180_v61  ;;  %v4231_v30 = vadd.f32 %v10419_v47, %v10178_v50 }
 0x83c   : > { %v8173_v45 = vpop.eup %8172  ;;  %8192 = vrcp.f32 %v5619_v37  ;;  %v5625_v40 = vadd.f32 1.0, %v8171_v34 }
 0x83d   : > { %v8175_v12 = vpop.eup %8174  ;;  %8194 = vrcp.f32 %v5621_v38  ;;  %v5627_v11 = vadd.f32 1.0, %v8173_v45  ;;  %v4229_v38 = vadd.f32 %v10412_v23, %v10174_v58  ;;  %v6822_v23 = vmul.f32 -1.442695, %v4418_v59 }
 0x83e   : > { %v8177_v25 = vpop.eup %8176  ;;  %8196 = vrcp.f32 %v5625_v40  ;;  %v5626_v35 = vadd.f32 1.0, %v8175_v12  ;;  %v6820_v40 = vmul.f32 -1.442695, %v4225_v7  ;;  %v4235_v59 = vadd.f32 %v10433_v2, %v10178_v50 }
 0x83f   : > { %v8179_v24 = vpop.eup %8178  ;;  %8198 = vrcp.f32 %v5627_v11  ;;  %v5628_v21 = vadd.f32 1.0, %v8177_v25  ;;  %v4424_v25 = vadd.f32 %v10424_v26, %v10180_v61  ;;  %v6827_v26 = vmul.f32 -1.442695, %v4231_v30 }
 0x840   : > { %v8181_v0 = vpop.eup %8180  ;;  %8200 = vrcp.f32 %v5626_v35  ;;  %v5632_v5 = vadd.f32 1.0, %v8179_v24  ;;  %v4422_v24 = vadd.f32 %v10417_v56, %v10176_v60  ;;  %v6826_v56 = vmul.f32 -1.442695, %v4229_v38 }
 0x841   : > { %v8183_v32 = vpop.eup %8182  ;;  %8202 = vrcp.f32 %v5628_v21  ;;  %v5634_v4 = vadd.f32 1.0, %v8181_v0 }
 0x842   : > { %v8185_v37 = vpop.eup %8184  ;;  %8204 = vrcp.f32 %v5632_v5  ;;  %v5633_v34 = vadd.f32 1.0, %v8183_v32  ;;  %v4233_v5 = vadd.f32 %v10426_v19, %v10174_v58  ;;  %v6828_v47 = vmul.f32 -1.442695, %v4422_v24  ;;  %v10674_v24 = vpop.f32.mrb[40].mxu0 }
 0x843   : > { %v8187_v45 = vpop.eup %8186  ;;  %8206 = vrcp.f32 %v5634_v4  ;;  %v5635_v35 = vadd.f32 1.0, %v8185_v37  ;;  %v4426_v32 = vadd.f32 %v10431_v22, %v10176_v60  ;;  %v6829_v19 = vmul.f32 -1.442695, %v4424_v25 }
 0x844   : > { %v8189_v8 = vpop.eup %8188  ;;  %8208 = vrcp.f32 %v5633_v34  ;;  %v5639_v21 = vadd.f32 1.0, %v8187_v45  ;;  %v4428_v34 = vadd.f32 %v10438_v14, %v10180_v61  ;;  %v6833_v22 = vmul.f32 -1.442695, %v4233_v5 }
 0x845   : > { %v8191_v12 = vpop.eup %8190  ;;  %8210 = vrcp.f32 %v5635_v35  ;;  %v5641_v11 = vadd.f32 1.0, %v8189_v8  ;;  %v4239_v45 = vadd.f32 %v10450_v55, %v10174_v58  ;;  %v10672_v35 = vpop.f32.mrb[8].mxu1  ;;  %v6835_v8 = vmul.f32 -1.442695, %v4426_v32 }
 0x846   : > { %v8193_v0 = vpop.eup %8192  ;;  %6292 = vst [vmem:[%s10222_s25 + $0x390] sm:$0xff] %v8191_v12  ;;  %8212 = vrcp.f32 %v5639_v21  ;;  %v4432_v14 = vadd.f32 %v10452_v18, %v10176_v60  ;;  %v10679_v21 = vpop.f32.mrb[9].mxu1  ;;  %v6834_v55 = vmul.f32 -1.442695, %v4235_v59  ;;  %v4241_v12 = vadd.f32 %v10455_v9, %v10178_v50 }
 0x847   : > { %v8195_v7 = vpop.eup %8194  ;;  %6291 = vst [vmem:[%s10222_s25 + $0x388] sm:$0xff] %v8193_v0  ;;  %8214 = vrcp.f32 %v5641_v11  ;;  %v10686_v11 = vpop.f32.mrb[10].mxu1  ;;  %v6836_v18 = vmul.f32 -1.442695, %v4428_v34 }
 0x848   : > { %v8197_v4 = vpop.eup %8196  ;;  %6293 = vst [vmem:[%s10222_s25 + $0x398] sm:$0xff] %v8195_v7  ;;  %8216 = vpow2.f32 %v6820_v40  ;;  %v10681_v40 = vpop.f32.mrb[41].mxu0  ;;  %v6840_v7 = vmul.f32 -1.442695, %v4239_v45 }
 0x849   : > { %v8199_v37 = vpop.eup %8198  ;;  %6297 = vst [vmem:[%s10222_s25 + $0x3b8] sm:$0xff] %v8197_v4  ;;  %8218 = vpow2.f32 %v6822_v23  ;;  %v10688_v23 = vpop.f32.mrb[42].mxu0  ;;  %v6841_v4 = vmul.f32 -1.442695, %v4241_v12 }
 0x84a   : > { %v8201_v38 = vpop.eup %8200  ;;  %6299 = vst [vmem:[%s10222_s25 + $0x3c8] sm:$0xff] %v8199_v37  ;;  %8220 = vpow2.f32 %v6826_v56  ;;  %v10691_v0 = vpop.f32.mrb[11].mxu1 }
 0x84b   : > { %v8203_v2 = vpop.eup %8202  ;;  %6298 = vst [vmem:[%s10222_s25 + $0x3c0] sm:$0xff] %v8201_v38  ;;  %8222 = vpow2.f32 %v6828_v47  ;;  %v10693_v56 = vpop.f32.mrb[43].mxu0  ;;  %v6842_v47 = vmul.f32 -1.442695, %v4432_v14 }
 0x84c   : > { %v8205_v30 = vpop.eup %8204  ;;  %6300 = vst [vmem:[%s10222_s25 + $0x3d0] sm:$0xff] %v8203_v2  ;;  %8224 = vpow2.f32 %v6827_v26  ;;  %v10700_v37 = vpop.f32.mrb[12].mxu1 }
 0x84d   : > { %v8207_v25 = vpop.eup %8206  ;;  %6304 = vst [vmem:[%s10222_s25 + $0x3f0] sm:$0xff] %v8205_v30  ;;  %8226 = vpow2.f32 %v6829_v19  ;;  %v10702_v19 = vpop.f32.mrb[44].mxu0 }
 0x84e   : > { %v8209_v5 = vpop.eup %8208  ;;  %6306 = vst [vmem:[%s10222_s25 + $0x400] sm:$0xff] %v8207_v25  ;;  %8228 = vpow2.f32 %v6833_v22  ;;  %v10704_v22 = vpop.f32.mrb[13].mxu1 }
 0x84f   : > { %v8211_v9 = vpop.eup %8210  ;;  %6305 = vst [vmem:[%s10222_s25 + $0x3f8] sm:$0xff] %v8209_v5  ;;  %8230 = vpow2.f32 %v6835_v8  ;;  %v10706_v45 = vpop.f32.mrb[45].mxu0 }
 0x850   : > { %v8213_v32 = vpop.eup %8212  ;;  %6307 = vst [vmem:[%s10222_s25 + $0x408] sm:$0xff] %v8211_v9  ;;  %8232 = vpow2.f32 %v6834_v55  ;;  %v10708_v14 = vpop.f32.mrb[14].mxu1 }
 0x851   : > { %v8215_v26 = vpop.eup %8214  ;;  %6311 = vst [vmem:[%s10222_s25 + $0x428] sm:$0xff] %v8213_v32  ;;  %8234 = vpow2.f32 %v6836_v18 }
 0x852   : > { %v8217_v59 = vpop.eup %8216  ;;  %6313 = vst [vmem:[%s10222_s25 + $0x438] sm:$0xff] %v8215_v26  ;;  %8236 = vpow2.f32 %v6840_v7 }
 0x853   : > { %v8219_v34 = vpop.eup %8218  ;;  %v5640_v38 = vadd.f32 1.0, %v8217_v59  ;;  %8238 = vpow2.f32 %v6842_v47  ;;  %v4434_v59 = vadd.f32 %v10457_v20, %v10180_v61 }
 0x854   : > { %v8221_v2 = vpop.eup %8220  ;;  %v5642_v8 = vadd.f32 1.0, %v8219_v34  ;;  %8240 = vpow2.f32 %v6841_v4 }
 0x855   : > { %v8223_v30 = vpop.eup %8222  ;;  %8242 = vrcp.f32 %v5640_v38  ;;  %v5646_v55 = vadd.f32 1.0, %v8221_v2  ;;  %v4243_v2 = vadd.f32 %v10460_v57, %v10174_v58  ;;  %v4438_v57 = vadd.f32 %v10467_v31, %v10180_v61 }
 0x856   : > { %v8225_v12 = vpop.eup %8224  ;;  %8244 = vrcp.f32 %v5642_v8  ;;  %v5648_v25 = vadd.f32 1.0, %v8223_v30 }
 0x857   : > { %v8227_v18 = vpop.eup %8226  ;;  %8246 = vrcp.f32 %v5646_v55  ;;  %v5647_v5 = vadd.f32 1.0, %v8225_v12  ;;  %v4436_v55 = vadd.f32 %v10462_v49, %v10176_v60  ;;  %v4249_v49 = vadd.f32 %v10471_v52, %v10174_v58 }
 0x858   : > { %v8229_v7 = vpop.eup %8228  ;;  %8248 = vrcp.f32 %v5648_v25  ;;  %v5649_v9 = vadd.f32 1.0, %v8227_v18  ;;  %v4245_v18 = vadd.f32 %v10465_v39, %v10178_v50 }
 0x859   : > { %v8231_v47 = vpop.eup %8230  ;;  %8250 = vrcp.f32 %v5647_v5  ;;  %v5653_v32 = vadd.f32 1.0, %v8229_v7  ;;  %v6843_v7 = vmul.f32 -1.442695, %v4434_v59  ;;  %v6849_v39 = vmul.f32 -1.442695, %v4436_v55  ;;  %v11325_v59 = vld [vmem:[#allocation3_spill] sm:$0xff] }
 0x85a   : > { %v8233_v26 = vpop.eup %8232  ;;  %8252 = vrcp.f32 %v5649_v9  ;;  %v5655_v4 = vadd.f32 1.0, %v8231_v47  ;;  %v6848_v31 = vmul.f32 -1.442695, %v4245_v18  ;;  %v6850_v55 = vmul.f32 -1.442695, %v4438_v57 }
 0x85b   : > { %v8235_v34 = vpop.eup %8234  ;;  %8254 = vrcp.f32 %v5653_v32  ;;  %v5654_v38 = vadd.f32 1.0, %v8233_v26  ;;  %v6847_v32 = vmul.f32 -1.442695, %v4243_v2  ;;  %v10722_v26 = vpop.f32.mrb[46].mxu0  ;;  %v11326_v2 = vld [vmem:[#allocation4_spill] sm:$0xff] }
 0x85c   : > { %v8237_v8 = vpop.eup %8236  ;;  %8256 = vrcp.f32 %v5655_v4  ;;  %v5656_v30 = vadd.f32 1.0, %v8235_v34  ;;  %v4442_v34 = vadd.f32 %v11325_v59, %v10176_v60  ;;  %v10732_v52 = vpop.f32.mrb[47].mxu0  ;;  %v6854_v18 = vmul.f32 -1.442695, %v4249_v49 }
 0x85d   : > { %v8239_v12 = vpop.eup %8238  ;;  %8258 = vrcp.f32 %v5654_v38  ;;  %v5660_v25 = vadd.f32 1.0, %v8237_v8  ;;  %v4251_v8 = vadd.f32 %v11326_v2, %v10178_v50  ;;  %v11329_v2 = vld [vmem:[#allocation7_spill] sm:$0xff] }
 0x85e   : > { %v8241_v20 = vpop.eup %8240  ;;  %8260 = vrcp.f32 %v5656_v30  ;;  %v5662_v5 = vadd.f32 1.0, %v8239_v12  ;;  %v10730_v30 = vpop.f32.mrb[15].mxu1  ;;  %v6856_v59 = vmul.f32 -1.442695, %v4442_v34 }
 0x85f   : > { %v8243_v9 = vpop.eup %8242  ;;  %8262 = vrcp.f32 %v5660_v25  ;;  %v5661_v47 = vadd.f32 1.0, %v8241_v20  ;;  %v11327_v25 = vld [vmem:[#allocation5_spill] sm:$0xff] }
 0x860   : > { %v8245_v4 = vpop.eup %8244  ;;  %6312 = vst [vmem:[%s10222_s25 + $0x430] sm:$0xff] %v8243_v9  ;;  %8264 = vrcp.f32 %v5662_v5  ;;  %v4444_v20 = vadd.f32 %v11327_v25, %v10180_v61  ;;  %v11328_v9 = vld [vmem:[#allocation6_spill] sm:$0xff]  ;;  %v11330_v25 = vld [vmem:[#allocation8_spill] sm:$0xff] }
 0x861   : > { %v8247_v38 = vpop.eup %8246  ;;  %6314 = vst [vmem:[%s10222_s25 + $0x440] sm:$0xff] %v8245_v4  ;;  %8266 = vrcp.f32 %v5661_v47  ;;  %v4253_v47 = vadd.f32 %v11328_v9, %v10174_v58 }
 0x862   : > { %v8249_v12 = vpop.eup %8248  ;;  %6318 = vst [vmem:[%s10222_s25 + $0x460] sm:$0xff] %v8247_v38  ;;  %8268 = vpow2.f32 %v6843_v7  ;;  %v4446_v7 = vadd.f32 %v10481_v53, %v10176_v60  ;;  %v6855_v38 = vmul.f32 -1.442695, %v4251_v8 }
 0x863   : > { %v8251_v5 = vpop.eup %8250  ;;  %6320 = vst [vmem:[%s10222_s25 + $0x470] sm:$0xff] %v8249_v12  ;;  %8270 = vpow2.f32 %v6847_v32  ;;  %v4255_v32 = vadd.f32 %v11329_v2, %v10178_v50  ;;  %v6857_v12 = vmul.f32 -1.442695, %v4444_v20  ;;  %v6861_v53 = vmul.f32 -1.442695, %v4253_v47 }
 0x864   : > { %v8253_v4 = vpop.eup %8252  ;;  %6319 = vst [vmem:[%s10222_s25 + $0x468] sm:$0xff] %v8251_v5  ;;  %8272 = vpow2.f32 %v6849_v39  ;;  %v4448_v39 = vadd.f32 %v11330_v25, %v10180_v61  ;;  %v10750_v5 = vpop.f32.mrb[16].mxu1  ;;  %v6863_v9 = vmul.f32 -1.442695, %v4446_v7 }
 0x865   : > { %v8255_v57 = vpop.eup %8254  ;;  %6321 = vst [vmem:[%s10222_s25 + $0x478] sm:$0xff] %v8253_v4  ;;  %8274 = vpow2.f32 %v6848_v31  ;;  %v10752_v31 = vpop.f32.mrb[48].mxu0 }
 0x866   : > { %v8257_v49 = vpop.eup %8256  ;;  %6325 = vst [vmem:[%s10222_s25 + $0x498] sm:$0xff] %v8255_v57  ;;  %8276 = vpow2.f32 %v6850_v55  ;;  %v10755_v55 = vpop.f32.mrb[17].mxu1 }
 0x867   : > { %v8259_v34 = vpop.eup %8258  ;;  %6327 = vst [vmem:[%s10222_s25 + $0x4a8] sm:$0xff] %v8257_v49  ;;  %8278 = vpow2.f32 %v6854_v18  ;;  %v10757_v20 = vpop.f32.mrb[49].mxu0  ;;  %v6862_v18 = vmul.f32 -1.442695, %v4255_v32  ;;  %v6864_v49 = vmul.f32 -1.442695, %v4448_v39 }
 0x868   : > { %v8261_v8 = vpop.eup %8260  ;;  %6326 = vst [vmem:[%s10222_s25 + $0x4a0] sm:$0xff] %v8259_v34  ;;  %8280 = vpow2.f32 %v6856_v59  ;;  %v10760_v47 = vpop.f32.mrb[18].mxu1 }
 0x869   : > { %v8263_v4 = vpop.eup %8262  ;;  %6328 = vst [vmem:[%s10222_s25 + $0x4b0] sm:$0xff] %v8261_v8  ;;  %8282 = vpow2.f32 %v6855_v38  ;;  %11331 = vst [vmem:[#allocation3_spill] sm:$0xff] %v10760_v47  ;;  %v10762_v57 = vpop.f32.mrb[50].mxu0 }
 0x86a   : > { %11332 = vst [vmem:[#allocation4_spill] sm:$0xff] %v10762_v57  ;;  %v8265_v2 = vpop.eup %8264  ;;  %6332 = vst [vmem:[%s10222_s25 + $0x4d0] sm:$0xff] %v8263_v4  ;;  %8284 = vpow2.f32 %v6857_v12  ;;  %v10765_v59 = vpop.f32.mrb[19].mxu1 }
 0x86b   : > { %11333 = vst [vmem:[#allocation5_spill] sm:$0xff] %v10765_v59  ;;  %v10767_v7 = vpop.f32.mrb[51].mxu0  ;;  %v8267_v25 = vpop.eup %8266  ;;  %6334 = vst [vmem:[%s10222_s25 + $0x4e0] sm:$0xff] %v8265_v2  ;;  %8286 = vpow2.f32 %v6861_v53 }
 0x86c   : > { %11334 = vst [vmem:[#allocation6_spill] sm:$0xff] %v10767_v7  ;;  %v8269_v34 = vpop.eup %8268  ;;  %6333 = vst [vmem:[%s10222_s25 + $0x4d8] sm:$0xff] %v8267_v25  ;;  %8288 = vpow2.f32 %v6863_v9  ;;  %v10771_v39 = vpop.f32.mrb[20].mxu1 }
 0x86d   : > { %v8271_v38 = vpop.eup %8270  ;;  %v5663_v32 = vadd.f32 1.0, %v8269_v34  ;;  %8290 = vpow2.f32 %v6862_v18  ;;  %11335 = vst [vmem:[#allocation7_spill] sm:$0xff] %v10771_v39  ;;  %v10773_v4 = vpop.f32.mrb[52].mxu0 }
 0x86e   : > { %v8273_v8 = vpop.eup %8272  ;;  %v5667_v47 = vadd.f32 1.0, %v8271_v38  ;;  %8292 = vpow2.f32 %v6864_v49  ;;  %11336 = vst [vmem:[#allocation8_spill] sm:$0xff] %v10773_v4 }
 0x86f   : > { %v8275_v57 = vpop.eup %8274  ;;  %8294 = vrcp.f32 %v5663_v32  ;;  %v5669_v12 = vadd.f32 1.0, %v8273_v8  ;;  %v11337_v8 = vld [vmem:[#allocation9_spill] sm:$0xff] }
 0x870   : > { %v8277_v7 = vpop.eup %8276  ;;  %8296 = vrcp.f32 %v5667_v47  ;;  %v5668_v2 = vadd.f32 1.0, %v8275_v57  ;;  %v4259_v39 = vadd.f32 %v11337_v8, %v10174_v58  ;;  %v4452_v47 = vadd.f32 %v10499_v44, %v10176_v60  ;;  %v11339_v44 = vld [vmem:[#allocation11_spill] sm:$0xff] }
 0x871   : > { %v8279_v53 = vpop.eup %8278  ;;  %8298 = vrcp.f32 %v5669_v12  ;;  %v5670_v25 = vadd.f32 1.0, %v8277_v7  ;;  %v11338_v12 = vld [vmem:[#allocation10_spill] sm:$0xff] }
 0x872   : > { %v8281_v9 = vpop.eup %8280  ;;  %8300 = vrcp.f32 %v5668_v2  ;;  %v5674_v34 = vadd.f32 1.0, %v8279_v53  ;;  %v4261_v2 = vadd.f32 %v11338_v12, %v10178_v50  ;;  %v6870_v8 = vmul.f32 -1.442695, %v4452_v47  ;;  %v10792_v12 = vpop.f32.mrb[53].mxu0 }
 0x873   : > { %v8283_v18 = vpop.eup %8282  ;;  %8302 = vrcp.f32 %v5670_v25  ;;  %v5676_v38 = vadd.f32 1.0, %v8281_v9  ;;  %v4454_v9 = vadd.f32 %v10505_v15, %v10180_v61 }
 0x874   : > { %v8285_v49 = vpop.eup %8284  ;;  %8304 = vrcp.f32 %v5674_v34  ;;  %v5675_v32 = vadd.f32 1.0, %v8283_v18  ;;  %v6869_v15 = vmul.f32 -1.442695, %v4261_v2 }
 0x875   : > { %v8287_v59 = vpop.eup %8286  ;;  %8306 = vrcp.f32 %v5676_v38  ;;  %v5677_v4 = vadd.f32 1.0, %v8285_v49  ;;  %v6868_v38 = vmul.f32 -1.442695, %v4259_v39  ;;  %v4263_v49 = vadd.f32 %v11339_v44, %v10174_v58  ;;  %v10790_v39 = vpop.f32.mrb[21].mxu1 }
 0x876   : > { %v8289_v57 = vpop.eup %8288  ;;  %8308 = vrcp.f32 %v5675_v32  ;;  %v5681_v7 = vadd.f32 1.0, %v8287_v59  ;;  %v6871_v47 = vmul.f32 -1.442695, %v4454_v9 }
 0x877   : > { %v8291_v53 = vpop.eup %8290  ;;  %8310 = vrcp.f32 %v5677_v4  ;;  %v5683_v25 = vadd.f32 1.0, %v8289_v57  ;;  %v4456_v4 = vadd.f32 %v10512_v54, %v10176_v60  ;;  %v4458_v54 = vadd.f32 %v10519_v51, %v10180_v61 }
 0x878   : > { %v8293_v34 = vpop.eup %8292  ;;  %8312 = vrcp.f32 %v5681_v7  ;;  %v5682_v18 = vadd.f32 1.0, %v8291_v53  ;;  %v4265_v7 = vadd.f32 %v10514_v29, %v10178_v50  ;;  %v6875_v2 = vmul.f32 -1.442695, %v4263_v49 }
 0x879   : > { %v8295_v32 = vpop.eup %8294  ;;  %8314 = vrcp.f32 %v5683_v25  ;;  %v5684_v59 = vadd.f32 1.0, %v8293_v34  ;;  %v4269_v29 = vadd.f32 %v10533_v42, %v10174_v58  ;;  %v10800_v34 = vpop.f32.mrb[22].mxu1  ;;  %v6877_v9 = vmul.f32 -1.442695, %v4456_v4 }
 0x87a   : > { %v8297_v57 = vpop.eup %8296  ;;  %6335 = vst [vmem:[%s10222_s25 + $0x4e8] sm:$0xff] %v8295_v32  ;;  %8316 = vrcp.f32 %v5682_v18  ;;  %v10802_v18 = vpop.f32.mrb[54].mxu0  ;;  %v4462_v51 = vadd.f32 %v10535_v36, %v10176_v60  ;;  %v4271_v42 = vadd.f32 %v10540_v62, %v10178_v50  ;;  %v4464_v36 = vadd.f32 %v10542_v43, %v10180_v61  ;;  %v11340_v62 = vld [vmem:[#allocation12_spill] sm:$0xff] }
 0x87b   : > { %v8299_v53 = vpop.eup %8298  ;;  %6339 = vst [vmem:[%s10222_s25 + $0x508] sm:$0xff] %v8297_v57  ;;  %8318 = vrcp.f32 %v5684_v59  ;;  %v10810_v49 = vpop.f32.mrb[23].mxu1 }
 0x87c   : > { %v8301_v25 = vpop.eup %8300  ;;  %6341 = vst [vmem:[%s10222_s25 + $0x518] sm:$0xff] %v8299_v53  ;;  %8320 = vpow2.f32 %v6868_v38  ;;  %v6876_v38 = vmul.f32 -1.442695, %v4265_v7  ;;  %v10812_v59 = vpop.f32.mrb[55].mxu0  ;;  %v4273_v7 = vadd.f32 %v11340_v62, %v10174_v58  ;;  %v6885_v43 = vmul.f32 -1.442695, %v4464_v36 }
 0x87d   : > { %v8303_v44 = vpop.eup %8302  ;;  %6340 = vst [vmem:[%s10222_s25 + $0x510] sm:$0xff] %v8301_v25  ;;  %8322 = vpow2.f32 %v6870_v8  ;;  %v6878_v8 = vmul.f32 -1.442695, %v4458_v54  ;;  %v6884_v25 = vmul.f32 -1.442695, %v4462_v51 }
 0x87e   : > { %v8305_v32 = vpop.eup %8304  ;;  %6342 = vst [vmem:[%s10222_s25 + $0x520] sm:$0xff] %v8303_v44  ;;  %8324 = vpow2.f32 %v6869_v15  ;;  %v6882_v15 = vmul.f32 -1.442695, %v4269_v29  ;;  %v6889_v29 = vmul.f32 -1.442695, %v4273_v7 }
 0x87f   : > { %v8307_v57 = vpop.eup %8306  ;;  %6346 = vst [vmem:[%s10222_s25 + $0x540] sm:$0xff] %v8305_v32  ;;  %8326 = vpow2.f32 %v6871_v47  ;;  %v6883_v47 = vmul.f32 -1.442695, %v4271_v42  ;;  %v10824_v32 = vpop.f32.mrb[24].mxu1 }
 0x880   : > { %v8309_v4 = vpop.eup %8308  ;;  %6348 = vst [vmem:[%s10222_s25 + $0x550] sm:$0xff] %v8307_v57  ;;  %8328 = vpow2.f32 %v6875_v2  ;;  %11341 = vst [vmem:[#allocation9_spill] sm:$0xff] %v10824_v32  ;;  %v10826_v57 = vpop.f32.mrb[56].mxu0 }
 0x881   : > { %v8311_v53 = vpop.eup %8310  ;;  %6347 = vst [vmem:[%s10222_s25 + $0x548] sm:$0xff] %v8309_v4  ;;  %8330 = vpow2.f32 %v6877_v9  ;;  %11342 = vst [vmem:[#allocation10_spill] sm:$0xff] %v10826_v57  ;;  %v10829_v51 = vpop.f32.mrb[25].mxu1 }
 0x882   : > { %v8313_v44 = vpop.eup %8312  ;;  %6349 = vst [vmem:[%s10222_s25 + $0x558] sm:$0xff] %v8311_v53  ;;  %8332 = vpow2.f32 %v6876_v38  ;;  %11343 = vst [vmem:[#allocation11_spill] sm:$0xff] %v10829_v51  ;;  %v10831_v38 = vpop.f32.mrb[57].mxu0 }
 0x883   : > { %v8315_v54 = vpop.eup %8314  ;;  %6353 = vst [vmem:[%s10222_s25 + $0x578] sm:$0xff] %v8313_v44  ;;  %8334 = vpow2.f32 %v6878_v8  ;;  %11344 = vst [vmem:[#allocation12_spill] sm:$0xff] %v10831_v38  ;;  %v10834_v8 = vpop.f32.mrb[26].mxu1 }
 0x884   : > { %v8317_v2 = vpop.eup %8316  ;;  %6355 = vst [vmem:[%s10222_s25 + $0x588] sm:$0xff] %v8315_v54  ;;  %8336 = vpow2.f32 %v6882_v15  ;;  %11345 = vst [vmem:[#allocation26_spill] sm:$0xff] %v10834_v8  ;;  %v10836_v36 = vpop.f32.mrb[58].mxu0 }
 0x885   : > { %v8319_v9 = vpop.eup %8318  ;;  %6354 = vst [vmem:[%s10222_s25 + $0x580] sm:$0xff] %v8317_v2  ;;  %8338 = vpow2.f32 %v6884_v25  ;;  %11346 = vst [vmem:[#allocation27_spill] sm:$0xff] %v10836_v36  ;;  %v10838_v62 = vpop.f32.mrb[27].mxu1 }
 0x886   : > { %v8321_v42 = vpop.eup %8320  ;;  %6356 = vst [vmem:[%s10222_s25 + $0x590] sm:$0xff] %v8319_v9  ;;  %8340 = vpow2.f32 %v6883_v47  ;;  %11347 = vst [vmem:[#allocation28_spill] sm:$0xff] %v10838_v62 }
 0x887   : > { %v8323_v4 = vpop.eup %8322  ;;  %v5688_v15 = vadd.f32 1.0, %v8321_v42  ;;  %8342 = vpow2.f32 %v6885_v43  ;;  %v11348_v42 = vld [vmem:[#allocation13_spill] sm:$0xff] }
 0x888   : > { %v8325_v7 = vpop.eup %8324  ;;  %v5690_v53 = vadd.f32 1.0, %v8323_v4  ;;  %8344 = vpow2.f32 %v6889_v29  ;;  %v4466_v43 = vadd.f32 %v11348_v42, %v10176_v60 }
 0x889   : > { %v8327_v25 = vpop.eup %8326  ;;  %8346 = vrcp.f32 %v5688_v15  ;;  %v5689_v44 = vadd.f32 1.0, %v8325_v7 }
 0x88a   : > { %v8329_v54 = vpop.eup %8328  ;;  %8348 = vrcp.f32 %v5690_v53  ;;  %v5691_v2 = vadd.f32 1.0, %v8327_v25  ;;  %v4275_v53 = vadd.f32 %v10550_v16, %v10178_v50 }
 0x88b   : > { %v8331_v9 = vpop.eup %8330  ;;  %8350 = vrcp.f32 %v5689_v44  ;;  %v5695_v47 = vadd.f32 1.0, %v8329_v54  ;;  %v6891_v54 = vmul.f32 -1.442695, %v4466_v43 }
 0x88c   : > { %v8333_v8 = vpop.eup %8332  ;;  %8352 = vrcp.f32 %v5691_v2  ;;  %v5697_v36 = vadd.f32 1.0, %v8331_v9  ;;  %v11349_v2 = vld [vmem:[#allocation14_spill] sm:$0xff] }
 0x88d   : > { %v8335_v38 = vpop.eup %8334  ;;  %8354 = vrcp.f32 %v5695_v47  ;;  %v5696_v62 = vadd.f32 1.0, %v8333_v8  ;;  %v4468_v9 = vadd.f32 %v11349_v2, %v10180_v61 }
 0x88e   : > { %v8337_v4 = vpop.eup %8336  ;;  %8356 = vrcp.f32 %v5697_v36  ;;  %v5698_v29 = vadd.f32 1.0, %v8335_v38  ;;  %v4279_v38 = vadd.f32 %v10558_v48, %v10174_v58  ;;  %v11350_v36 = vld [vmem:[#allocation2_spill] sm:$0xff]  ;;  %v10854_v48 = vpop.f32.mrb[59].mxu0 }
 0x88f   : > { %v8339_v15 = vpop.eup %8338  ;;  %8358 = vrcp.f32 %v5696_v62  ;;  %v5702_v7 = vadd.f32 1.0, %v8337_v4  ;;  %v3789_v62 = vsub.s32 4, %v11350_v36  ;;  %v11351_v4 = vld [vmem:[#allocation15_spill] sm:$0xff]  ;;  %v3797_v43 = vsub.s32 6, %v11350_v36 }
 0x890   : > { %v8341_v25 = vpop.eup %8340  ;;  %8360 = vrcp.f32 %v5698_v29  ;;  %v5704_v44 = vadd.f32 1.0, %v8339_v15  ;;  %v4472_v29 = vadd.f32 %v11351_v4, %v10176_v60 }
 0x891   : > { %v8343_v42 = vpop.eup %8342  ;;  %8362 = vrcp.f32 %v5702_v7  ;;  %v5703_v8 = vadd.f32 1.0, %v8341_v25  ;;  %v6890_v7 = vmul.f32 -1.442695, %v4275_v53  ;;  %v11352_v25 = vld [vmem:[#allocation16_spill] sm:$0xff]  ;;  %v11354_v53 = vld [vmem:[#allocation18_spill] sm:$0xff] }
 0x892   : > { %v8345_v47 = vpop.eup %8344  ;;  %8364 = vrcp.f32 %v5704_v44  ;;  %v5705_v16 = vadd.f32 1.0, %v8343_v42  ;;  %v4281_v51 = vadd.f32 %v11352_v25, %v10178_v50  ;;  %v6892_v44 = vmul.f32 -1.442695, %v4468_v9  ;;  %v11353_v42 = vld [vmem:[#allocation17_spill] sm:$0xff]  ;;  %v10865_v25 = vld [vmem:[%s11292_s16] sm:$0xff] }
 0x893   : > { %v8347_v15 = vpop.eup %8346  ;;  %8366 = vrcp.f32 %v5703_v8  ;;  %v5709_v2 = vadd.f32 1.0, %v8345_v47  ;;  %v4474_v4 = vadd.f32 %v11353_v42, %v10180_v61  ;;  %v6896_v8 = vmul.f32 -1.442695, %v4279_v38  ;;  %v11355_v42 = vld [vmem:[#allocation19_spill] sm:$0xff] }
 0x894   : > { %v8349_v57 = vpop.eup %8348  ;;  %6360 = vst [vmem:[%s10222_s25 + $0x5b0] sm:$0xff] %v8347_v15  ;;  %8368 = vrcp.f32 %v5705_v16  ;;  %v4283_v47 = vadd.f32 %v11354_v53, %v10174_v58  ;;  %v10868_v16 = vrot.slane %v10865_v25, %v3789_v62  ;;  %v6898_v15 = vmul.f32 -1.442695, %v4472_v29 }
 0x895   : > { %v8351_v32 = vpop.eup %8350  ;;  %6362 = vst [vmem:[%s10222_s25 + $0x5c0] sm:$0xff] %v8349_v57  ;;  %8370 = vrcp.f32 %v5709_v2  ;;  %v4476_v57 = vadd.f32 %v10568_v63, %v10176_v60  ;;  %v10874_v38 = vrot.slane %v10865_v25, %v3797_v43  ;;  %v6897_v2 = vmul.f32 -1.442695, %v4281_v51  ;;  %v10887_v51 = vpop.f32.mrb[60].mxu0 }
 0x896   : > { %v8353_v9 = vpop.eup %8352  ;;  %6361 = vst [vmem:[%s10222_s25 + $0x5b8] sm:$0xff] %v8351_v32  ;;  %8372 = vpow2.f32 %v6891_v54  ;;  %v4285_v62 = vadd.f32 %v11355_v42, %v10178_v50  ;;  %v6899_v32 = vmul.f32 -1.442695, %v4474_v4  ;;  %v11356_v54 = vld [vmem:[#allocation20_spill] sm:$0xff]  ;;  %v6903_v63 = vmul.f32 -1.442695, %v4283_v47 }
 0x897   : > { %v8355_v58 = vpop.eup %8354  ;;  %6363 = vst [vmem:[%s10222_s25 + $0x5c8] sm:$0xff] %v8353_v9  ;;  %8374 = vpow2.f32 %v6890_v7  ;;  %v4478_v29 = vadd.f32 %v11356_v54, %v10180_v61  ;;  %v4515_v43 = vadd.f32 %v10578_v10, %v10868_v16  ;;  %v10885_v7 = vpop.f32.mrb[28].mxu1  ;;  %v11357_v4 = vld [vmem:[#allocation21_spill] sm:$0xff] }
 0x898   : > { %v8357_v53 = vpop.eup %8356  ;;  %6367 = vst [vmem:[%s10222_s25 + $0x5e8] sm:$0xff] %v8355_v58  ;;  %8376 = vpow2.f32 %v6892_v44  ;;  %v6905_v44 = vmul.f32 -1.442695, %v4476_v57  ;;  %v4716_v61 = vadd.f32 %v11357_v4, %v10874_v38  ;;  %v10892_v9 = vpop.f32.mrb[29].mxu1  ;;  %v6904_v10 = vmul.f32 -1.442695, %v4285_v62 }
 0x899   : > { %v8359_v60 = vpop.eup %8358  ;;  %6369 = vst [vmem:[%s10222_s25 + $0x5f8] sm:$0xff] %v8357_v53  ;;  %8378 = vpow2.f32 %v6896_v8  ;;  %v10894_v8 = vpop.f32.mrb[61].mxu0  ;;  %v6906_v57 = vmul.f32 -1.442695, %v4478_v29 }
 0x89a   : > { %v8361_v50 = vpop.eup %8360  ;;  %6368 = vst [vmem:[%s10222_s25 + $0x5f0] sm:$0xff] %v8359_v60  ;;  %8380 = vpow2.f32 %v6898_v15  ;;  %v10897_v58 = vpop.f32.mrb[30].mxu1  ;;  %v6706_v62 = vmul.f32 -1.442695, %v4716_v61 }
 0x89b   : > { %v8363_v47 = vpop.eup %8362  ;;  %6370 = vst [vmem:[%s10222_s25 + $0x600] sm:$0xff] %v8361_v50  ;;  %8382 = vpow2.f32 %v6897_v2  ;;  %v10899_v42 = vpop.f32.mrb[62].mxu0  ;;  %v6690_v50 = vmul.f32 -1.442695, %v4515_v43 }
 0x89c   : > { %11358 = vst [vmem:[#allocation13_spill] sm:$0xff] %v10899_v42  ;;  %v8365_v15 = vpop.eup %8364  ;;  %6374 = vst [vmem:[%s10222_s25 + $0x620] sm:$0xff] %v8363_v47  ;;  %8384 = vpow2.f32 %v6899_v32  ;;  %v10902_v53 = vpop.f32.mrb[31].mxu1  ;;  %v3793_v32 = vsub.s32 5, %v11350_v36 }
 0x89d   : > { %v10904_v54 = vpop.f32.mrb[63].mxu0  ;;  %v8367_v60 = vpop.eup %8366  ;;  %6376 = vst [vmem:[%s10222_s25 + $0x630] sm:$0xff] %v8365_v15  ;;  %8386 = vpow2.f32 %v6903_v63 }
 0x89e   : > { %11359 = vst [vmem:[#allocation14_spill] sm:$0xff] %v10904_v54  ;;  %v8369_v2 = vpop.eup %8368  ;;  %6375 = vst [vmem:[%s10222_s25 + $0x628] sm:$0xff] %v8367_v60  ;;  %8388 = vpow2.f32 %v6905_v44  ;;  %v10911_v54 = vpop.f32.mrb[32].mxu1  ;;  %v10918_v36 = vrot.slane %v10865_v25, %v3793_v32  ;;  %v4708_v32 = vadd.f32 %v10592_v28, %v10874_v38 }
 0x89f   : > { %v8371_v4 = vpop.eup %8370  ;;  %6377 = vst [vmem:[%s10222_s25 + $0x638] sm:$0xff] %v8369_v2  ;;  %8390 = vpow2.f32 %v6904_v10  ;;  %v10913_v43 = vpop.f32.mrb[33].mxu1 }
 0x8a0   : > { %v8373_v42 = vpop.eup %8372  ;;  %6381 = vst [vmem:[%s10222_s25 + $0x658] sm:$0xff] %v8371_v4  ;;  %8392 = vpow2.f32 %v6906_v57  ;;  %11360 = vst [vmem:[#allocation2_spill] sm:$0xff] %v10913_v43  ;;  %v10915_v60 = vpop.f32.mrb[34].mxu1  ;;  %v4521_v28 = vadd.f32 %v10610_v46, %v10918_v36 }
 0x8a1   : > { %v8375_v29 = vpop.eup %8374  ;;  %v5711_v47 = vadd.f32 1.0, %v8373_v42  ;;  %8394 = vpow2.f32 %v6690_v50  ;;  %11361 = vst [vmem:[#allocation15_spill] sm:$0xff] %v10915_v60  ;;  %v10920_v42 = vpop.f32.mrb[35].mxu1 }
 0x8a2   : > { %v8377_v15 = vpop.eup %8376  ;;  %v5710_v63 = vadd.f32 1.0, %v8375_v29  ;;  %8396 = vpow2.f32 %v6706_v62 }
 0x8a3   : > { %v8379_v44 = vpop.eup %8378  ;;  %8398 = vrcp.f32 %v5711_v47  ;;  %v5712_v61 = vadd.f32 1.0, %v8377_v15 }
 0x8a4   : > { %v8381_v10 = vpop.eup %8380  ;;  %8400 = vrcp.f32 %v5710_v63  ;;  %v5716_v57 = vadd.f32 1.0, %v8379_v44  ;;  %v11362_v63 = vld [vmem:[#allocation22_spill] sm:$0xff] }
 0x8a5   : > { %v8383_v50 = vpop.eup %8382  ;;  %8402 = vrcp.f32 %v5712_v61  ;;  %v5718_v2 = vadd.f32 1.0, %v8381_v10  ;;  %v4517_v44 = vadd.f32 %v11362_v63, %v10918_v36 }
 0x8a6   : > { %v8385_v4 = vpop.eup %8384  ;;  %8404 = vrcp.f32 %v5716_v57  ;;  %v5717_v62 = vadd.f32 1.0, %v8383_v50  ;;  %v4519_v57 = vadd.f32 %v10600_v41, %v10868_v16  ;;  %v6692_v41 = vmul.f32 -1.442695, %v4708_v32 }
 0x8a7   : > { %v8387_v29 = vpop.eup %8386  ;;  %8406 = vrcp.f32 %v5718_v2  ;;  %v5719_v47 = vadd.f32 1.0, %v8385_v4  ;;  %v4719_v4 = vadd.f32 %v10602_v33, %v10874_v38 }
 0x8a8   : > { %v8389_v15 = vpop.eup %8388  ;;  %8408 = vrcp.f32 %v5717_v62  ;;  %v5723_v60 = vadd.f32 1.0, %v8387_v29  ;;  %v6697_v33 = vmul.f32 -1.442695, %v4519_v57 }
 0x8a9   : > { %v8391_v43 = vpop.eup %8390  ;;  %8410 = vrcp.f32 %v5719_v47  ;;  %v5725_v25 = vadd.f32 1.0, %v8389_v15  ;;  %v6691_v47 = vmul.f32 -1.442695, %v4517_v44  ;;  %v4711_v15 = vadd.f32 %v10612_v6, %v10874_v38 }
 0x8aa   : > { %v8393_v61 = vpop.eup %8392  ;;  %8412 = vrcp.f32 %v5723_v60  ;;  %v5724_v10 = vadd.f32 1.0, %v8391_v43  ;;  %v6713_v46 = vmul.f32 -1.442695, %v4719_v4  ;;  %v6698_v6 = vmul.f32 -1.442695, %v4521_v28 }
 0x8ab   : > { %v8395_v50 = vpop.eup %8394  ;;  %8414 = vrcp.f32 %v5725_v25  ;;  %v5726_v2 = vadd.f32 1.0, %v8393_v61  ;;  %v4525_v25 = vadd.f32 %v10626_v27, %v10868_v16  ;;  %v4732_v61 = vadd.f32 %v10628_v3, %v10874_v38 }
 0x8ac   : > { %v8397_v62 = vpop.eup %8396  ;;  %8416 = vrcp.f32 %v5724_v10  ;;  %v5510_v29 = vadd.f32 1.0, %v8395_v50  ;;  %v4527_v10 = vadd.f32 %v10631_v13, %v10918_v36  ;;  %v6699_v27 = vmul.f32 -1.442695, %v4711_v15 }
 0x8ad   : > { %v8399_v60 = vpop.eup %8398  ;;  %8418 = vrcp.f32 %v5726_v2  ;;  %v5526_v43 = vadd.f32 1.0, %v8397_v62  ;;  %v4724_v50 = vadd.f32 %v10633_v17, %v10874_v38  ;;  %v6704_v3 = vmul.f32 -1.442695, %v4525_v25  ;;  %v10949_v62 = vpop.f32.mrb[36].mxu1 }
 0x8ae   : > { %v8401_v63 = vpop.eup %8400  ;;  %6383 = vst [vmem:[%s10222_s25 + $0x668] sm:$0xff] %v8399_v60  ;;  %8420 = vrcp.f32 %v5510_v29  ;;  %v4529_v4 = vadd.f32 %v10636_v1, %v10868_v16  ;;  %v6734_v13 = vmul.f32 -1.442695, %v4732_v61  ;;  %v10954_v60 = vpop.f32.mrb[37].mxu1 }
 0x8af   : > { %v8403_v44 = vpop.eup %8402  ;;  %6382 = vst [vmem:[%s10222_s25 + $0x660] sm:$0xff] %v8401_v63  ;;  %8422 = vrcp.f32 %v5526_v43  ;;  %v6705_v43 = vmul.f32 -1.442695, %v4527_v10  ;;  %v10959_v15 = vpop.f32.mrb[38].mxu1 }
 0x8b0   : > { %v8405_v32 = vpop.eup %8404  ;;  %6384 = vst [vmem:[%s10222_s25 + $0x670] sm:$0xff] %v8403_v44  ;;  %8424 = vpow2.f32 %v6691_v47  ;;  %v11363_v47 = vld [vmem:[#allocation23_spill] sm:$0xff]  ;;  %v10962_v25 = vpop.f32.mrb[39].mxu1 }
 0x8b1   : > { %v8407_v57 = vpop.eup %8406  ;;  %6388 = vst [vmem:[%s10222_s25 + $0x690] sm:$0xff] %v8405_v32  ;;  %8426 = vpow2.f32 %v6692_v41  ;;  %v4735_v28 = vadd.f32 %v11363_v47, %v10874_v38  ;;  %v11364_v41 = vld [vmem:[#allocation24_spill] sm:$0xff] }
 0x8b2   : > { %v8409_v2 = vpop.eup %8408  ;;  %6390 = vst [vmem:[%s10222_s25 + $0x6a0] sm:$0xff] %v8407_v57  ;;  %8428 = vpow2.f32 %v6697_v33  ;;  %v4531_v1 = vadd.f32 %v11364_v41, %v10918_v36  ;;  %v6720_v33 = vmul.f32 -1.442695, %v4724_v50  ;;  %v10969_v50 = vpop.f32.mrb[40].mxu1 }
 0x8b3   : > { %v8411_v29 = vpop.eup %8410  ;;  %6389 = vst [vmem:[%s10222_s25 + $0x698] sm:$0xff] %v8409_v2  ;;  %8430 = vpow2.f32 %v6713_v46  ;;  %v6711_v46 = vmul.f32 -1.442695, %v4529_v4  ;;  %v6741_v32 = vmul.f32 -1.442695, %v4735_v28 }
 0x8b4   : > { %v8413_v17 = vpop.eup %8412  ;;  %6391 = vst [vmem:[%s10222_s25 + $0x6a8] sm:$0xff] %v8411_v29  ;;  %8432 = vpow2.f32 %v6698_v6  ;;  %v6712_v10 = vmul.f32 -1.442695, %v4531_v1 }
 0x8b5   : > { %v8415_v63 = vpop.eup %8414  ;;  %6395 = vst [vmem:[%s10222_s25 + $0x6c8] sm:$0xff] %v8413_v17  ;;  %8434 = vpow2.f32 %v6699_v27 }
 0x8b6   : > { %v8417_v44 = vpop.eup %8416  ;;  %6397 = vst [vmem:[%s10222_s25 + $0x6d8] sm:$0xff] %v8415_v63  ;;  %8436 = vpow2.f32 %v6704_v3  ;;  %v10971_v3 = vpop.f32.mrb[41].mxu1 }
 0x8b7   : > { %v8419_v61 = vpop.eup %8418  ;;  %6396 = vst [vmem:[%s10222_s25 + $0x6d0] sm:$0xff] %v8417_v44  ;;  %8438 = vpow2.f32 %v6734_v13  ;;  %v10973_v47 = vpop.f32.mrb[42].mxu1 }
 0x8b8   : > { %v8421_v6 = vpop.eup %8420  ;;  %6398 = vst [vmem:[%s10222_s25 + $0x6e0] sm:$0xff] %v8419_v61  ;;  %8440 = vpow2.f32 %v6705_v43  ;;  %v10975_v43 = vpop.f32.mrb[43].mxu1 }
 0x8b9   : > { %v8423_v57 = vpop.eup %8422  ;;  %6182 = vst [vmem:[%s10222_s25 + $0x20] sm:$0xff] %v8421_v6  ;;  %8442 = vpow2.f32 %v6720_v33 }
 0x8ba   : > { %v8425_v27 = vpop.eup %8424  ;;  %6198 = vst [vmem:[%s10222_s25 + $0xa0] sm:$0xff] %v8423_v57  ;;  %8444 = vpow2.f32 %v6711_v46  ;;  %v11365_v57 = vld [vmem:[#allocation25_spill] sm:$0xff] }
 0x8bb   : > { %v8427_v2 = vpop.eup %8426  ;;  %v5511_v29 = vadd.f32 1.0, %v8425_v27  ;;  %8446 = vpow2.f32 %v6741_v32  ;;  %v4727_v27 = vadd.f32 %v11365_v57, %v10874_v38 }
 0x8bc   : > { %v8429_v4 = vpop.eup %8428  ;;  %v5512_v13 = vadd.f32 1.0, %v8427_v2  ;;  %8448 = vpow2.f32 %v6712_v10  ;;  %v10979_v2 = vpop.f32.mrb[44].mxu1 }
 0x8bd   : > { %v8431_v28 = vpop.eup %8430  ;;  %8450 = vrcp.f32 %v5511_v29  ;;  %v5517_v17 = vadd.f32 1.0, %v8429_v4 }
 0x8be   : > { %v8433_v41 = vpop.eup %8432  ;;  %8452 = vrcp.f32 %v5512_v13  ;;  %v5533_v1 = vadd.f32 1.0, %v8431_v28  ;;  %v4535_v13 = vadd.f32 %v10672_v35, %v10868_v16  ;;  %v10983_v28 = vpop.f32.mrb[45].mxu1 }
 0x8bf   : > { %v8435_v63 = vpop.eup %8434  ;;  %8454 = vrcp.f32 %v5517_v17  ;;  %v5518_v33 = vadd.f32 1.0, %v8433_v41 }
 0x8c0   : > { %v8437_v44 = vpop.eup %8436  ;;  %8456 = vrcp.f32 %v5533_v1  ;;  %v5519_v46 = vadd.f32 1.0, %v8435_v63  ;;  %v4748_v1 = vadd.f32 %v10674_v24, %v10874_v38  ;;  %v10987_v63 = vpop.f32.mrb[46].mxu1 }
 0x8c1   : > { %v8439_v61 = vpop.eup %8438  ;;  %8458 = vrcp.f32 %v5518_v33  ;;  %v5524_v32 = vadd.f32 1.0, %v8437_v44 }
 0x8c2   : > { %v8441_v6 = vpop.eup %8440  ;;  %8460 = vrcp.f32 %v5519_v46  ;;  %v5554_v10 = vadd.f32 1.0, %v8439_v61  ;;  %v4537_v46 = vadd.f32 %v10679_v21, %v10918_v36  ;;  %v10991_v61 = vpop.f32.mrb[47].mxu1  ;;  %v6762_v21 = vmul.f32 -1.442695, %v4748_v1 }
 0x8c3   : > { %v8443_v29 = vpop.eup %8442  ;;  %8462 = vrcp.f32 %v5524_v32  ;;  %v5525_v4 = vadd.f32 1.0, %v8441_v6  ;;  %v6727_v6 = vmul.f32 -1.442695, %v4727_v27  ;;  %v11006_v1 = vpop.f32.mrb[48].mxu1 }
 0x8c4   : > { %v8445_v17 = vpop.eup %8444  ;;  %8464 = vrcp.f32 %v5554_v10  ;;  %v5540_v41 = vadd.f32 1.0, %v8443_v29  ;;  %v4740_v10 = vadd.f32 %v10681_v40, %v10874_v38  ;;  %v6718_v29 = vmul.f32 -1.442695, %v4535_v13 }
 0x8c5   : > { %v8447_v33 = vpop.eup %8446  ;;  %8466 = vrcp.f32 %v5525_v4  ;;  %v5531_v44 = vadd.f32 1.0, %v8445_v17  ;;  %v4539_v4 = vadd.f32 %v10686_v11, %v10868_v16  ;;  %v6719_v40 = vmul.f32 -1.442695, %v4537_v46 }
 0x8c6   : > { %v8449_v35 = vpop.eup %8448  ;;  %8468 = vrcp.f32 %v5540_v41  ;;  %v5561_v32 = vadd.f32 1.0, %v8447_v33  ;;  %v4751_v41 = vadd.f32 %v10688_v23, %v10874_v38  ;;  %v4541_v33 = vadd.f32 %v10691_v0, %v10918_v36 }
 0x8c7   : > { %v8451_v24 = vpop.eup %8450  ;;  %8470 = vrcp.f32 %v5531_v44  ;;  %v5532_v57 = vadd.f32 1.0, %v8449_v35  ;;  %v6748_v11 = vmul.f32 -1.442695, %v4740_v10  ;;  %v4743_v44 = vadd.f32 %v10693_v56, %v10874_v38 }
 0x8c8   : > { %v8453_v17 = vpop.eup %8452  ;;  %6183 = vst [vmem:[%s10222_s25 + $0x28] sm:$0xff] %v8451_v24  ;;  %8472 = vrcp.f32 %v5561_v32  ;;  %v6725_v23 = vmul.f32 -1.442695, %v4539_v4  ;;  %v4545_v46 = vadd.f32 %v10700_v37, %v10868_v16  ;;  %v11011_v32 = vpop.f32.mrb[49].mxu1  ;;  %v4764_v56 = vadd.f32 %v10702_v19, %v10874_v38 }
 0x8c9   : > { %v8455_v27 = vpop.eup %8454  ;;  %6184 = vst [vmem:[%s10222_s25 + $0x30] sm:$0xff] %v8453_v17  ;;  %8474 = vrcp.f32 %v5532_v57  ;;  %v11016_v10 = vpop.f32.mrb[50].mxu1  ;;  %v6726_v57 = vmul.f32 -1.442695, %v4541_v33  ;;  %v4547_v37 = vadd.f32 %v10704_v22, %v10918_v36  ;;  %v6755_v17 = vmul.f32 -1.442695, %v4743_v44 }
 0x8ca   : > { %v8457_v13 = vpop.eup %8456  ;;  %6189 = vst [vmem:[%s10222_s25 + $0x58] sm:$0xff] %v8455_v27  ;;  %8476 = vpow2.f32 %v6727_v6  ;;  %v6769_v6 = vmul.f32 -1.442695, %v4751_v41  ;;  %v4756_v19 = vadd.f32 %v10706_v45, %v10874_v38  ;;  %v6732_v41 = vmul.f32 -1.442695, %v4545_v46 }
 0x8cb   : > { %v8459_v35 = vpop.eup %8458  ;;  %6205 = vst [vmem:[%s10222_s25 + $0xd8] sm:$0xff] %v8457_v13  ;;  %8478 = vpow2.f32 %v6718_v29  ;;  %v11021_v29 = vpop.f32.mrb[51].mxu1  ;;  %v6790_v22 = vmul.f32 -1.442695, %v4764_v56  ;;  %v6733_v33 = vmul.f32 -1.442695, %v4547_v37 }
 0x8cc   : > { %v8461_v0 = vpop.eup %8460  ;;  %6190 = vst [vmem:[%s10222_s25 + $0x60] sm:$0xff] %v8459_v35  ;;  %8480 = vpow2.f32 %v6762_v21  ;;  %v11030_v44 = vpop.f32.mrb[52].mxu1 }
 0x8cd   : > { %v8463_v24 = vpop.eup %8462  ;;  %6191 = vst [vmem:[%s10222_s25 + $0x68] sm:$0xff] %v8461_v0  ;;  %8482 = vpow2.f32 %v6719_v40  ;;  %v11033_v35 = vpop.f32.mrb[53].mxu1 }
 0x8ce   : > { %v8465_v4 = vpop.eup %8464  ;;  %6196 = vst [vmem:[%s10222_s25 + $0x90] sm:$0xff] %v8463_v24  ;;  %8484 = vpow2.f32 %v6748_v11  ;;  %v6776_v11 = vmul.f32 -1.442695, %v4756_v19  ;;  %v11036_v46 = vpop.f32.mrb[54].mxu1 }
 0x8cf   : > { %v8467_v21 = vpop.eup %8466  ;;  %6226 = vst [vmem:[%s10222_s25 + $0x180] sm:$0xff] %v8465_v4  ;;  %8486 = vpow2.f32 %v6725_v23  ;;  %v11038_v56 = vpop.f32.mrb[55].mxu1 }
 0x8d0   : > { %v8469_v27 = vpop.eup %8468  ;;  %6197 = vst [vmem:[%s10222_s25 + $0x98] sm:$0xff] %v8467_v21  ;;  %8488 = vpow2.f32 %v6769_v6 }
 0x8d1   : > { %v8471_v40 = vpop.eup %8470  ;;  %6212 = vst [vmem:[%s10222_s25 + $0x110] sm:$0xff] %v8469_v27  ;;  %8490 = vpow2.f32 %v6726_v57 }
 0x8d2   : > { %v8473_v13 = vpop.eup %8472  ;;  %6203 = vst [vmem:[%s10222_s25 + $0xc8] sm:$0xff] %v8471_v40  ;;  %8492 = vpow2.f32 %v6755_v17  ;;  %v11040_v40 = vpop.f32.mrb[56].mxu1 }
 0x8d3   : > { %v8475_v45 = vpop.eup %8474  ;;  %6233 = vst [vmem:[%s10222_s25 + $0x1b8] sm:$0xff] %v8473_v13  ;;  %8494 = vpow2.f32 %v6732_v41 }
 0x8d4   : > { %v8477_v23 = vpop.eup %8476  ;;  %6204 = vst [vmem:[%s10222_s25 + $0xd0] sm:$0xff] %v8475_v45  ;;  %8496 = vpow2.f32 %v6790_v22  ;;  %v11042_v45 = vpop.f32.mrb[57].mxu1 }
 0x8d5   : > { %v8479_v0 = vpop.eup %8478  ;;  %v5547_v6 = vadd.f32 1.0, %v8477_v23  ;;  %8498 = vpow2.f32 %v6733_v33 }
 0x8d6   : > { %v8481_v24 = vpop.eup %8480  ;;  %v5538_v57 = vadd.f32 1.0, %v8479_v0  ;;  %8500 = vpow2.f32 %v6776_v11  ;;  %v4549_v0 = vadd.f32 %v10708_v14, %v10868_v16 }
 0x8d7   : > { %v8483_v37 = vpop.eup %8482  ;;  %8502 = vrcp.f32 %v5547_v6  ;;  %v5582_v4 = vadd.f32 1.0, %v8481_v24  ;;  %v11046_v6 = vpop.f32.mrb[58].mxu1 }
 0x8d8   : > { %v8485_v17 = vpop.eup %8484  ;;  %8504 = vrcp.f32 %v5538_v57  ;;  %v5539_v19 = vadd.f32 1.0, %v8483_v37  ;;  %v4767_v37 = vadd.f32 %v10722_v26, %v10874_v38  ;;  %v6739_v26 = vmul.f32 -1.442695, %v4549_v0 }
 0x8d9   : > { %v8487_v21 = vpop.eup %8486  ;;  %8506 = vrcp.f32 %v5582_v4  ;;  %v5568_v41 = vadd.f32 1.0, %v8485_v17  ;;  %v11050_v4 = vpop.f32.mrb[59].mxu1 }
 0x8da   : > { %v8489_v27 = vpop.eup %8488  ;;  %8508 = vrcp.f32 %v5539_v19  ;;  %v5545_v22 = vadd.f32 1.0, %v8487_v21  ;;  %v4551_v21 = vadd.f32 %v10730_v30, %v10918_v36  ;;  %v6797_v30 = vmul.f32 -1.442695, %v4767_v37  ;;  %v11063_v0 = vpop.f32.mrb[60].mxu1 }
 0x8db   : > { %v8491_v33 = vpop.eup %8490  ;;  %8510 = vrcp.f32 %v5568_v41  ;;  %v5589_v13 = vadd.f32 1.0, %v8489_v27  ;;  %v4759_v27 = vadd.f32 %v10732_v52, %v10874_v38  ;;  %v4772_v37 = vadd.f32 %v10757_v20, %v10874_v38 }
 0x8dc   : > { %v8493_v11 = vpop.eup %8492  ;;  %8512 = vrcp.f32 %v5545_v22  ;;  %v5546_v23 = vadd.f32 1.0, %v8491_v33  ;;  %v6740_v52 = vmul.f32 -1.442695, %v4551_v21 }
 0x8dd   : > { %v8495_v24 = vpop.eup %8494  ;;  %8514 = vrcp.f32 %v5589_v13  ;;  %v5575_v57 = vadd.f32 1.0, %v8493_v11  ;;  %v4555_v13 = vadd.f32 %v10750_v5, %v10868_v16  ;;  %v6783_v5 = vmul.f32 -1.442695, %v4759_v27 }
 0x8de   : > { %v8497_v17 = vpop.eup %8496  ;;  %8516 = vrcp.f32 %v5546_v23  ;;  %v5552_v19 = vadd.f32 1.0, %v8495_v24  ;;  %v4780_v24 = vadd.f32 %v10752_v31, %v10874_v38 }
 0x8df   : > { %v8499_v41 = vpop.eup %8498  ;;  %8518 = vrcp.f32 %v5575_v57  ;;  %v5610_v14 = vadd.f32 1.0, %v8497_v17  ;;  %v4557_v17 = vadd.f32 %v10755_v55, %v10918_v36  ;;  %v6746_v21 = vmul.f32 -1.442695, %v4555_v13  ;;  %v11369_v13 = vld [vmem:[#allocation5_spill] sm:$0xff] }
 0x8e0   : > { %v8501_v22 = vpop.eup %8500  ;;  %8520 = vrcp.f32 %v5552_v19  ;;  %v5553_v33 = vadd.f32 1.0, %v8499_v41  ;;  %v11068_v41 = vpop.f32.mrb[61].mxu1  ;;  %v6818_v27 = vmul.f32 -1.442695, %v4780_v24 }
 0x8e1   : > { %v8503_v11 = vpop.eup %8502  ;;  %8522 = vrcp.f32 %v5610_v14  ;;  %v5596_v23 = vadd.f32 1.0, %v8501_v22  ;;  %v11366_v14 = vld [vmem:[#allocation3_spill] sm:$0xff]  ;;  %v11073_v22 = vpop.f32.mrb[62].mxu1 }
 0x8e2   : > { %v8505_v57 = vpop.eup %8504  ;;  %6219 = vst [vmem:[%s10222_s25 + $0x148] sm:$0xff] %v8503_v11  ;;  %8524 = vrcp.f32 %v5553_v33  ;;  %v4559_v55 = vadd.f32 %v11366_v14, %v10868_v16  ;;  %v11367_v11 = vld [vmem:[#allocation4_spill] sm:$0xff] }
 0x8e3   : > { %v8507_v19 = vpop.eup %8506  ;;  %6210 = vst [vmem:[%s10222_s25 + $0x100] sm:$0xff] %v8505_v57  ;;  %8526 = vrcp.f32 %v5596_v23  ;;  %v4783_v20 = vadd.f32 %v11367_v11, %v10874_v38  ;;  %v11078_v23 = vpop.f32.mrb[63].mxu1 }
 0x8e4   : > { %v8509_v31 = vpop.eup %8508  ;;  %6254 = vst [vmem:[%s10222_s25 + $0x260] sm:$0xff] %v8507_v19  ;;  %8528 = vpow2.f32 %v6739_v26  ;;  %11368 = vst [vmem:[#allocation16_spill] sm:$0xff] %v11078_v23  ;;  %v6747_v26 = vmul.f32 -1.442695, %v4557_v17  ;;  %v4561_v19 = vadd.f32 %v11369_v13, %v10918_v36  ;;  %v6753_v23 = vmul.f32 -1.442695, %v4559_v55 }
 0x8e5   : > { %v8511_v33 = vpop.eup %8510  ;;  %6211 = vst [vmem:[%s10222_s25 + $0x108] sm:$0xff] %v8509_v31  ;;  %8530 = vpow2.f32 %v6797_v30  ;;  %v6804_v31 = vmul.f32 -1.442695, %v4772_v37  ;;  %v11370_v30 = vld [vmem:[#allocation6_spill] sm:$0xff]  ;;  %v6825_v13 = vmul.f32 -1.442695, %v4783_v20 }
 0x8e6   : > { %v8513_v57 = vpop.eup %8512  ;;  %6240 = vst [vmem:[%s10222_s25 + $0x1f0] sm:$0xff] %v8511_v33  ;;  %8532 = vpow2.f32 %v6740_v52  ;;  %v4775_v24 = vadd.f32 %v11370_v30, %v10874_v38  ;;  %v11371_v52 = vld [vmem:[#allocation7_spill] sm:$0xff] }
 0x8e7   : > { %v8515_v14 = vpop.eup %8514  ;;  %6217 = vst [vmem:[%s10222_s25 + $0x138] sm:$0xff] %v8513_v57  ;;  %8534 = vpow2.f32 %v6783_v5  ;;  %v4565_v17 = vadd.f32 %v11371_v52, %v10868_v16  ;;  %v6754_v5 = vmul.f32 -1.442695, %v4561_v19 }
 0x8e8   : > { %v8517_v11 = vpop.eup %8516  ;;  %6261 = vst [vmem:[%s10222_s25 + $0x298] sm:$0xff] %v8515_v14  ;;  %8536 = vpow2.f32 %v6746_v21  ;;  %v6811_v14 = vmul.f32 -1.442695, %v4775_v24 }
 0x8e9   : > { %v8519_v33 = vpop.eup %8518  ;;  %6218 = vst [vmem:[%s10222_s25 + $0x140] sm:$0xff] %v8517_v11  ;;  %8538 = vpow2.f32 %v6818_v27  ;;  %v6760_v55 = vmul.f32 -1.442695, %v4565_v17 }
 0x8ea   : > { %v8521_v57 = vpop.eup %8520  ;;  %6247 = vst [vmem:[%s10222_s25 + $0x228] sm:$0xff] %v8519_v33  ;;  %8540 = vpow2.f32 %v6747_v26 }
 0x8eb   : > { %v8523_v37 = vpop.eup %8522  ;;  %6224 = vst [vmem:[%s10222_s25 + $0x170] sm:$0xff] %v8521_v57  ;;  %8542 = vpow2.f32 %v6804_v31 }
 0x8ec   : > { %v8525_v21 = vpop.eup %8524  ;;  %6282 = vst [vmem:[%s10222_s25 + $0x340] sm:$0xff] %v8523_v37  ;;  %8544 = vpow2.f32 %v6753_v23 }
 0x8ed   : > { %v8527_v30 = vpop.eup %8526  ;;  %6225 = vst [vmem:[%s10222_s25 + $0x178] sm:$0xff] %v8525_v21  ;;  %8546 = vpow2.f32 %v6825_v13 }
 0x8ee   : > { %v8529_v11 = vpop.eup %8528  ;;  %6268 = vst [vmem:[%s10222_s25 + $0x2d0] sm:$0xff] %v8527_v30  ;;  %8548 = vpow2.f32 %v6754_v5 }
 0x8ef   : > { %v8531_v27 = vpop.eup %8530  ;;  %v5559_v20 = vadd.f32 1.0, %v8529_v11  ;;  %8550 = vpow2.f32 %v6811_v14 }
 0x8f0   : > { %v8533_v52 = vpop.eup %8532  ;;  %v5617_v26 = vadd.f32 1.0, %v8531_v27  ;;  %8552 = vpow2.f32 %v6760_v55  ;;  %v11372_v55 = vld [vmem:[#allocation8_spill] sm:$0xff] }
 0x8f1   : > { %v8535_v19 = vpop.eup %8534  ;;  %8554 = vrcp.f32 %v5559_v20  ;;  %v5560_v31 = vadd.f32 1.0, %v8533_v52  ;;  %v4796_v30 = vadd.f32 %v11372_v55, %v10874_v38  ;;  %v4567_v20 = vadd.f32 %v10790_v39, %v10918_v36 }
 0x8f2   : > { %v8537_v24 = vpop.eup %8536  ;;  %8556 = vrcp.f32 %v5617_v26  ;;  %v5603_v33 = vadd.f32 1.0, %v8535_v19  ;;  %v4788_v19 = vadd.f32 %v10792_v12, %v10874_v38  ;;  %v4799_v39 = vadd.f32 %v10802_v18, %v10874_v38 }
 0x8f3   : > { %v8539_v23 = vpop.eup %8538  ;;  %8558 = vrcp.f32 %v5560_v31  ;;  %v5566_v17 = vadd.f32 1.0, %v8537_v24  ;;  %v6761_v12 = vmul.f32 -1.442695, %v4567_v20  ;;  %v11374_v20 = vld [vmem:[#allocation10_spill] sm:$0xff] }
 0x8f4   : > { %v8541_v57 = vpop.eup %8540  ;;  %8560 = vrcp.f32 %v5603_v33  ;;  %v5638_v13 = vadd.f32 1.0, %v8539_v23  ;;  %v4569_v33 = vadd.f32 %v10800_v34, %v10868_v16  ;;  %v6832_v34 = vmul.f32 -1.442695, %v4788_v19  ;;  %v11375_v19 = vld [vmem:[#allocation11_spill] sm:$0xff] }
 0x8f5   : > { %v8543_v37 = vpop.eup %8542  ;;  %8562 = vrcp.f32 %v5566_v17  ;;  %v5567_v5 = vadd.f32 1.0, %v8541_v57  ;;  %v6846_v57 = vmul.f32 -1.442695, %v4796_v30  ;;  %v11373_v30 = vld [vmem:[#allocation9_spill] sm:$0xff] }
 0x8f6   : > { %v8545_v21 = vpop.eup %8544  ;;  %8564 = vrcp.f32 %v5638_v13  ;;  %v5624_v14 = vadd.f32 1.0, %v8543_v37  ;;  %v6767_v18 = vmul.f32 -1.442695, %v4569_v33 }
 0x8f7   : > { %v8547_v11 = vpop.eup %8546  ;;  %8566 = vrcp.f32 %v5567_v5  ;;  %v5573_v27 = vadd.f32 1.0, %v8545_v21  ;;  %v4571_v5 = vadd.f32 %v10810_v49, %v10918_v36  ;;  %v6853_v49 = vmul.f32 -1.442695, %v4799_v39 }
 0x8f8   : > { %v8549_v52 = vpop.eup %8548  ;;  %8568 = vrcp.f32 %v5624_v14  ;;  %v5645_v26 = vadd.f32 1.0, %v8547_v11  ;;  %v4791_v14 = vadd.f32 %v10812_v59, %v10874_v38  ;;  %v4575_v11 = vadd.f32 %v11373_v30, %v10868_v16 }
 0x8f9   : > { %v8551_v31 = vpop.eup %8550  ;;  %8570 = vrcp.f32 %v5573_v27  ;;  %v5574_v24 = vadd.f32 1.0, %v8549_v52  ;;  %v4812_v52 = vadd.f32 %v11374_v20, %v10874_v38  ;;  %v6768_v59 = vmul.f32 -1.442695, %v4571_v5 }
 0x8fa   : > { %v8553_v23 = vpop.eup %8552  ;;  %8572 = vrcp.f32 %v5645_v26  ;;  %v5631_v17 = vadd.f32 1.0, %v8551_v31  ;;  %v4577_v31 = vadd.f32 %v11375_v19, %v10918_v36  ;;  %v6839_v33 = vmul.f32 -1.442695, %v4791_v14 }
 0x8fb   : > { %v8555_v13 = vpop.eup %8554  ;;  %8574 = vrcp.f32 %v5574_v24  ;;  %v5580_v37 = vadd.f32 1.0, %v8553_v23  ;;  %v11376_v23 = vld [vmem:[#allocation12_spill] sm:$0xff]  ;;  %v6774_v39 = vmul.f32 -1.442695, %v4575_v11  ;;  %v6874_v5 = vmul.f32 -1.442695, %v4812_v52 }
 0x8fc   : > { %v8557_v21 = vpop.eup %8556  ;;  %6231 = vst [vmem:[%s10222_s25 + $0x1a8] sm:$0xff] %v8555_v13  ;;  %8576 = vrcp.f32 %v5631_v17  ;;  %v4804_v17 = vadd.f32 %v11376_v23, %v10874_v38  ;;  %v11377_v13 = vld [vmem:[#allocation26_spill] sm:$0xff] }
 0x8fd   : > { %v8559_v55 = vpop.eup %8558  ;;  %6289 = vst [vmem:[%s10222_s25 + $0x378] sm:$0xff] %v8557_v21  ;;  %8578 = vrcp.f32 %v5580_v37  ;;  %v4579_v37 = vadd.f32 %v11377_v13, %v10868_v16  ;;  %v11378_v21 = vld [vmem:[#allocation27_spill] sm:$0xff] }
 0x8fe   : > { %v8561_v27 = vpop.eup %8560  ;;  %6232 = vst [vmem:[%s10222_s25 + $0x1b0] sm:$0xff] %v8559_v55  ;;  %8580 = vpow2.f32 %v6846_v57  ;;  %v6775_v55 = vmul.f32 -1.442695, %v4577_v31 }
 0x8ff   : > { %v8563_v26 = vpop.eup %8562  ;;  %6275 = vst [vmem:[%s10222_s25 + $0x308] sm:$0xff] %v8561_v27  ;;  %8582 = vpow2.f32 %v6761_v12  ;;  %v6781_v27 = vmul.f32 -1.442695, %v4579_v37 }
 0x900   : > { %v8565_v24 = vpop.eup %8564  ;;  %6238 = vst [vmem:[%s10222_s25 + $0x1e0] sm:$0xff] %v8563_v26  ;;  %8584 = vpow2.f32 %v6832_v34  ;;  %v4815_v34 = vadd.f32 %v11378_v21, %v10874_v38 }
 0x901   : > { %v8567_v57 = vpop.eup %8566  ;;  %6310 = vst [vmem:[%s10222_s25 + $0x420] sm:$0xff] %v8565_v24  ;;  %8586 = vpow2.f32 %v6767_v18  ;;  %v6860_v18 = vmul.f32 -1.442695, %v4804_v17 }
 0x902   : > { %v8569_v12 = vpop.eup %8568  ;;  %6239 = vst [vmem:[%s10222_s25 + $0x1e8] sm:$0xff] %v8567_v57  ;;  %8588 = vpow2.f32 %v6853_v49  ;;  %v6881_v20 = vmul.f32 -1.442695, %v4815_v34 }
 0x903   : > { %v8571_v14 = vpop.eup %8570  ;;  %6296 = vst [vmem:[%s10222_s25 + $0x3b0] sm:$0xff] %v8569_v12  ;;  %8590 = vpow2.f32 %v6768_v59 }
 0x904   : > { %v8573_v30 = vpop.eup %8572  ;;  %6245 = vst [vmem:[%s10222_s25 + $0x218] sm:$0xff] %v8571_v14  ;;  %8592 = vpow2.f32 %v6839_v33 }
 0x905   : > { %v8575_v11 = vpop.eup %8574  ;;  %6317 = vst [vmem:[%s10222_s25 + $0x458] sm:$0xff] %v8573_v30  ;;  %8594 = vpow2.f32 %v6774_v39 }
 0x906   : > { %v8577_v49 = vpop.eup %8576  ;;  %6246 = vst [vmem:[%s10222_s25 + $0x220] sm:$0xff] %v8575_v11  ;;  %8596 = vpow2.f32 %v6874_v5 }
 0x907   : > { %v8579_v52 = vpop.eup %8578  ;;  %6303 = vst [vmem:[%s10222_s25 + $0x3e8] sm:$0xff] %v8577_v49  ;;  %8598 = vpow2.f32 %v6775_v55  ;;  %v11379_v55 = vld [vmem:[#allocation28_spill] sm:$0xff] }
 0x908   : > { %v8581_v26 = vpop.eup %8580  ;;  %6252 = vst [vmem:[%s10222_s25 + $0x250] sm:$0xff] %v8579_v52  ;;  %8600 = vpow2.f32 %v6860_v18  ;;  %v4581_v30 = vadd.f32 %v11379_v55, %v10918_v36  ;;  %v4585_v52 = vadd.f32 %v10885_v7, %v10868_v16  ;;  %v11381_v55 = vld [vmem:[#allocation14_spill] sm:$0xff] }
 0x909   : > { %v8583_v59 = vpop.eup %8582  ;;  %v5666_v19 = vadd.f32 1.0, %v8581_v26  ;;  %8602 = vpow2.f32 %v6781_v27  ;;  %v4807_v27 = vadd.f32 %v10854_v48, %v10874_v38  ;;  %v4587_v48 = vadd.f32 %v10892_v9, %v10918_v36 }
 0x90a   : > { %v8585_v31 = vpop.eup %8584  ;;  %v5581_v24 = vadd.f32 1.0, %v8583_v59  ;;  %8604 = vpow2.f32 %v6881_v20 }
 0x90b   : > { %v8587_v33 = vpop.eup %8586  ;;  %8606 = vrcp.f32 %v5666_v19  ;;  %v5652_v23 = vadd.f32 1.0, %v8585_v31  ;;  %v4828_v19 = vadd.f32 %v10887_v51, %v10874_v38  ;;  %v6867_v7 = vmul.f32 -1.442695, %v4807_v27 }
 0x90c   : > { %v8589_v17 = vpop.eup %8588  ;;  %8608 = vrcp.f32 %v5581_v24  ;;  %v5587_v57 = vadd.f32 1.0, %v8587_v33  ;;  %v6782_v33 = vmul.f32 -1.442695, %v4581_v30  ;;  %v6788_v51 = vmul.f32 -1.442695, %v4585_v52 }
 0x90d   : > { %v8591_v39 = vpop.eup %8590  ;;  %8610 = vrcp.f32 %v5652_v23  ;;  %v5673_v13 = vadd.f32 1.0, %v8589_v17  ;;  %v6902_v9 = vmul.f32 -1.442695, %v4828_v19  ;;  %v4823_v30 = vadd.f32 %v11381_v55, %v10874_v38 }
 0x90e   : > { %v8593_v37 = vpop.eup %8592  ;;  %8612 = vrcp.f32 %v5587_v57  ;;  %v5588_v12 = vadd.f32 1.0, %v8591_v39  ;;  %v4820_v57 = vadd.f32 %v10894_v8, %v10874_v38  ;;  %v6789_v8 = vmul.f32 -1.442695, %v4587_v48 }
 0x90f   : > { %v8595_v5 = vpop.eup %8594  ;;  %8614 = vrcp.f32 %v5673_v13  ;;  %v5659_v21 = vadd.f32 1.0, %v8593_v37  ;;  %v4589_v13 = vadd.f32 %v10897_v58, %v10868_v16  ;;  %v4595_v27 = vadd.f32 %v10911_v54, %v10868_v16 }
 0x910   : > { %v8597_v34 = vpop.eup %8596  ;;  %8616 = vrcp.f32 %v5588_v12  ;;  %v5594_v14 = vadd.f32 1.0, %v8595_v5  ;;  %v11380_v12 = vld [vmem:[#allocation13_spill] sm:$0xff]  ;;  %v6888_v58 = vmul.f32 -1.442695, %v4820_v57  ;;  %v6895_v54 = vmul.f32 -1.442695, %v4823_v30 }
 0x911   : > { %v8599_v18 = vpop.eup %8598  ;;  %8618 = vrcp.f32 %v5659_v21  ;;  %v5694_v11 = vadd.f32 1.0, %v8597_v34  ;;  %v4831_v5 = vadd.f32 %v11380_v12, %v10874_v38  ;;  %v4591_v34 = vadd.f32 %v10902_v53, %v10918_v36 }
 0x912   : > { %v8601_v49 = vpop.eup %8600  ;;  %8620 = vrcp.f32 %v5594_v14  ;;  %v5595_v20 = vadd.f32 1.0, %v8599_v18 }
 0x913   : > { %v8603_v26 = vpop.eup %8602  ;;  %8622 = vrcp.f32 %v5694_v11  ;;  %v5680_v59 = vadd.f32 1.0, %v8601_v49  ;;  %v6795_v11 = vmul.f32 -1.442695, %v4589_v13  ;;  %v6909_v53 = vmul.f32 -1.442695, %v4831_v5 }
 0x914   : > { %v8605_v31 = vpop.eup %8604  ;;  %8624 = vrcp.f32 %v5595_v20  ;;  %v5601_v24 = vadd.f32 1.0, %v8603_v26  ;;  %v11382_v20 = vld [vmem:[#allocation2_spill] sm:$0xff]  ;;  %v6796_v38 = vmul.f32 -1.442695, %v4591_v34 }
 0x915   : > { %v8607_v23 = vpop.eup %8606  ;;  %8626 = vrcp.f32 %v5680_v59  ;;  %v5701_v17 = vadd.f32 1.0, %v8605_v31  ;;  %v4597_v52 = vadd.f32 %v11382_v20, %v10918_v36  ;;  %v11383_v59 = vld [vmem:[#allocation15_spill] sm:$0xff] }
 0x916   : > { %v8609_v39 = vpop.eup %8608  ;;  %6338 = vst [vmem:[%s10222_s25 + $0x500] sm:$0xff] %v8607_v23  ;;  %8628 = vrcp.f32 %v5601_v24  ;;  %v4599_v19 = vadd.f32 %v11383_v59, %v10868_v16  ;;  %v4607_v59 = vadd.f32 %v10954_v60, %v10918_v36 }
 0x917   : > { %v8611_v37 = vpop.eup %8610  ;;  %6253 = vst [vmem:[%s10222_s25 + $0x258] sm:$0xff] %v8609_v39  ;;  %8630 = vrcp.f32 %v5701_v17  ;;  %v6803_v23 = vmul.f32 -1.442695, %v4597_v52  ;;  %v4605_v52 = vadd.f32 %v10949_v62, %v10868_v16  ;;  %v4611_v62 = vadd.f32 %v10962_v25, %v10918_v36 }
 0x918   : > { %v8613_v21 = vpop.eup %8612  ;;  %6324 = vst [vmem:[%s10222_s25 + $0x490] sm:$0xff] %v8611_v37  ;;  %8632 = vpow2.f32 %v6782_v33  ;;  %v6802_v33 = vmul.f32 -1.442695, %v4595_v27 }
 0x919   : > { %v8615_v14 = vpop.eup %8614  ;;  %6259 = vst [vmem:[%s10222_s25 + $0x288] sm:$0xff] %v8613_v21  ;;  %8634 = vpow2.f32 %v6867_v7  ;;  %v6809_v7 = vmul.f32 -1.442695, %v4599_v19  ;;  %v6816_v60 = vmul.f32 -1.442695, %v4605_v52 }
 0x91a   : > { %v8617_v18 = vpop.eup %8616  ;;  %6345 = vst [vmem:[%s10222_s25 + $0x538] sm:$0xff] %v8615_v14  ;;  %8636 = vpow2.f32 %v6788_v51 }
 0x91b   : > { %v8619_v49 = vpop.eup %8618  ;;  %6260 = vst [vmem:[%s10222_s25 + $0x290] sm:$0xff] %v8617_v18  ;;  %8638 = vpow2.f32 %v6902_v9 }
 0x91c   : > { %v8621_v26 = vpop.eup %8620  ;;  %6331 = vst [vmem:[%s10222_s25 + $0x4c8] sm:$0xff] %v8619_v49  ;;  %8640 = vpow2.f32 %v6789_v8  ;;  %v4601_v49 = vadd.f32 %v10920_v42, %v10918_v36 }
 0x91d   : > { %v8623_v31 = vpop.eup %8622  ;;  %6266 = vst [vmem:[%s10222_s25 + $0x2c0] sm:$0xff] %v8621_v26  ;;  %8642 = vpow2.f32 %v6888_v58 }
 0x91e   : > { %v8625_v24 = vpop.eup %8624  ;;  %6366 = vst [vmem:[%s10222_s25 + $0x5e0] sm:$0xff] %v8623_v31  ;;  %8644 = vpow2.f32 %v6795_v11 }
 0x91f   : > { %v8627_v48 = vpop.eup %8626  ;;  %6267 = vst [vmem:[%s10222_s25 + $0x2c8] sm:$0xff] %v8625_v24  ;;  %8646 = vpow2.f32 %v6909_v53 }
 0x920   : > { %v8629_v17 = vpop.eup %8628  ;;  %6352 = vst [vmem:[%s10222_s25 + $0x570] sm:$0xff] %v8627_v48  ;;  %8648 = vpow2.f32 %v6796_v38 }
 0x921   : > { %v8631_v57 = vpop.eup %8630  ;;  %6273 = vst [vmem:[%s10222_s25 + $0x2f8] sm:$0xff] %v8629_v17  ;;  %8650 = vpow2.f32 %v6895_v54  ;;  %v4609_v54 = vadd.f32 %v10959_v15, %v10868_v16  ;;  %v4615_v17 = vadd.f32 %v10969_v50, %v10868_v16  ;;  %v6817_v15 = vmul.f32 -1.442695, %v4607_v59 }
 0x922   : > { %v8633_v39 = vpop.eup %8632  ;;  %6373 = vst [vmem:[%s10222_s25 + $0x618] sm:$0xff] %v8631_v57  ;;  %8652 = vpow2.f32 %v6802_v33  ;;  %v6810_v33 = vmul.f32 -1.442695, %v4601_v49  ;;  %v4617_v57 = vadd.f32 %v10971_v3, %v10918_v36  ;;  %v6824_v50 = vmul.f32 -1.442695, %v4611_v62 }
 0x923   : > { %v8635_v51 = vpop.eup %8634  ;;  %v5602_v13 = vadd.f32 1.0, %v8633_v39  ;;  %8654 = vpow2.f32 %v6803_v23  ;;  %v6823_v25 = vmul.f32 -1.442695, %v4609_v54  ;;  %v6830_v3 = vmul.f32 -1.442695, %v4615_v17 }
 0x924   : > { %v8637_v37 = vpop.eup %8636  ;;  %v5687_v9 = vadd.f32 1.0, %v8635_v51  ;;  %8656 = vpow2.f32 %v6809_v7  ;;  %v4619_v51 = vadd.f32 %v10973_v47, %v10868_v16  ;;  %v6831_v47 = vmul.f32 -1.442695, %v4617_v57 }
 0x925   : > { %v8639_v12 = vpop.eup %8638  ;;  %8658 = vrcp.f32 %v5602_v13  ;;  %v5608_v5 = vadd.f32 1.0, %v8637_v37  ;;  %v4621_v37 = vadd.f32 %v10975_v43, %v10918_v36 }
 0x926   : > { %v8641_v21 = vpop.eup %8640  ;;  %8660 = vrcp.f32 %v5687_v9  ;;  %v5722_v8 = vadd.f32 1.0, %v8639_v12  ;;  %v4625_v12 = vadd.f32 %v10979_v2, %v10868_v16  ;;  %v6837_v43 = vmul.f32 -1.442695, %v4619_v51 }
 0x927   : > { %v8643_v34 = vpop.eup %8642  ;;  %8662 = vrcp.f32 %v5608_v5  ;;  %v5609_v14 = vadd.f32 1.0, %v8641_v21  ;;  %v4627_v21 = vadd.f32 %v10983_v28, %v10918_v36  ;;  %v6838_v2 = vmul.f32 -1.442695, %v4621_v37 }
 0x928   : > { %v8645_v58 = vpop.eup %8644  ;;  %8664 = vrcp.f32 %v5722_v8  ;;  %v5708_v55 = vadd.f32 1.0, %v8643_v34  ;;  %v4629_v34 = vadd.f32 %v10987_v63, %v10868_v16  ;;  %v6844_v28 = vmul.f32 -1.442695, %v4625_v12 }
 0x929   : > { %v8647_v30 = vpop.eup %8646  ;;  %8666 = vrcp.f32 %v5609_v14  ;;  %v5615_v18 = vadd.f32 1.0, %v8645_v58  ;;  %v4631_v58 = vadd.f32 %v10991_v61, %v10918_v36 }
 0x92a   : > { %v8649_v11 = vpop.eup %8648  ;;  %8668 = vrcp.f32 %v5708_v55  ;;  %v5729_v27 = vadd.f32 1.0, %v8647_v30  ;;  %v6851_v63 = vmul.f32 -1.442695, %v4629_v34 }
 0x92b   : > { %v8651_v53 = vpop.eup %8650  ;;  %8670 = vrcp.f32 %v5615_v18  ;;  %v5616_v20 = vadd.f32 1.0, %v8649_v11  ;;  %v6845_v18 = vmul.f32 -1.442695, %v4627_v21  ;;  %v6852_v49 = vmul.f32 -1.442695, %v4631_v58 }
 0x92c   : > { %v8653_v26 = vpop.eup %8652  ;;  %8672 = vrcp.f32 %v5729_v27  ;;  %v5715_v38 = vadd.f32 1.0, %v8651_v53  ;;  %v4647_v21 = vadd.f32 %v11033_v35, %v10918_v36  ;;  %v4655_v58 = vadd.f32 %v11040_v40, %v10868_v16 }
 0x92d   : > { %v8655_v19 = vpop.eup %8654  ;;  %8674 = vrcp.f32 %v5616_v20  ;;  %v5622_v31 = vadd.f32 1.0, %v8653_v26 }
 0x92e   : > { %v8657_v42 = vpop.eup %8656  ;;  %8676 = vrcp.f32 %v5715_v38  ;;  %v5623_v24 = vadd.f32 1.0, %v8655_v19 }
 0x92f   : > { %v8659_v48 = vpop.eup %8658  ;;  %8678 = vrcp.f32 %v5622_v31  ;;  %v5629_v23 = vadd.f32 1.0, %v8657_v42 }
 0x930   : > { %v8661_v7 = vpop.eup %8660  ;;  %6274 = vst [vmem:[%s10222_s25 + $0x300] sm:$0xff] %v8659_v48  ;;  %8680 = vrcp.f32 %v5623_v24 }
 0x931   : > { %v8663_v39 = vpop.eup %8662  ;;  %6359 = vst [vmem:[%s10222_s25 + $0x5a8] sm:$0xff] %v8661_v7  ;;  %8682 = vrcp.f32 %v5629_v23  ;;  %v4635_v7 = vadd.f32 %v11006_v1, %v10868_v16 }
 0x932   : > { %v8665_v13 = vpop.eup %8664  ;;  %6280 = vst [vmem:[%s10222_s25 + $0x330] sm:$0xff] %v8663_v39  ;;  %8684 = vpow2.f32 %v6810_v33  ;;  %v4637_v39 = vadd.f32 %v11011_v32, %v10918_v36  ;;  %v4645_v32 = vadd.f32 %v11030_v44, %v10868_v16 }
 0x933   : > { %v8667_v9 = vpop.eup %8666  ;;  %6394 = vst [vmem:[%s10222_s25 + $0x6c0] sm:$0xff] %v8665_v13  ;;  %8686 = vpow2.f32 %v6816_v60  ;;  %v4639_v13 = vadd.f32 %v11016_v10, %v10868_v16  ;;  %v6858_v12 = vmul.f32 -1.442695, %v4635_v7 }
 0x934   : > { %v8669_v5 = vpop.eup %8668  ;;  %6281 = vst [vmem:[%s10222_s25 + $0x338] sm:$0xff] %v8667_v9  ;;  %8688 = vpow2.f32 %v6817_v15  ;;  %v4641_v9 = vadd.f32 %v11021_v29, %v10918_v36  ;;  %v6859_v10 = vmul.f32 -1.442695, %v4637_v39  ;;  %v6872_v35 = vmul.f32 -1.442695, %v4645_v32 }
 0x935   : > { %v8671_v8 = vpop.eup %8670  ;;  %6380 = vst [vmem:[%s10222_s25 + $0x650] sm:$0xff] %v8669_v5  ;;  %8690 = vpow2.f32 %v6823_v25  ;;  %v6865_v29 = vmul.f32 -1.442695, %v4639_v13 }
 0x936   : > { %v8673_v14 = vpop.eup %8672  ;;  %6287 = vst [vmem:[%s10222_s25 + $0x368] sm:$0xff] %v8671_v8  ;;  %8692 = vpow2.f32 %v6824_v50  ;;  %v6866_v44 = vmul.f32 -1.442695, %v4641_v9 }
 0x937   : > { %v8675_v55 = vpop.eup %8674  ;;  %6401 = vst [vmem:[%s10222_s25 + $0x6f8] sm:$0xff] %v8673_v14  ;;  %8694 = vpow2.f32 %v6830_v3  ;;  %v4651_v14 = vadd.f32 %v11038_v56, %v10918_v36 }
 0x938   : > { %v8677_v30 = vpop.eup %8676  ;;  %6288 = vst [vmem:[%s10222_s25 + $0x370] sm:$0xff] %v8675_v55  ;;  %8696 = vpow2.f32 %v6831_v47 }
 0x939   : > { %v8679_v11 = vpop.eup %8678  ;;  %6387 = vst [vmem:[%s10222_s25 + $0x688] sm:$0xff] %v8677_v30  ;;  %8698 = vpow2.f32 %v6837_v43  ;;  %v4649_v43 = vadd.f32 %v11036_v46, %v10868_v16  ;;  %v6873_v46 = vmul.f32 -1.442695, %v4647_v21  ;;  %v6880_v40 = vmul.f32 -1.442695, %v4651_v14 }
 0x93a   : > { %v8681_v27 = vpop.eup %8680  ;;  %6294 = vst [vmem:[%s10222_s25 + $0x3a0] sm:$0xff] %v8679_v11  ;;  %8700 = vpow2.f32 %v6838_v2 }
 0x93b   : > { %v8683_v53 = vpop.eup %8682  ;;  %6295 = vst [vmem:[%s10222_s25 + $0x3a8] sm:$0xff] %v8681_v27  ;;  %8702 = vpow2.f32 %v6844_v28  ;;  %v4657_v28 = vadd.f32 %v11042_v45, %v10918_v36  ;;  %v6879_v56 = vmul.f32 -1.442695, %v4649_v43  ;;  %v6886_v45 = vmul.f32 -1.442695, %v4655_v58 }
 0x93c   : > { %v8685_v61 = vpop.eup %8684  ;;  %6301 = vst [vmem:[%s10222_s25 + $0x3d8] sm:$0xff] %v8683_v53  ;;  %8704 = vpow2.f32 %v6845_v18  ;;  %v4659_v18 = vadd.f32 %v11046_v6, %v10868_v16 }
 0x93d   : > { %v8687_v20 = vpop.eup %8686  ;;  %v5630_v52 = vadd.f32 1.0, %v8685_v61  ;;  %8706 = vpow2.f32 %v6851_v63  ;;  %v4661_v63 = vadd.f32 %v11050_v4, %v10918_v36  ;;  %v6887_v6 = vmul.f32 -1.442695, %v4657_v28 }
 0x93e   : > { %v8689_v26 = vpop.eup %8688  ;;  %v5636_v38 = vadd.f32 1.0, %v8687_v20  ;;  %8708 = vpow2.f32 %v6852_v49  ;;  %v4665_v49 = vadd.f32 %v11063_v0, %v10868_v16  ;;  %v6893_v20 = vmul.f32 -1.442695, %v4659_v18 }
 0x93f   : > { %v8691_v59 = vpop.eup %8690  ;;  %8710 = vrcp.f32 %v5630_v52  ;;  %v5637_v19 = vadd.f32 1.0, %v8689_v26  ;;  %v6894_v4 = vmul.f32 -1.442695, %v4661_v63 }
 0x940   : > { %v8693_v31 = vpop.eup %8692  ;;  %8712 = vrcp.f32 %v5636_v38  ;;  %v5643_v54 = vadd.f32 1.0, %v8691_v59  ;;  %v6900_v38 = vmul.f32 -1.442695, %v4665_v49 }
 0x941   : > { %v8695_v42 = vpop.eup %8694  ;;  %8714 = vrcp.f32 %v5637_v19  ;;  %v5644_v24 = vadd.f32 1.0, %v8693_v31 }
 0x942   : > { %v8697_v33 = vpop.eup %8696  ;;  %8716 = vrcp.f32 %v5643_v54  ;;  %v5650_v62 = vadd.f32 1.0, %v8695_v42 }
 0x943   : > { %v8699_v48 = vpop.eup %8698  ;;  %8718 = vrcp.f32 %v5644_v24  ;;  %v5651_v23 = vadd.f32 1.0, %v8697_v33 }
 0x944   : > { %v8701_v60 = vpop.eup %8700  ;;  %8720 = vrcp.f32 %v5650_v62  ;;  %v5657_v17 = vadd.f32 1.0, %v8699_v48 }
 0x945   : > { %v8703_v15 = vpop.eup %8702  ;;  %8722 = vrcp.f32 %v5651_v23  ;;  %v5658_v57 = vadd.f32 1.0, %v8701_v60 }
 0x946   : > { %v8705_v25 = vpop.eup %8704  ;;  %8724 = vrcp.f32 %v5657_v17  ;;  %v5664_v51 = vadd.f32 1.0, %v8703_v15 }
 0x947   : > { %v8707_v50 = vpop.eup %8706  ;;  %8726 = vrcp.f32 %v5658_v57  ;;  %v5665_v37 = vadd.f32 1.0, %v8705_v25 }
 0x948   : > { %v8709_v1 = vpop.eup %8708  ;;  %8728 = vrcp.f32 %v5664_v51  ;;  %v5671_v3 = vadd.f32 1.0, %v8707_v50  ;;  %v4667_v51 = vadd.f32 %v11068_v41, %v10918_v36 }
 0x949   : > { %v8711_v5 = vpop.eup %8710  ;;  %8730 = vrcp.f32 %v5665_v37  ;;  %v5672_v47 = vadd.f32 1.0, %v8709_v1  ;;  %v4669_v37 = vadd.f32 %v11073_v22, %v10868_v16 }
 0x94a   : > { %v8713_v8 = vpop.eup %8712  ;;  %6302 = vst [vmem:[%s10222_s25 + $0x3e0] sm:$0xff] %v8711_v5  ;;  %8732 = vrcp.f32 %v5671_v3  ;;  %v11384_v3 = vld [vmem:[#allocation16_spill] sm:$0xff] }
 0x94b   : > { %v8715_v34 = vpop.eup %8714  ;;  %6308 = vst [vmem:[%s10222_s25 + $0x410] sm:$0xff] %v8713_v8  ;;  %8734 = vrcp.f32 %v5672_v47  ;;  %v6907_v22 = vmul.f32 -1.442695, %v4669_v37 }
 0x94c   : > { %v8717_v2 = vpop.eup %8716  ;;  %6309 = vst [vmem:[%s10222_s25 + $0x418] sm:$0xff] %v8715_v34  ;;  %8736 = vpow2.f32 %v6858_v12  ;;  %v4671_v12 = vadd.f32 %v11384_v3, %v10918_v36 }
 0x94d   : > { %v8719_v55 = vpop.eup %8718  ;;  %6315 = vst [vmem:[%s10222_s25 + $0x448] sm:$0xff] %v8717_v2  ;;  %8738 = vpow2.f32 %v6859_v10  ;;  %v6901_v10 = vmul.f32 -1.442695, %v4667_v51 }
 0x94e   : > { %v8721_v30 = vpop.eup %8720  ;;  %6316 = vst [vmem:[%s10222_s25 + $0x450] sm:$0xff] %v8719_v55  ;;  %8740 = vpow2.f32 %v6865_v29  ;;  %v6908_v36 = vmul.f32 -1.442695, %v4671_v12 }
 0x94f   : > { %v8723_v11 = vpop.eup %8722  ;;  %6322 = vst [vmem:[%s10222_s25 + $0x480] sm:$0xff] %v8721_v30  ;;  %8742 = vpow2.f32 %v6866_v44 }
 0x950   : > { %v8725_v27 = vpop.eup %8724  ;;  %6323 = vst [vmem:[%s10222_s25 + $0x488] sm:$0xff] %v8723_v11  ;;  %8744 = vpow2.f32 %v6872_v35 }
 0x951   : > { %v8727_v53 = vpop.eup %8726  ;;  %6329 = vst [vmem:[%s10222_s25 + $0x4b8] sm:$0xff] %v8725_v27  ;;  %8746 = vpow2.f32 %v6873_v46 }
 0x952   : > { %v8729_v61 = vpop.eup %8728  ;;  %6330 = vst [vmem:[%s10222_s25 + $0x4c0] sm:$0xff] %v8727_v53  ;;  %8748 = vpow2.f32 %v6879_v56 }
 0x953   : > { %v8731_v52 = vpop.eup %8730  ;;  %6336 = vst [vmem:[%s10222_s25 + $0x4f0] sm:$0xff] %v8729_v61  ;;  %8750 = vpow2.f32 %v6880_v40 }
 0x954   : > { %v8733_v26 = vpop.eup %8732  ;;  %6337 = vst [vmem:[%s10222_s25 + $0x4f8] sm:$0xff] %v8731_v52  ;;  %8752 = vpow2.f32 %v6886_v45 }
 0x955   : > { %v8735_v59 = vpop.eup %8734  ;;  %6343 = vst [vmem:[%s10222_s25 + $0x528] sm:$0xff] %v8733_v26  ;;  %8754 = vpow2.f32 %v6887_v6 }
 0x956   : > { %v8737_v0 = vpop.eup %8736  ;;  %6344 = vst [vmem:[%s10222_s25 + $0x530] sm:$0xff] %v8735_v59  ;;  %8756 = vpow2.f32 %v6893_v20 }
 0x957   : > { %v8739_v19 = vpop.eup %8738  ;;  %v5678_v31 = vadd.f32 1.0, %v8737_v0  ;;  %8758 = vpow2.f32 %v6894_v4 }
 0x958   : > { %v8741_v54 = vpop.eup %8740  ;;  %v5679_v42 = vadd.f32 1.0, %v8739_v19  ;;  %8760 = vpow2.f32 %v6900_v38 }
 0x959   : > { %v8743_v24 = vpop.eup %8742  ;;  %8762 = vrcp.f32 %v5678_v31  ;;  %v5685_v33 = vadd.f32 1.0, %v8741_v54 }
 0x95a   : > { %v8745_v62 = vpop.eup %8744  ;;  %8764 = vrcp.f32 %v5679_v42  ;;  %v5686_v48 = vadd.f32 1.0, %v8743_v24 }
 0x95b   : > { %v8747_v23 = vpop.eup %8746  ;;  %8766 = vrcp.f32 %v5685_v33  ;;  %v5692_v60 = vadd.f32 1.0, %v8745_v62 }
 0x95c   : > { %v8749_v17 = vpop.eup %8748  ;;  %8768 = vrcp.f32 %v5686_v48  ;;  %v5693_v7 = vadd.f32 1.0, %v8747_v23 }
 0x95d   : > { %v8751_v15 = vpop.eup %8750  ;;  %8770 = vrcp.f32 %v5692_v60  ;;  %v5699_v57 = vadd.f32 1.0, %v8749_v17 }
 0x95e   : > { %v8753_v39 = vpop.eup %8752  ;;  %8772 = vrcp.f32 %v5693_v7  ;;  %v5700_v25 = vadd.f32 1.0, %v8751_v15 }
 0x95f   : > { %v8755_v13 = vpop.eup %8754  ;;  %8774 = vrcp.f32 %v5699_v57  ;;  %v5706_v50 = vadd.f32 1.0, %v8753_v39 }
 0x960   : > { %v8757_v9 = vpop.eup %8756  ;;  %8776 = vrcp.f32 %v5700_v25  ;;  %v5707_v1 = vadd.f32 1.0, %v8755_v13 }
 0x961   : > { %v8759_v32 = vpop.eup %8758  ;;  %8778 = vrcp.f32 %v5706_v50  ;;  %v5713_v5 = vadd.f32 1.0, %v8757_v9 }
 0x962   : > { %v8761_v47 = vpop.eup %8760  ;;  %8780 = vrcp.f32 %v5707_v1  ;;  %v5714_v41 = vadd.f32 1.0, %v8759_v32 }
 0x963   : > { %v8763_v21 = vpop.eup %8762  ;;  %8782 = vrcp.f32 %v5713_v5  ;;  %v5720_v16 = vadd.f32 1.0, %v8761_v47 }
 0x964   : > { %v8765_v8 = vpop.eup %8764  ;;  %6350 = vst [vmem:[%s10222_s25 + $0x560] sm:$0xff] %v8763_v21  ;;  %8784 = vrcp.f32 %v5714_v41 }
 0x965   : > { %v8767_v29 = vpop.eup %8766  ;;  %6351 = vst [vmem:[%s10222_s25 + $0x568] sm:$0xff] %v8765_v8  ;;  %8786 = vrcp.f32 %v5720_v16 }
 0x966   : > { %v8769_v43 = vpop.eup %8768  ;;  %6357 = vst [vmem:[%s10222_s25 + $0x598] sm:$0xff] %v8767_v29  ;;  %8788 = vpow2.f32 %v6901_v10 }
 0x967   : > { %v8771_v34 = vpop.eup %8770  ;;  %6358 = vst [vmem:[%s10222_s25 + $0x5a0] sm:$0xff] %v8769_v43  ;;  %8790 = vpow2.f32 %v6907_v22 }
 0x968   : > { %v8773_v44 = vpop.eup %8772  ;;  %6364 = vst [vmem:[%s10222_s25 + $0x5d0] sm:$0xff] %v8771_v34  ;;  %8792 = vpow2.f32 %v6908_v36 }
 0x969   : > { %v8775_v14 = vpop.eup %8774  ;;  %6365 = vst [vmem:[%s10222_s25 + $0x5d8] sm:$0xff] %v8773_v44 }
 0x96a   : > { %v8777_v2 = vpop.eup %8776  ;;  %6371 = vst [vmem:[%s10222_s25 + $0x608] sm:$0xff] %v8775_v14 }
 0x96b   : > { %v8779_v35 = vpop.eup %8778  ;;  %6372 = vst [vmem:[%s10222_s25 + $0x610] sm:$0xff] %v8777_v2 }
 0x96c   : > { %v8781_v58 = vpop.eup %8780  ;;  %6378 = vst [vmem:[%s10222_s25 + $0x640] sm:$0xff] %v8779_v35 }
 0x96d   : > { %v8783_v55 = vpop.eup %8782  ;;  %6379 = vst [vmem:[%s10222_s25 + $0x648] sm:$0xff] %v8781_v58 }
 0x96e   : > { %v8785_v46 = vpop.eup %8784  ;;  %6385 = vst [vmem:[%s10222_s25 + $0x678] sm:$0xff] %v8783_v55 }
 0x96f   : > { %v8787_v28 = vpop.eup %8786  ;;  %6386 = vst [vmem:[%s10222_s25 + $0x680] sm:$0xff] %v8785_v46 }
 0x970   : > { %v8789_v30 = vpop.eup %8788  ;;  %6392 = vst [vmem:[%s10222_s25 + $0x6b0] sm:$0xff] %v8787_v28 }
 0x971   : > { %v8791_v56 = vpop.eup %8790  ;;  %v5721_v18 = vadd.f32 1.0, %v8789_v30 }
 0x972   : > { %v8793_v11 = vpop.eup %8792  ;;  %v5727_v40 = vadd.f32 1.0, %v8791_v56 }
 0x973   : > { %8794 = vrcp.f32 %v5721_v18  ;;  %v5728_v63 = vadd.f32 1.0, %v8793_v11 }
 0x974   : > { %8796 = vrcp.f32 %v5727_v40 }
 0x975   : > { %8798 = vrcp.f32 %v5728_v63 }
 0x97d   : > { %v8795_v27 = vpop.eup %8794 }
 0x97e   : > { %v8797_v45 = vpop.eup %8796  ;;  %6393 = vst [vmem:[%s10222_s25 + $0x6b8] sm:$0xff] %v8795_v27 }
 0x97f   : > { %v8799_v49 = vpop.eup %8798  ;;  %6399 = vst [vmem:[%s10222_s25 + $0x6e8] sm:$0xff] %v8797_v45 }
 0x980   : > { %6400 = vst [vmem:[%s10222_s25 + $0x6f0] sm:$0xff] %v8799_v49 }
 0x981 PF: > { %s27_s24 = sadd.s32 1, %s8807_s24  }
 0x982   : > { %p24_p4 = scmp.ge.s32.totalorder %s27_s24, 4  }
 0x984   :  { %26 = sbr.rel (!%p24_p4) target bundleno = 3 (0x3), region = 118 }

</bundles_post_ra>
